<compile_context>
chip_gen: v5e
topology: v5e:2x2
jax: 0.10.0
libtpu: 0.0.40
codegen_flags: <defaults>
</compile_context>

<pallas_src>
import numpy as np
import jax
import jax.numpy as jnp
from jax.experimental import pallas as pl
from jax.experimental.pallas import tpu as pltpu


def _char_decoder_kernel(xg_ref, h0_ref, c0_ref, whh_ref, wproj_ref, bproj_ref,
                         aff_ref, scores_ref, hout_ref, cout_ref):
    """Whole-sequence LSTM recurrence + batched output projection in one call.

    xg_ref    : (L*B, 4*Hp) precomputed x @ W_ih^T + b, gate-blocked to 128 lanes
    h0/c0     : (B, Hp)     initial recurrent state (lanes >= H are zero)
    whh_ref   : (Hp, 4*Hp)  W_hh^T, gate-blocked, zero rows/cols in padding
    wproj_ref : (Hp, Vp)    W_proj^T, zero-padded rows/cols
    bproj_ref : (1, Vp)     b_proj zero-padded
    aff_ref   : (2, 4*Hp)   row 0 = per-lane pre/post scale, row 1 = post shift
                            (turns one full-width sigmoid into i/f/o=sigmoid,
                             g=tanh via tanh(x)=2*sigmoid(2x)-1)
    scores_ref: (L*B, Vp)   lane-dense output slab
    hout/cout : (B, Hp)     final recurrent state (lane-dense)
    """
    LB, G = xg_ref.shape
    B, Hp = h0_ref.shape
    L = LB // B

    # Hoist all loop-invariant loads above the recurrence.
    whh = whh_ref[...]                       # (Hp, 4*Hp)
    g_scale = aff_ref[0:1, :]                # (1, 4*Hp)
    g_shift = aff_ref[1:2, :]                # (1, 4*Hp)
    h = h0_ref[...]                          # (B, Hp)
    c = c0_ref[...]                          # (B, Hp)

    hs = []
    # Serial LSTM recurrence, fully unrolled (L is a small static int).
    for t in range(L):
        xg_t = xg_ref[t * B:(t + 1) * B, :]                      # static 2-row slice
        gates = xg_t + jnp.dot(h, whh, preferred_element_type=jnp.float32)
        # One EUP pass over the full (B, 4*Hp) vector; per-lane affine recovers
        # tanh for the g block: 2*sigmoid(2x) - 1. (i,f,o lanes: scale=1, shift=0.)
        act = g_scale * jax.nn.sigmoid(g_scale * gates) + g_shift
        i_g = act[:, 0 * Hp:1 * Hp]          # whole-vreg lane-block selects
        f_g = act[:, 1 * Hp:2 * Hp]
        g_g = act[:, 2 * Hp:3 * Hp]
        o_g = act[:, 3 * Hp:4 * Hp]
        c = f_g * c + i_g * g_g
        h = o_g * jnp.tanh(c)                # second (and last) EUP call per step
        hs.append(h)

    hout_ref[...] = h.astype(hout_ref.dtype)
    cout_ref[...] = c.astype(cout_ref.dtype)

    # Batched vocab projection off the serial path: values-only concat (2 vregs),
    # one (L*B, Hp) @ (Hp, Vp) MXU matmul, one unmasked lane-dense store.
    h_all = jnp.concatenate(hs, axis=0)                          # (L*B, Hp)
    scores_ref[...] = (jnp.dot(h_all, wproj_ref[...],
                               preferred_element_type=jnp.float32)
                       + bproj_ref[...]).astype(scores_ref.dtype)


def _pad_gate_blocks(m, h_valid, hp):
    """(..., 4*h_valid) -> (..., 4*hp): each gate in its own lane-aligned block."""
    pad_cfg = [(0, 0)] * (m.ndim - 1)
    blocks = []
    for k in range(4):
        blk = m[..., k * h_valid:(k + 1) * h_valid]
        blocks.append(jnp.pad(blk, pad_cfg + [(0, hp - h_valid)]))
    return jnp.concatenate(blocks, axis=-1)


def char_decoder_forward(input_ids, params, dec_hidden=None):
    """Pallas equivalent of CharDecoder.forward.

    input_ids : (L, B) int32
    dec_hidden: optional tuple of (1, B, H) float32 tensors
    returns   : scores (L, B, V), (h_n, c_n) each (1, B, H)
    """
    L, B = input_ids.shape
    H = params["w_hh_t"].shape[0]
    V = params["w_proj_t"].shape[1]
    Hp = max(pl.cdiv(H, 128) * 128, 128)     # lane-aligned per-gate block width
    Vp = max(pl.cdiv(V, 128) * 128, 128)     # lane-dense padded vocab width

    # Fold embedding lookup, input-to-hidden matmul and both biases into a
    # single (V, 4H) table (XLA glue, off the kernel's serial critical path),
    # then lay each gate out in its own 128-lane block and gather token rows
    # into a dense (L*B, 4*Hp) slab.
    x_table = (params["emb"].astype(jnp.float32) @ params["w_ih_t"]
               + params["b"])                                   # (V, 4H)
    x_table = _pad_gate_blocks(x_table, H, Hp)                  # (V, 4*Hp)
    x_gates = jnp.take(x_table, input_ids, axis=0).reshape(L * B, 4 * Hp)

    # W_hh^T: gate-blocked columns, zero rows beyond H (keeps padded h lanes inert).
    w_hh = _pad_gate_blocks(params["w_hh_t"], H, Hp)            # (H, 4*Hp)
    w_hh = jnp.pad(w_hh, ((0, Hp - H), (0, 0)))                 # (Hp, 4*Hp)

    # Projection padded so the kernel's output last dim is 128-dense.
    w_proj = jnp.pad(params["w_proj_t"], ((0, Hp - H), (0, Vp - V)))  # (Hp, Vp)
    b_proj = jnp.pad(params["b_proj"], ((0, 0), (0, Vp - V)))         # (1, Vp)

    # Per-lane affine for the fused gate nonlinearity (scale=2/shift=-1 on the
    # g block, identity elsewhere).
    lane = np.arange(4 * Hp)
    is_g = (lane >= 2 * Hp) & (lane < 3 * Hp)
    gate_aff = jnp.asarray(
        np.stack([np.where(is_g, 2.0, 1.0), np.where(is_g, -1.0, 0.0)]),
        jnp.float32)                                            # (2, 4*Hp)

    if dec_hidden is None:
        h0 = jnp.zeros((B, Hp), jnp.float32)
        c0 = jnp.zeros((B, Hp), jnp.float32)
    else:
        h0 = jnp.pad(dec_hidden[0].reshape(B, H).astype(jnp.float32),
                     ((0, 0), (0, Hp - H)))
        c0 = jnp.pad(dec_hidden[1].reshape(B, H).astype(jnp.float32),
                     ((0, 0), (0, Hp - H)))

    grid_spec = pltpu.PrefetchScalarGridSpec(
        num_scalar_prefetch=0,
        grid=(1,),                                              # single invocation
        in_specs=[
            pl.BlockSpec((L * B, 4 * Hp), lambda i: (0, 0)),    # x_gates slab
            pl.BlockSpec((B, Hp), lambda i: (0, 0)),            # h0
            pl.BlockSpec((B, Hp), lambda i: (0, 0)),            # c0
            pl.BlockSpec((Hp, 4 * Hp), lambda i: (0, 0)),       # W_hh^T (padded)
            pl.BlockSpec((Hp, Vp), lambda i: (0, 0)),           # W_proj^T (padded)
            pl.BlockSpec((1, Vp), lambda i: (0, 0)),            # b_proj (padded)
            pl.BlockSpec((2, 4 * Hp), lambda i: (0, 0)),        # gate affine
        ],
        out_specs=[
            pl.BlockSpec((L * B, Vp), lambda i: (0, 0)),        # scores slab
            pl.BlockSpec((B, Hp), lambda i: (0, 0)),            # h_n (padded)
            pl.BlockSpec((B, Hp), lambda i: (0, 0)),            # c_n (padded)
        ],
    )

    scores_pad, h_n, c_n = pl.pallas_call(
        _char_decoder_kernel,
        out_shape=(
            jax.ShapeDtypeStruct((L * B, Vp), jnp.float32),
            jax.ShapeDtypeStruct((B, Hp), jnp.float32),
            jax.ShapeDtypeStruct((B, Hp), jnp.float32),
        ),
        grid_spec=grid_spec,
        compiler_params=pltpu.CompilerParams(
            dimension_semantics=("arbitrary",)),   # serial recurrence inside
    )(x_gates, h0, c0, w_hh, w_proj, b_proj, gate_aff)

    scores = scores_pad.reshape(L, B, Vp)[:, :, :V]
    h_n = h_n[:, :H].reshape(1, B, H)
    c_n = c_n[:, :H].reshape(1, B, H)
    return scores, (h_n, c_n)


def reference_forward(input_ids, params, dec_hidden):
    """Pure-JAX reference implementing the same LSTM semantics (for checking)."""
    emb = jnp.take(params["emb"], input_ids, axis=0).astype(jnp.float32)
    B = input_ids.shape[1]
    H = params["w_hh_t"].shape[0]
    h = dec_hidden[0].reshape(B, H)
    c = dec_hidden[1].reshape(B, H)

    def step(carry, x_t):
        h, c = carry
        gates = x_t @ params["w_ih_t"] + h @ params["w_hh_t"] + params["b"]
        i = jax.nn.sigmoid(gates[:, 0 * H:1 * H])
        f = jax.nn.sigmoid(gates[:, 1 * H:2 * H])
        g = jnp.tanh(gates[:, 2 * H:3 * H])
        o = jax.nn.sigmoid(gates[:, 3 * H:4 * H])
        c = f * c + i * g
        h = o * jnp.tanh(c)
        s = h @ params["w_proj_t"] + params["b_proj"]
        return (h, c), s

    (h, c), scores = jax.lax.scan(step, (h, c), emb)
    return scores, (h[None], c[None])


def init_params(key, hidden_size, char_embedding_size, vocab_size, pad_idx):
    """Deterministic synthetic parameters matching the PyTorch module's shapes."""
    ks = jax.random.split(key, 8)
    H, E, V = hidden_size, char_embedding_size, vocab_size
    scale = 0.1
    emb = scale * jax.random.normal(ks[0], (V, E), jnp.float32)
    emb = emb.at[pad_idx].set(0.0)                       # padding_idx row = 0
    w_ih = scale * jax.random.normal(ks[1], (4 * H, E), jnp.float32)  # PyTorch layout
    w_hh = scale * jax.random.normal(ks[2], (4 * H, H), jnp.float32)
    b_ih = scale * jax.random.normal(ks[3], (4 * H,), jnp.float32)
    b_hh = scale * jax.random.normal(ks[4], (4 * H,), jnp.float32)
    w_proj = scale * jax.random.normal(ks[5], (V, H), jnp.float32)
    b_proj = scale * jax.random.normal(ks[6], (V,), jnp.float32)
    return {
        "emb": emb,
        "w_ih_t": w_ih.T,                                # (E, 4H)
        "w_hh_t": w_hh.T,                                # (H, 4H)
        "b": (b_ih + b_hh).reshape(1, 4 * H),            # (1, 4H)
        "w_proj_t": w_proj.T,                            # (H, V)
        "b_proj": b_proj.reshape(1, V),                  # (1, V)
    }


if __name__ == "__main__":
    L, B = 8, 2
    hidden_size = 32
    char_embedding_size = 50
    vocab_size = 30
    pad_idx = 0

    key = jax.random.PRNGKey(0)
    k_param, k_ids, k_h, k_c = jax.random.split(key, 4)

    params = init_params(k_param, hidden_size, char_embedding_size,
                         vocab_size, pad_idx)

    input_ids = jax.random.randint(k_ids, (L, B), 0, vocab_size, dtype=jnp.int32)
    h0 = 0.1 * jax.random.normal(k_h, (1, B, hidden_size), jnp.float32)
    c0 = 0.1 * jax.random.normal(k_c, (1, B, hidden_size), jnp.float32)

    scores, (h_n, c_n) = char_decoder_forward(input_ids, params, (h0, c0))
    jax.block_until_ready((scores, h_n, c_n))

    # Correctness check against a pure-JAX LSTM reference.
    ref_scores, (ref_h, ref_c) = reference_forward(input_ids, params, (h0, c0))
    assert scores.shape == (L, B, vocab_size)
    assert h_n.shape == (1, B, hidden_size) and c_n.shape == (1, B, hidden_size)
    np.testing.assert_allclose(np.asarray(scores), np.asarray(ref_scores),
                               rtol=1e-3, atol=2e-3)
    np.testing.assert_allclose(np.asarray(h_n), np.asarray(ref_h),
                               rtol=1e-3, atol=2e-3)
    np.testing.assert_allclose(np.asarray(c_n), np.asarray(ref_c),
                               rtol=1e-3, atol=2e-3)

    # TODO(synk): train_forward (cross-entropy loss) and decode_greedy (string
    # assembly on host) are not part of forward(); loss / argmax could be a
    # follow-up kernel, string decoding stays on host.
    print("KERNEL_OK")
</pallas_src>

<mosaic_0001>
module attributes {stable_mosaic.version = 11 : i64} {
  func.func @_char_decoder_kernel(%arg0: i32, %arg1: memref<16x512xf32, #tpu.memory_space<vmem>>, %arg2: memref<2x128xf32, #tpu.memory_space<vmem>>, %arg3: memref<2x128xf32, #tpu.memory_space<vmem>>, %arg4: memref<128x512xf32, #tpu.memory_space<vmem>>, %arg5: memref<128x128xf32, #tpu.memory_space<vmem>>, %arg6: memref<1x128xf32, #tpu.memory_space<vmem>>, %arg7: memref<2x512xf32, #tpu.memory_space<vmem>>, %arg8: memref<16x128xf32, #tpu.memory_space<vmem>>, %arg9: memref<2x128xf32, #tpu.memory_space<vmem>>, %arg10: memref<2x128xf32, #tpu.memory_space<vmem>>) attributes {dimension_semantics = [#tpu.dimension_semantics<arbitrary>], iteration_bounds = array<i64: 1>, scalar_prefetch = 0 : i64, scratch_operands = 0 : i64, tpu.core_type = #tpu.core_type<tc>, window_params = [{pipeline_mode = #tpu.pipeline_mode<synchronous>, transform_indices = @transform_0, window_bounds = array<i64: 16, 512>}, {pipeline_mode = #tpu.pipeline_mode<synchronous>, transform_indices = @transform_1, window_bounds = array<i64: 2, 128>}, {pipeline_mode = #tpu.pipeline_mode<synchronous>, transform_indices = @transform_2, window_bounds = array<i64: 2, 128>}, {pipeline_mode = #tpu.pipeline_mode<synchronous>, transform_indices = @transform_3, window_bounds = array<i64: 128, 512>}, {pipeline_mode = #tpu.pipeline_mode<synchronous>, transform_indices = @transform_4, window_bounds = array<i64: 128, 128>}, {pipeline_mode = #tpu.pipeline_mode<synchronous>, transform_indices = @transform_5, window_bounds = array<i64: 1, 128>}, {pipeline_mode = #tpu.pipeline_mode<synchronous>, transform_indices = @transform_6, window_bounds = array<i64: 2, 512>}, {pipeline_mode = #tpu.pipeline_mode<synchronous>, transform_indices = @transform_7, window_bounds = array<i64: 16, 128>}, {pipeline_mode = #tpu.pipeline_mode<synchronous>, transform_indices = @transform_8, window_bounds = array<i64: 2, 128>}, {pipeline_mode = #tpu.pipeline_mode<synchronous>, transform_indices = @transform_9, window_bounds = array<i64: 2, 128>}]} {
    %c0 = arith.constant 0 : index
    %c0_0 = arith.constant 0 : index
    %0 = vector.load %arg4[%c0, %c0_0] : memref<128x512xf32, #tpu.memory_space<vmem>>, vector<128x512xf32>
    %c0_1 = arith.constant 0 : index
    %c0_2 = arith.constant 0 : index
    %1 = vector.load %arg7[%c0_1, %c0_2] : memref<2x512xf32, #tpu.memory_space<vmem>>, vector<1x512xf32>
    %c1 = arith.constant 1 : index
    %c0_3 = arith.constant 0 : index
    %2 = vector.load %arg7[%c1, %c0_3] : memref<2x512xf32, #tpu.memory_space<vmem>>, vector<1x512xf32>
    %c0_4 = arith.constant 0 : index
    %c0_5 = arith.constant 0 : index
    %3 = vector.load %arg2[%c0_4, %c0_5] : memref<2x128xf32, #tpu.memory_space<vmem>>, vector<2x128xf32>
    %c0_6 = arith.constant 0 : index
    %c0_7 = arith.constant 0 : index
    %4 = vector.load %arg3[%c0_6, %c0_7] : memref<2x128xf32, #tpu.memory_space<vmem>>, vector<2x128xf32>
    %c0_8 = arith.constant 0 : index
    %c0_9 = arith.constant 0 : index
    %5 = vector.load %arg1[%c0_8, %c0_9] : memref<16x512xf32, #tpu.memory_space<vmem>>, vector<2x512xf32>
    %cst = arith.constant dense<0.000000e+00> : vector<2x512xf32>
    %6 = tpu.matmul %3, %0, %cst {dimension_numbers = #tpu.dot_dimension_numbers<[1], [0], [0], [1], [0, 0, 1, 1], [], []>} : vector<2x128xf32>, vector<128x512xf32>, vector<2x512xf32> -> vector<2x512xf32>
    %7 = arith.addf %5, %6 : vector<2x512xf32>
    %8 = vector.broadcast %1 : vector<1x512xf32> to vector<2x512xf32>
    %9 = arith.mulf %8, %7 : vector<2x512xf32>
    %10 = arith.negf %9 : vector<2x512xf32>
    %11 = math.exp %10 : vector<2x512xf32>
    %cst_10 = arith.constant 1.000000e+00 : f32
    %12 = vector.broadcast %cst_10 : f32 to vector<2x512xf32>
    %13 = arith.addf %12, %11 : vector<2x512xf32>
    %14 = arith.divf %12, %13 : vector<2x512xf32>
    %15 = vector.broadcast %1 : vector<1x512xf32> to vector<2x512xf32>
    %16 = arith.mulf %15, %14 : vector<2x512xf32>
    %17 = vector.broadcast %2 : vector<1x512xf32> to vector<2x512xf32>
    %18 = arith.addf %16, %17 : vector<2x512xf32>
    %19 = vector.extract_strided_slice %18 {offsets = [0, 0], sizes = [2, 128], strides = [1, 1]} : vector<2x512xf32> to vector<2x128xf32>
    %20 = vector.extract_strided_slice %18 {offsets = [0, 128], sizes = [2, 128], strides = [1, 1]} : vector<2x512xf32> to vector<2x128xf32>
    %21 = vector.extract_strided_slice %18 {offsets = [0, 256], sizes = [2, 128], strides = [1, 1]} : vector<2x512xf32> to vector<2x128xf32>
    %22 = vector.extract_strided_slice %18 {offsets = [0, 384], sizes = [2, 128], strides = [1, 1]} : vector<2x512xf32> to vector<2x128xf32>
    %23 = arith.mulf %20, %4 : vector<2x128xf32>
    %24 = arith.mulf %19, %21 : vector<2x128xf32>
    %25 = arith.addf %23, %24 : vector<2x128xf32>
    %26 = math.tanh %25 : vector<2x128xf32>
    %27 = arith.mulf %22, %26 : vector<2x128xf32>
    %c2 = arith.constant 2 : index
    %c0_11 = arith.constant 0 : index
    %28 = vector.load %arg1[%c2, %c0_11] : memref<16x512xf32, #tpu.memory_space<vmem>>, vector<2x512xf32>
    %cst_12 = arith.constant dense<0.000000e+00> : vector<2x512xf32>
    %29 = tpu.matmul %27, %0, %cst_12 {dimension_numbers = #tpu.dot_dimension_numbers<[1], [0], [0], [1], [0, 0, 1, 1], [], []>} : vector<2x128xf32>, vector<128x512xf32>, vector<2x512xf32> -> vector<2x512xf32>
    %30 = arith.addf %28, %29 : vector<2x512xf32>
    %31 = vector.broadcast %1 : vector<1x512xf32> to vector<2x512xf32>
    %32 = arith.mulf %31, %30 : vector<2x512xf32>
    %33 = arith.negf %32 : vector<2x512xf32>
    %34 = math.exp %33 : vector<2x512xf32>
    %cst_13 = arith.constant 1.000000e+00 : f32
    %35 = vector.broadcast %cst_13 : f32 to vector<2x512xf32>
    %36 = arith.addf %35, %34 : vector<2x512xf32>
    %37 = arith.divf %35, %36 : vector<2x512xf32>
    %38 = vector.broadcast %1 : vector<1x512xf32> to vector<2x512xf32>
    %39 = arith.mulf %38, %37 : vector<2x512xf32>
    %40 = vector.broadcast %2 : vector<1x512xf32> to vector<2x512xf32>
    %41 = arith.addf %39, %40 : vector<2x512xf32>
    %42 = vector.extract_strided_slice %41 {offsets = [0, 0], sizes = [2, 128], strides = [1, 1]} : vector<2x512xf32> to vector<2x128xf32>
    %43 = vector.extract_strided_slice %41 {offsets = [0, 128], sizes = [2, 128], strides = [1, 1]} : vector<2x512xf32> to vector<2x128xf32>
    %44 = vector.extract_strided_slice %41 {offsets = [0, 256], sizes = [2, 128], strides = [1, 1]} : vector<2x512xf32> to vector<2x128xf32>
    %45 = vector.extract_strided_slice %41 {offsets = [0, 384], sizes = [2, 128], strides = [1, 1]} : vector<2x512xf32> to vector<2x128xf32>
    %46 = arith.mulf %43, %25 : vector<2x128xf32>
    %47 = arith.mulf %42, %44 : vector<2x128xf32>
    %48 = arith.addf %46, %47 : vector<2x128xf32>
    %49 = math.tanh %48 : vector<2x128xf32>
    %50 = arith.mulf %45, %49 : vector<2x128xf32>
    %c4 = arith.constant 4 : index
    %c0_14 = arith.constant 0 : index
    %51 = vector.load %arg1[%c4, %c0_14] : memref<16x512xf32, #tpu.memory_space<vmem>>, vector<2x512xf32>
    %cst_15 = arith.constant dense<0.000000e+00> : vector<2x512xf32>
    %52 = tpu.matmul %50, %0, %cst_15 {dimension_numbers = #tpu.dot_dimension_numbers<[1], [0], [0], [1], [0, 0, 1, 1], [], []>} : vector<2x128xf32>, vector<128x512xf32>, vector<2x512xf32> -> vector<2x512xf32>
    %53 = arith.addf %51, %52 : vector<2x512xf32>
    %54 = vector.broadcast %1 : vector<1x512xf32> to vector<2x512xf32>
    %55 = arith.mulf %54, %53 : vector<2x512xf32>
    %56 = arith.negf %55 : vector<2x512xf32>
    %57 = math.exp %56 : vector<2x512xf32>
    %cst_16 = arith.constant 1.000000e+00 : f32
    %58 = vector.broadcast %cst_16 : f32 to vector<2x512xf32>
    %59 = arith.addf %58, %57 : vector<2x512xf32>
    %60 = arith.divf %58, %59 : vector<2x512xf32>
    %61 = vector.broadcast %1 : vector<1x512xf32> to vector<2x512xf32>
    %62 = arith.mulf %61, %60 : vector<2x512xf32>
    %63 = vector.broadcast %2 : vector<1x512xf32> to vector<2x512xf32>
    %64 = arith.addf %62, %63 : vector<2x512xf32>
    %65 = vector.extract_strided_slice %64 {offsets = [0, 0], sizes = [2, 128], strides = [1, 1]} : vector<2x512xf32> to vector<2x128xf32>
    %66 = vector.extract_strided_slice %64 {offsets = [0, 128], sizes = [2, 128], strides = [1, 1]} : vector<2x512xf32> to vector<2x128xf32>
    %67 = vector.extract_strided_slice %64 {offsets = [0, 256], sizes = [2, 128], strides = [1, 1]} : vector<2x512xf32> to vector<2x128xf32>
    %68 = vector.extract_strided_slice %64 {offsets = [0, 384], sizes = [2, 128], strides = [1, 1]} : vector<2x512xf32> to vector<2x128xf32>
    %69 = arith.mulf %66, %48 : vector<2x128xf32>
    %70 = arith.mulf %65, %67 : vector<2x128xf32>
    %71 = arith.addf %69, %70 : vector<2x128xf32>
    %72 = math.tanh %71 : vector<2x128xf32>
    %73 = arith.mulf %68, %72 : vector<2x128xf32>
    %c6 = arith.constant 6 : index
    %c0_17 = arith.constant 0 : index
    %74 = vector.load %arg1[%c6, %c0_17] : memref<16x512xf32, #tpu.memory_space<vmem>>, vector<2x512xf32>
    %cst_18 = arith.constant dense<0.000000e+00> : vector<2x512xf32>
    %75 = tpu.matmul %73, %0, %cst_18 {dimension_numbers = #tpu.dot_dimension_numbers<[1], [0], [0], [1], [0, 0, 1, 1], [], []>} : vector<2x128xf32>, vector<128x512xf32>, vector<2x512xf32> -> vector<2x512xf32>
    %76 = arith.addf %74, %75 : vector<2x512xf32>
    %77 = vector.broadcast %1 : vector<1x512xf32> to vector<2x512xf32>
    %78 = arith.mulf %77, %76 : vector<2x512xf32>
    %79 = arith.negf %78 : vector<2x512xf32>
    %80 = math.exp %79 : vector<2x512xf32>
    %cst_19 = arith.constant 1.000000e+00 : f32
    %81 = vector.broadcast %cst_19 : f32 to vector<2x512xf32>
    %82 = arith.addf %81, %80 : vector<2x512xf32>
    %83 = arith.divf %81, %82 : vector<2x512xf32>
    %84 = vector.broadcast %1 : vector<1x512xf32> to vector<2x512xf32>
    %85 = arith.mulf %84, %83 : vector<2x512xf32>
    %86 = vector.broadcast %2 : vector<1x512xf32> to vector<2x512xf32>
    %87 = arith.addf %85, %86 : vector<2x512xf32>
    %88 = vector.extract_strided_slice %87 {offsets = [0, 0], sizes = [2, 128], strides = [1, 1]} : vector<2x512xf32> to vector<2x128xf32>
    %89 = vector.extract_strided_slice %87 {offsets = [0, 128], sizes = [2, 128], strides = [1, 1]} : vector<2x512xf32> to vector<2x128xf32>
    %90 = vector.extract_strided_slice %87 {offsets = [0, 256], sizes = [2, 128], strides = [1, 1]} : vector<2x512xf32> to vector<2x128xf32>
    %91 = vector.extract_strided_slice %87 {offsets = [0, 384], sizes = [2, 128], strides = [1, 1]} : vector<2x512xf32> to vector<2x128xf32>
    %92 = arith.mulf %89, %71 : vector<2x128xf32>
    %93 = arith.mulf %88, %90 : vector<2x128xf32>
    %94 = arith.addf %92, %93 : vector<2x128xf32>
    %95 = math.tanh %94 : vector<2x128xf32>
    %96 = arith.mulf %91, %95 : vector<2x128xf32>
    %c8 = arith.constant 8 : index
    %c0_20 = arith.constant 0 : index
    %97 = vector.load %arg1[%c8, %c0_20] : memref<16x512xf32, #tpu.memory_space<vmem>>, vector<2x512xf32>
    %cst_21 = arith.constant dense<0.000000e+00> : vector<2x512xf32>
    %98 = tpu.matmul %96, %0, %cst_21 {dimension_numbers = #tpu.dot_dimension_numbers<[1], [0], [0], [1], [0, 0, 1, 1], [], []>} : vector<2x128xf32>, vector<128x512xf32>, vector<2x512xf32> -> vector<2x512xf32>
    %99 = arith.addf %97, %98 : vector<2x512xf32>
    %100 = vector.broadcast %1 : vector<1x512xf32> to vector<2x512xf32>
    %101 = arith.mulf %100, %99 : vector<2x512xf32>
    %102 = arith.negf %101 : vector<2x512xf32>
    %103 = math.exp %102 : vector<2x512xf32>
    %cst_22 = arith.constant 1.000000e+00 : f32
    %104 = vector.broadcast %cst_22 : f32 to vector<2x512xf32>
    %105 = arith.addf %104, %103 : vector<2x512xf32>
    %106 = arith.divf %104, %105 : vector<2x512xf32>
    %107 = vector.broadcast %1 : vector<1x512xf32> to vector<2x512xf32>
    %108 = arith.mulf %107, %106 : vector<2x512xf32>
    %109 = vector.broadcast %2 : vector<1x512xf32> to vector<2x512xf32>
    %110 = arith.addf %108, %109 : vector<2x512xf32>
    %111 = vector.extract_strided_slice %110 {offsets = [0, 0], sizes = [2, 128], strides = [1, 1]} : vector<2x512xf32> to vector<2x128xf32>
    %112 = vector.extract_strided_slice %110 {offsets = [0, 128], sizes = [2, 128], strides = [1, 1]} : vector<2x512xf32> to vector<2x128xf32>
    %113 = vector.extract_strided_slice %110 {offsets = [0, 256], sizes = [2, 128], strides = [1, 1]} : vector<2x512xf32> to vector<2x128xf32>
    %114 = vector.extract_strided_slice %110 {offsets = [0, 384], sizes = [2, 128], strides = [1, 1]} : vector<2x512xf32> to vector<2x128xf32>
    %115 = arith.mulf %112, %94 : vector<2x128xf32>
    %116 = arith.mulf %111, %113 : vector<2x128xf32>
    %117 = arith.addf %115, %116 : vector<2x128xf32>
    %118 = math.tanh %117 : vector<2x128xf32>
    %119 = arith.mulf %114, %118 : vector<2x128xf32>
    %c10 = arith.constant 10 : index
    %c0_23 = arith.constant 0 : index
    %120 = vector.load %arg1[%c10, %c0_23] : memref<16x512xf32, #tpu.memory_space<vmem>>, vector<2x512xf32>
    %cst_24 = arith.constant dense<0.000000e+00> : vector<2x512xf32>
    %121 = tpu.matmul %119, %0, %cst_24 {dimension_numbers = #tpu.dot_dimension_numbers<[1], [0], [0], [1], [0, 0, 1, 1], [], []>} : vector<2x128xf32>, vector<128x512xf32>, vector<2x512xf32> -> vector<2x512xf32>
    %122 = arith.addf %120, %121 : vector<2x512xf32>
    %123 = vector.broadcast %1 : vector<1x512xf32> to vector<2x512xf32>
    %124 = arith.mulf %123, %122 : vector<2x512xf32>
    %125 = arith.negf %124 : vector<2x512xf32>
    %126 = math.exp %125 : vector<2x512xf32>
    %cst_25 = arith.constant 1.000000e+00 : f32
    %127 = vector.broadcast %cst_25 : f32 to vector<2x512xf32>
    %128 = arith.addf %127, %126 : vector<2x512xf32>
    %129 = arith.divf %127, %128 : vector<2x512xf32>
    %130 = vector.broadcast %1 : vector<1x512xf32> to vector<2x512xf32>
    %131 = arith.mulf %130, %129 : vector<2x512xf32>
    %132 = vector.broadcast %2 : vector<1x512xf32> to vector<2x512xf32>
    %133 = arith.addf %131, %132 : vector<2x512xf32>
    %134 = vector.extract_strided_slice %133 {offsets = [0, 0], sizes = [2, 128], strides = [1, 1]} : vector<2x512xf32> to vector<2x128xf32>
    %135 = vector.extract_strided_slice %133 {offsets = [0, 128], sizes = [2, 128], strides = [1, 1]} : vector<2x512xf32> to vector<2x128xf32>
    %136 = vector.extract_strided_slice %133 {offsets = [0, 256], sizes = [2, 128], strides = [1, 1]} : vector<2x512xf32> to vector<2x128xf32>
    %137 = vector.extract_strided_slice %133 {offsets = [0, 384], sizes = [2, 128], strides = [1, 1]} : vector<2x512xf32> to vector<2x128xf32>
    %138 = arith.mulf %135, %117 : vector<2x128xf32>
    %139 = arith.mulf %134, %136 : vector<2x128xf32>
    %140 = arith.addf %138, %139 : vector<2x128xf32>
    %141 = math.tanh %140 : vector<2x128xf32>
    %142 = arith.mulf %137, %141 : vector<2x128xf32>
    %c12 = arith.constant 12 : index
    %c0_26 = arith.constant 0 : index
    %143 = vector.load %arg1[%c12, %c0_26] : memref<16x512xf32, #tpu.memory_space<vmem>>, vector<2x512xf32>
    %cst_27 = arith.constant dense<0.000000e+00> : vector<2x512xf32>
    %144 = tpu.matmul %142, %0, %cst_27 {dimension_numbers = #tpu.dot_dimension_numbers<[1], [0], [0], [1], [0, 0, 1, 1], [], []>} : vector<2x128xf32>, vector<128x512xf32>, vector<2x512xf32> -> vector<2x512xf32>
    %145 = arith.addf %143, %144 : vector<2x512xf32>
    %146 = vector.broadcast %1 : vector<1x512xf32> to vector<2x512xf32>
    %147 = arith.mulf %146, %145 : vector<2x512xf32>
    %148 = arith.negf %147 : vector<2x512xf32>
    %149 = math.exp %148 : vector<2x512xf32>
    %cst_28 = arith.constant 1.000000e+00 : f32
    %150 = vector.broadcast %cst_28 : f32 to vector<2x512xf32>
    %151 = arith.addf %150, %149 : vector<2x512xf32>
    %152 = arith.divf %150, %151 : vector<2x512xf32>
    %153 = vector.broadcast %1 : vector<1x512xf32> to vector<2x512xf32>
    %154 = arith.mulf %153, %152 : vector<2x512xf32>
    %155 = vector.broadcast %2 : vector<1x512xf32> to vector<2x512xf32>
    %156 = arith.addf %154, %155 : vector<2x512xf32>
    %157 = vector.extract_strided_slice %156 {offsets = [0, 0], sizes = [2, 128], strides = [1, 1]} : vector<2x512xf32> to vector<2x128xf32>
    %158 = vector.extract_strided_slice %156 {offsets = [0, 128], sizes = [2, 128], strides = [1, 1]} : vector<2x512xf32> to vector<2x128xf32>
    %159 = vector.extract_strided_slice %156 {offsets = [0, 256], sizes = [2, 128], strides = [1, 1]} : vector<2x512xf32> to vector<2x128xf32>
    %160 = vector.extract_strided_slice %156 {offsets = [0, 384], sizes = [2, 128], strides = [1, 1]} : vector<2x512xf32> to vector<2x128xf32>
    %161 = arith.mulf %158, %140 : vector<2x128xf32>
    %162 = arith.mulf %157, %159 : vector<2x128xf32>
    %163 = arith.addf %161, %162 : vector<2x128xf32>
    %164 = math.tanh %163 : vector<2x128xf32>
    %165 = arith.mulf %160, %164 : vector<2x128xf32>
    %c14 = arith.constant 14 : index
    %c0_29 = arith.constant 0 : index
    %166 = vector.load %arg1[%c14, %c0_29] : memref<16x512xf32, #tpu.memory_space<vmem>>, vector<2x512xf32>
    %cst_30 = arith.constant dense<0.000000e+00> : vector<2x512xf32>
    %167 = tpu.matmul %165, %0, %cst_30 {dimension_numbers = #tpu.dot_dimension_numbers<[1], [0], [0], [1], [0, 0, 1, 1], [], []>} : vector<2x128xf32>, vector<128x512xf32>, vector<2x512xf32> -> vector<2x512xf32>
    %168 = arith.addf %166, %167 : vector<2x512xf32>
    %169 = vector.broadcast %1 : vector<1x512xf32> to vector<2x512xf32>
    %170 = arith.mulf %169, %168 : vector<2x512xf32>
    %171 = arith.negf %170 : vector<2x512xf32>
    %172 = math.exp %171 : vector<2x512xf32>
    %cst_31 = arith.constant 1.000000e+00 : f32
    %173 = vector.broadcast %cst_31 : f32 to vector<2x512xf32>
    %174 = arith.addf %173, %172 : vector<2x512xf32>
    %175 = arith.divf %173, %174 : vector<2x512xf32>
    %176 = vector.broadcast %1 : vector<1x512xf32> to vector<2x512xf32>
    %177 = arith.mulf %176, %175 : vector<2x512xf32>
    %178 = vector.broadcast %2 : vector<1x512xf32> to vector<2x512xf32>
    %179 = arith.addf %177, %178 : vector<2x512xf32>
    %180 = vector.extract_strided_slice %179 {offsets = [0, 0], sizes = [2, 128], strides = [1, 1]} : vector<2x512xf32> to vector<2x128xf32>
    %181 = vector.extract_strided_slice %179 {offsets = [0, 128], sizes = [2, 128], strides = [1, 1]} : vector<2x512xf32> to vector<2x128xf32>
    %182 = vector.extract_strided_slice %179 {offsets = [0, 256], sizes = [2, 128], strides = [1, 1]} : vector<2x512xf32> to vector<2x128xf32>
    %183 = vector.extract_strided_slice %179 {offsets = [0, 384], sizes = [2, 128], strides = [1, 1]} : vector<2x512xf32> to vector<2x128xf32>
    %184 = arith.mulf %181, %163 : vector<2x128xf32>
    %185 = arith.mulf %180, %182 : vector<2x128xf32>
    %186 = arith.addf %184, %185 : vector<2x128xf32>
    %187 = math.tanh %186 : vector<2x128xf32>
    %188 = arith.mulf %183, %187 : vector<2x128xf32>
    %c0_32 = arith.constant 0 : index
    %c0_33 = arith.constant 0 : index
    %189 = vector.load %arg9[%c0_32, %c0_33] : memref<2x128xf32, #tpu.memory_space<vmem>>, vector<2x128xf32>
    tpu.vector_store %arg9[%c0_32, %c0_33], %188 {strides = array<i32>} : memref<2x128xf32, #tpu.memory_space<vmem>>, vector<2x128xf32>,
    %c0_34 = arith.constant 0 : index
    %c0_35 = arith.constant 0 : index
    %190 = vector.load %arg10[%c0_34, %c0_35] : memref<2x128xf32, #tpu.memory_space<vmem>>, vector<2x128xf32>
    tpu.vector_store %arg10[%c0_34, %c0_35], %186 {strides = array<i32>} : memref<2x128xf32, #tpu.memory_space<vmem>>, vector<2x128xf32>,
    %191 = tpu.concatenate %27, %50, %73, %96, %119, %142, %165, %188 in 0 : vector<2x128xf32>, vector<2x128xf32>, vector<2x128xf32>, vector<2x128xf32>, vector<2x128xf32>, vector<2x128xf32>, vector<2x128xf32>, vector<2x128xf32> -> vector<16x128xf32>
    %c0_36 = arith.constant 0 : index
    %c0_37 = arith.constant 0 : index
    %192 = vector.load %arg5[%c0_36, %c0_37] : memref<128x128xf32, #tpu.memory_space<vmem>>, vector<128x128xf32>
    %cst_38 = arith.constant dense<0.000000e+00> : vector<16x128xf32>
    %193 = tpu.matmul %191, %192, %cst_38 {dimension_numbers = #tpu.dot_dimension_numbers<[1], [0], [0], [1], [0, 0, 1, 1], [], []>} : vector<16x128xf32>, vector<128x128xf32>, vector<16x128xf32> -> vector<16x128xf32>
    %c0_39 = arith.constant 0 : index
    %c0_40 = arith.constant 0 : index
    %194 = vector.load %arg6[%c0_39, %c0_40] : memref<1x128xf32, #tpu.memory_space<vmem>>, vector<1x128xf32>
    %195 = vector.broadcast %194 : vector<1x128xf32> to vector<16x128xf32>
    %196 = arith.addf %193, %195 : vector<16x128xf32>
    %c0_41 = arith.constant 0 : index
    %c0_42 = arith.constant 0 : index
    %197 = vector.load %arg8[%c0_41, %c0_42] : memref<16x128xf32, #tpu.memory_space<vmem>>, vector<16x128xf32>
    tpu.vector_store %arg8[%c0_41, %c0_42], %196 {strides = array<i32>} : memref<16x128xf32, #tpu.memory_space<vmem>>, vector<16x128xf32>,
    return
  }
  func.func @transform_0(%arg0: i32) -> (i32, i32) {
    %c0_i32 = arith.constant 0 : i32
    %c0_i32_0 = arith.constant 0 : i32
    %c0_i32_1 = arith.constant 0 : i32
    return %c0_i32, %c0_i32_0 : i32, i32
  }
  func.func @transform_1(%arg0: i32) -> (i32, i32) {
    %c0_i32 = arith.constant 0 : i32
    %c0_i32_0 = arith.constant 0 : i32
    %c0_i32_1 = arith.constant 0 : i32
    return %c0_i32, %c0_i32_0 : i32, i32
  }
  func.func @transform_2(%arg0: i32) -> (i32, i32) {
    %c0_i32 = arith.constant 0 : i32
    %c0_i32_0 = arith.constant 0 : i32
    %c0_i32_1 = arith.constant 0 : i32
    return %c0_i32, %c0_i32_0 : i32, i32
  }
  func.func @transform_3(%arg0: i32) -> (i32, i32) {
    %c0_i32 = arith.constant 0 : i32
    %c0_i32_0 = arith.constant 0 : i32
    %c0_i32_1 = arith.constant 0 : i32
    return %c0_i32, %c0_i32_0 : i32, i32
  }
  func.func @transform_4(%arg0: i32) -> (i32, i32) {
    %c0_i32 = arith.constant 0 : i32
    %c0_i32_0 = arith.constant 0 : i32
    %c0_i32_1 = arith.constant 0 : i32
    return %c0_i32, %c0_i32_0 : i32, i32
  }
  func.func @transform_5(%arg0: i32) -> (i32, i32) {
    %c0_i32 = arith.constant 0 : i32
    %c0_i32_0 = arith.constant 0 : i32
    %c0_i32_1 = arith.constant 0 : i32
    return %c0_i32, %c0_i32_0 : i32, i32
  }
  func.func @transform_6(%arg0: i32) -> (i32, i32) {
    %c0_i32 = arith.constant 0 : i32
    %c0_i32_0 = arith.constant 0 : i32
    %c0_i32_1 = arith.constant 0 : i32
    return %c0_i32, %c0_i32_0 : i32, i32
  }
  func.func @transform_7(%arg0: i32) -> (i32, i32) {
    %c0_i32 = arith.constant 0 : i32
    %c0_i32_0 = arith.constant 0 : i32
    %c0_i32_1 = arith.constant 0 : i32
    return %c0_i32, %c0_i32_0 : i32, i32
  }
  func.func @transform_8(%arg0: i32) -> (i32, i32) {
    %c0_i32 = arith.constant 0 : i32
    %c0_i32_0 = arith.constant 0 : i32
    %c0_i32_1 = arith.constant 0 : i32
    return %c0_i32, %c0_i32_0 : i32, i32
  }
  func.func @transform_9(%arg0: i32) -> (i32, i32) {
    %c0_i32 = arith.constant 0 : i32
    %c0_i32_0 = arith.constant 0 : i32
    %c0_i32_1 = arith.constant 0 : i32
    return %c0_i32, %c0_i32_0 : i32, i32
  }
}

</mosaic_0001>

<bundles_post_ra>
// kernel: tpu_custom_call.1
= control target key start
LH: loop header
LB: loop body
LE: loop exit
PB: predicated region body
PF: predicated region fallthrough
CT: control target
= control target key end

     0   :  { %15 = vsyncpa [#allocation3], 0  ;;  %s3519_s0 = inlined_call_operand.hbm [shape: f32[16,512], index: 0, kind: input, shape index: {}]   ;;  %s3520_s1 = inlined_call_operand.hbm [shape: f32[2,128], index: 1, kind: input, shape index: {}]   ;;  %s3521_s2 = inlined_call_operand.hbm [shape: f32[2,128], index: 2, kind: input, shape index: {}]   ;;  %s3522_s3 = inlined_call_operand.hbm [shape: f32[128,512], index: 3, kind: input, shape index: {}]   ;;  %s3523_s4 = inlined_call_operand.hbm [shape: f32[128,128], index: 4, kind: input, shape index: {}]   ;;  %s3524_s5 = inlined_call_operand.vmem [shape: f32[1,128], index: 5, kind: input, shape index: {}]   ;;  %s3525_s6 = inlined_call_operand.hbm [shape: f32[2,512], index: 6, kind: input, shape index: {}]   ;;  %s3526_s7 = inlined_call_operand.hbm [shape: f32[16,128], index: 7, kind: output, shape index: {0}]   ;;  %s3527_s8 = inlined_call_operand.hbm [shape: f32[2,128], index: 8, kind: output, shape index: {1}]   ;;  %s3528_s9 = inlined_call_operand.hbm [shape: f32[2,128], index: 9, kind: output, shape index: {2}]  }
   0x1   :  { %16 = vsyncpa [#allocation6], 0 }
   0x2   :  { %17 = vsyncpa [#allocation9], 0 }
   0x3   :  { %18 = vsyncpa [#allocation12], 0 }
   0x4   :  { %19 = vsyncpa [#allocation4], 0  ;;  %s39_s11 = sshll.u32 %s3520_s1, 4  ;;  %s40_s11 = int_to_ptr.hbm [resolvable:$true] %s39_s11 }
   0x5   :  { %20 = vsyncpa [#allocation15], 0  ;;  %s2397_s12 = smov [#allocation5]   ;;  %s60_s16 = sshll.u32 %s3522_s3, 4  ;;  %s61_s16 = int_to_ptr.hbm [resolvable:$true] %s60_s16 }
   0x6   :  { %s41_s13 = sshll.u32 %s2397_s12, 4  ;;  %s2398_s17 = smov [#allocation8]   ;;  %s42_s13 = int_to_ptr.vmem [resolvable:$true] %s41_s13 }
   0x7   :  { %44 = dma.hbm_to_vmem [thread:$0]  %s40_s11, 32, %s42_s13, [#allocation6]  }
   0x8   :  { %s62_s18 = sshll.u32 %s2398_s17, 4  ;;  %s25_s21 = sshll.u32 %s3519_s0, 4  ;;  %s63_s18 = int_to_ptr.vmem [resolvable:$true] %s62_s18  ;;  %s26_s21 = int_to_ptr.hbm [resolvable:$true] %s25_s21 }
   0x9   :  { %s2399_s1 = smov 512   ;;  %s2400_s22 = smov 32  }
   0xa   :  { %68 = dma.hbm_to_vmem [thread:$0]  %s61_s16, 8192, %s63_s18, [#allocation9], %s2399_s1, %s2399_s1, %s2400_s22  }
   0xb   :  { %s50_s25 = sshll.u32 %s3521_s2, 4  ;;  %s2401_s26 = smov [#allocation2]   ;;  %s51_s25 = int_to_ptr.hbm [resolvable:$true] %s50_s25 }
   0xc   :  { %s27_s27 = sshll.u32 %s2401_s26, 4  ;;  %s2402_s3 = smov [#allocation7]   ;;  %s28_s27 = int_to_ptr.vmem [resolvable:$true] %s27_s27 }
   0xd   :  { %33 = dma.hbm_to_vmem [thread:$0]  %s26_s21, 1024, %s28_s27, [#allocation3], %s2399_s1, %s2399_s1, %s2400_s22  }
   0xe   :  { %s52_s28 = sshll.u32 %s2402_s3, 4  ;;  %s73_s0 = sshll.u32 %s3523_s4, 4  ;;  %s53_s28 = int_to_ptr.vmem [resolvable:$true] %s52_s28  ;;  %s74_s0 = int_to_ptr.hbm [resolvable:$true] %s73_s0 }
   0xf   :  { %55 = dma.hbm_to_vmem [thread:$0]  %s51_s25, 32, %s53_s28, [#allocation6]  }
  0x10   :  { %s2403_s10 = smov [#allocation10]   ;;  %s89_s2 = sshll.u32 %s3525_s6, 4  ;;  %s90_s2 = int_to_ptr.hbm [resolvable:$true] %s89_s2 }
  0x11   :  { %s75_s11 = sshll.u32 %s2403_s10, 4  ;;  %s2404_s14 = smov 128   ;;  %s76_s11 = int_to_ptr.vmem [resolvable:$true] %s75_s11 }
  0x12   :  { %s2405_s15 = smov 8   ;;  %s2406_s16 = smov [#allocation11]  }
  0x13   :  { %81 = dma.hbm_to_vmem [thread:$0]  %s74_s0, 2048, %s76_s11, [#allocation9], %s2404_s14, %s2404_s14, %s2405_s15  }
  0x14   :  { %s91_s17 = sshll.u32 %s2406_s16, 4  ;;  %s92_s17 = int_to_ptr.vmem [resolvable:$true] %s91_s17 }
  0x15   :  { %94 = dma.hbm_to_vmem [thread:$0]  %s90_s2, 128, %s92_s17, [#allocation12]  }
  0x16   :  { %2385 = dma.done.wait [#allocation3], 1024  }
  0x17   :  { %2386 = vsyncadd [#allocation3], 4294966272 }
  0x18   :  { %2387 = dma.done.wait [#allocation6], 64  }
  0x19   :  { %2388 = vsyncadd [#allocation6], 4294967232 }
  0x1a   :  { %2389 = dma.done.wait [#allocation9], 10240  }
  0x1b   :  { %2390 = vsyncadd [#allocation9], 4294957056 }
  0x1c   :  { %2391 = dma.done.wait [#allocation12], 128  }
  0x1d   :  { %2392 = vsyncadd [#allocation12], 4294967168  ;;  %v2481_v0 = vld [vmem:[#allocation8 + $0x1e0] sm:$0xff]  ;;  %v2486_v2 = vld [vmem:[#allocation8 + $0x1f0] sm:$0xff]  ;;  %s1838_s19 = sshll.u32 %s3527_s8, 4  ;;  %s2407_s20 = smov [#allocation14]   ;;  %s1839_s19 = int_to_ptr.hbm [resolvable:$true] %s1838_s19 }
  0x1e   :  { %v2483_v1 = vld [vmem:[#allocation8 + $0x1c0] sm:$0xff]  ;;  %192 = vmatpush.msra.mxu1 %v2481_v0  ;;  %v2488_v3 = vld [vmem:[#allocation8 + $0x1d0] sm:$0xff]  ;;  %391 = vmatpush.msra.mxu0 %v2481_v0  ;;  %v2511_v10 = vld [vmem:[#allocation8 + $0x1f8] sm:$0xff]  ;;  %s1836_s21 = sshll.u32 %s2407_s20, 4  ;;  %s1849_s23 = sshll.u32 %s3528_s9, 4  ;;  %s1837_s21 = int_to_ptr.vmem [resolvable:$true] %s1836_s21  ;;  %s1850_s23 = int_to_ptr.hbm [resolvable:$true] %s1849_s23 }
  0x1f   :  { %v2491_v4 = vld [vmem:[#allocation8 + $0x1a0] sm:$0xff]  ;;  %232 = vmatpush.msra.mxu2 %v2486_v2  ;;  %v2495_v5 = vld [vmem:[#allocation8 + $0x1b0] sm:$0xff]  ;;  %252 = vmatpush.msra.mxu3 %v2511_v10  ;;  %v2518_v12 = vld [vmem:[#allocation8 + $0x1d8] sm:$0xff]  ;;  %s2408_s24 = smov [#allocation16]   ;;  %s2409_s26 = smov [#allocation13]  }
  0x20   :  { %193 = vmatpush.msra.mxu1 %v2483_v1  ;;  %392 = vmatpush.msra.mxu0 %v2483_v1  ;;  %v2498_v6 = vld [vmem:[#allocation8 + $0x180] sm:$0xff]  ;;  %v2502_v7 = vld [vmem:[#allocation8 + $0x190] sm:$0xff]  ;;  %v2523_v14 = vld [vmem:[#allocation8 + $0x1b8] sm:$0xff]  ;;  %s1847_s25 = sshll.u32 %s2408_s24, 4  ;;  %s1822_s27 = sshll.u32 %s2409_s26, 4  ;;  %s1848_s25 = int_to_ptr.vmem [resolvable:$true] %s1847_s25  ;;  %s1823_s27 = int_to_ptr.vmem [resolvable:$true] %s1822_s27 }
  0x21   :  { %233 = vmatpush.msra.mxu2 %v2488_v3  ;;  %v2505_v8 = vld [vmem:[#allocation8 + $0x160] sm:$0xff]  ;;  %v2509_v9 = vld [vmem:[#allocation8 + $0x170] sm:$0xff]  ;;  %253 = vmatpush.msra.mxu3 %v2518_v12  ;;  %v2533_v17 = vld [vmem:[#allocation8 + $0x198] sm:$0xff]  ;;  %s1824_s8 = sshll.u32 %s3526_s7, 4  ;;  %s1825_s8 = int_to_ptr.hbm [resolvable:$true] %s1824_s8 }
  0x22   :  { %194 = vmatpush.msra.mxu1 %v2491_v4  ;;  %393 = vmatpush.msra.mxu0 %v2491_v4  ;;  %v2514_v11 = vld [vmem:[#allocation8 + $0x140] sm:$0xff]  ;;  %v2521_v13 = vld [vmem:[#allocation8 + $0x150] sm:$0xff]  ;;  %v2543_v20 = vld [vmem:[#allocation8 + $0x178] sm:$0xff] }
  0x23   :  { %234 = vmatpush.msra.mxu2 %v2495_v5  ;;  %v2526_v15 = vld [vmem:[#allocation8 + $0x120] sm:$0xff]  ;;  %v2531_v16 = vld [vmem:[#allocation8 + $0x130] sm:$0xff]  ;;  %254 = vmatpush.msra.mxu3 %v2523_v14  ;;  %v2553_v23 = vld [vmem:[#allocation8 + $0x158] sm:$0xff] }
  0x24   :  { %195 = vmatpush.msra.mxu1 %v2498_v6  ;;  %394 = vmatpush.msra.mxu0 %v2498_v6  ;;  %v2536_v18 = vld [vmem:[#allocation8 + $0x100] sm:$0xff]  ;;  %v2541_v19 = vld [vmem:[#allocation8 + $0x110] sm:$0xff]  ;;  %v2563_v26 = vld [vmem:[#allocation8 + $0x138] sm:$0xff] }
  0x25   :  { %235 = vmatpush.msra.mxu2 %v2502_v7  ;;  %v2546_v21 = vld [vmem:[#allocation8 + $0xe0] sm:$0xff]  ;;  %255 = vmatpush.msra.mxu3 %v2533_v17  ;;  %v2551_v22 = vld [vmem:[#allocation8 + $0xf0] sm:$0xff]  ;;  %v2573_v29 = vld [vmem:[#allocation8 + $0x118] sm:$0xff] }
  0x26   :  { %196 = vmatpush.msra.mxu1 %v2505_v8  ;;  %395 = vmatpush.msra.mxu0 %v2505_v8  ;;  %3641 = vst [vmem:[#allocation23_spill] sm:$0xff] %v2546_v21  ;;  %v2556_v24 = vld [vmem:[#allocation8 + $0xc0] sm:$0xff]  ;;  %v2561_v25 = vld [vmem:[#allocation8 + $0xd0] sm:$0xff]  ;;  %v2583_v32 = vld [vmem:[#allocation8 + $0xf8] sm:$0xff] }
  0x27   :  { %236 = vmatpush.msra.mxu2 %v2509_v9  ;;  %3642 = vst [vmem:[#allocation24_spill] sm:$0xff] %v2551_v22  ;;  %256 = vmatpush.msra.mxu3 %v2543_v20  ;;  %v2566_v27 = vld [vmem:[#allocation8 + $0xa0] sm:$0xff]  ;;  %v2571_v28 = vld [vmem:[#allocation8 + $0xb0] sm:$0xff]  ;;  %v2593_v35 = vld [vmem:[#allocation8 + $0xd8] sm:$0xff] }
  0x28   :  { %197 = vmatpush.msra.mxu1 %v2514_v11  ;;  %396 = vmatpush.msra.mxu0 %v2514_v11  ;;  %3643 = vst [vmem:[#allocation25_spill] sm:$0xff] %v2556_v24  ;;  %v2576_v30 = vld [vmem:[#allocation8 + $0x80] sm:$0xff]  ;;  %v2581_v31 = vld [vmem:[#allocation8 + $0x90] sm:$0xff]  ;;  %v2603_v38 = vld [vmem:[#allocation8 + $0xb8] sm:$0xff] }
  0x29   :  { %237 = vmatpush.msra.mxu2 %v2521_v13  ;;  %3644 = vst [vmem:[#allocation26_spill] sm:$0xff] %v2561_v25  ;;  %257 = vmatpush.msra.mxu3 %v2553_v23  ;;  %v2586_v33 = vld [vmem:[#allocation8 + $0x60] sm:$0xff]  ;;  %v2591_v34 = vld [vmem:[#allocation8 + $0x70] sm:$0xff]  ;;  %v2613_v41 = vld [vmem:[#allocation8 + $0x98] sm:$0xff] }
  0x2a   :  { %198 = vmatpush.msra.mxu1 %v2526_v15  ;;  %397 = vmatpush.msra.mxu0 %v2526_v15  ;;  %3645 = vst [vmem:[#allocation27_spill] sm:$0xff] %v2566_v27  ;;  %v2596_v36 = vld [vmem:[#allocation8 + $0x40] sm:$0xff]  ;;  %v2601_v37 = vld [vmem:[#allocation8 + $0x50] sm:$0xff]  ;;  %v2621_v43 = vld [vmem:[#allocation8 + $0x1e8] sm:$0xff] }
  0x2b   :  { %238 = vmatpush.msra.mxu2 %v2531_v16  ;;  %3646 = vst [vmem:[#allocation28_spill] sm:$0xff] %v2571_v28  ;;  %258 = vmatpush.msra.mxu3 %v2563_v26  ;;  %v2606_v39 = vld [vmem:[#allocation8 + $0x20] sm:$0xff]  ;;  %v2611_v40 = vld [vmem:[#allocation8 + $0x30] sm:$0xff]  ;;  %v2627_v45 = vld [vmem:[#allocation5] sm:$0x3] }
  0x2c   :  { %199 = vmatpush.msra.mxu1 %v2536_v18  ;;  %398 = vmatpush.msra.mxu0 %v2536_v18  ;;  %3647 = vst [vmem:[#allocation29_spill] sm:$0xff] %v2576_v30  ;;  %v2616_v42 = vld [vmem:[#allocation8] sm:$0xff]  ;;  %v2623_v44 = vld [vmem:[#allocation8 + $0x10] sm:$0xff]  ;;  %v2631_v46 = vld [vmem:[#allocation8 + $0x1c8] sm:$0xff] }
  0x2d   :  { %239 = vmatpush.msra.mxu2 %v2541_v19  ;;  %3648 = vst [vmem:[#allocation30_spill] sm:$0xff] %v2581_v31  ;;  %259 = vmatpush.msra.mxu3 %v2573_v29  ;;  %v2633_v47 = vld [vmem:[#allocation8 + $0x78] sm:$0xff]  ;;  %v2638_v48 = vld [vmem:[#allocation8 + $0x1a8] sm:$0xff] }
  0x2e   :  { %200 = vmatpush.msra.mxu1 %v2546_v21  ;;  %399 = vmatpush.msra.mxu0 %v2546_v21  ;;  %3649 = vst [vmem:[#allocation31_spill] sm:$0xff] %v2583_v32  ;;  %v2642_v49 = vld [vmem:[#allocation8 + $0x58] sm:$0xff]  ;;  %v2646_v50 = vld [vmem:[#allocation8 + $0x188] sm:$0xff] }
  0x2f   :  { %240 = vmatpush.msra.mxu2 %v2551_v22  ;;  %3650 = vst [vmem:[#allocation32_spill] sm:$0xff] %v2586_v33  ;;  %260 = vmatpush.msra.mxu3 %v2583_v32  ;;  %v2648_v51 = vld [vmem:[#allocation8 + $0x38] sm:$0xff]  ;;  %v2654_v52 = vld [vmem:[#allocation8 + $0x168] sm:$0xff] }
  0x30   :  { %201 = vmatpush.msra.mxu1 %v2556_v24  ;;  %400 = vmatpush.msra.mxu0 %v2556_v24  ;;  %3651 = vst [vmem:[#allocation33_spill] sm:$0xff] %v2591_v34  ;;  %v2656_v53 = vld [vmem:[#allocation8 + $0x18] sm:$0xff]  ;;  %v2662_v54 = vld [vmem:[#allocation8 + $0x148] sm:$0xff] }
  0x31   :  { %241 = vmatpush.msra.mxu2 %v2561_v25  ;;  %3652 = vst [vmem:[#allocation34_spill] sm:$0xff] %v2593_v35  ;;  %261 = vmatpush.msra.mxu3 %v2593_v35  ;;  %v2668_v55 = vld [vmem:[#allocation8 + $0x128] sm:$0xff] }
  0x32   :  { %202 = vmatpush.msra.mxu1 %v2566_v27  ;;  %401 = vmatpush.msra.mxu0 %v2566_v27  ;;  %3653 = vst [vmem:[#allocation35_spill] sm:$0xff] %v2596_v36  ;;  %v2674_v56 = vld [vmem:[#allocation8 + $0x108] sm:$0xff] }
  0x33   :  { %242 = vmatpush.msra.mxu2 %v2571_v28  ;;  %3654 = vst [vmem:[#allocation36_spill] sm:$0xff] %v2601_v37  ;;  %262 = vmatpush.msra.mxu3 %v2603_v38  ;;  %v2680_v57 = vld [vmem:[#allocation8 + $0xe8] sm:$0xff] }
  0x34   :  { %203 = vmatpush.msra.mxu1 %v2576_v30  ;;  %402 = vmatpush.msra.mxu0 %v2576_v30  ;;  %3655 = vst [vmem:[#allocation37_spill] sm:$0xff] %v2603_v38  ;;  %v2686_v58 = vld [vmem:[#allocation8 + $0xc8] sm:$0xff] }
  0x35   :  { %243 = vmatpush.msra.mxu2 %v2581_v31  ;;  %3656 = vst [vmem:[#allocation38_spill] sm:$0xff] %v2606_v39  ;;  %263 = vmatpush.msra.mxu3 %v2613_v41  ;;  %v2692_v59 = vld [vmem:[#allocation8 + $0xa8] sm:$0xff] }
  0x36   :  { %204 = vmatpush.msra.mxu1 %v2586_v33  ;;  %403 = vmatpush.msra.mxu0 %v2586_v33  ;;  %3657 = vst [vmem:[#allocation39_spill] sm:$0xff] %v2611_v40  ;;  %v2698_v60 = vld [vmem:[#allocation8 + $0x88] sm:$0xff] }
  0x37   :  { %244 = vmatpush.msra.mxu2 %v2591_v34  ;;  %3658 = vst [vmem:[#allocation40_spill] sm:$0xff] %v2613_v41  ;;  %264 = vmatpush.msra.mxu3 %v2633_v47  ;;  %v2704_v61 = vld [vmem:[#allocation8 + $0x68] sm:$0xff] }
  0x38   :  { %205 = vmatpush.msra.mxu1 %v2596_v36  ;;  %404 = vmatpush.msra.mxu0 %v2596_v36  ;;  %3659 = vst [vmem:[#allocation41_spill] sm:$0xff] %v2616_v42  ;;  %v2710_v62 = vld [vmem:[#allocation8 + $0x48] sm:$0xff] }
  0x39   :  { %245 = vmatpush.msra.mxu2 %v2601_v37  ;;  %3660 = vst [vmem:[#allocation42_spill] sm:$0xff] %v2623_v44  ;;  %265 = vmatpush.msra.mxu3 %v2642_v49  ;;  %v2716_v63 = vld [vmem:[#allocation8 + $0x28] sm:$0xff] }
  0x3a   :  { %206 = vmatpush.msra.mxu1 %v2606_v39  ;;  %405 = vmatpush.msra.mxu0 %v2606_v39  ;;  %3661 = vst [vmem:[#allocation43_spill] sm:$0xff] %v2633_v47 }
  0x3b   :  { %246 = vmatpush.msra.mxu2 %v2611_v40  ;;  %3662 = vst [vmem:[#allocation44_spill] sm:$0xff] %v2642_v49  ;;  %266 = vmatpush.msra.mxu3 %v2648_v51 }
  0x3c   :  { %207 = vmatpush.msra.mxu1 %v2616_v42  ;;  %406 = vmatpush.msra.mxu0 %v2616_v42  ;;  %3663 = vst [vmem:[#allocation45_spill] sm:$0xff] %v2648_v51 }
  0x3d   :  { %247 = vmatpush.msra.mxu2 %v2623_v44  ;;  %208 = vmatmul.f32.vlgmr.msra.gmra.mxu1 %v2627_v45  ;;  %3664 = vst [vmem:[#allocation46_spill] sm:$0xff] %v2656_v53 }
  0x3e   :  { %212 = vmatpush.msrb.mxu1 %v2621_v43  ;;  %248 = vmatmul.f32.vlgmr.msra.gmra.mxu2 %v2627_v45  ;;  %3665 = vst [vmem:[#allocation47_spill] sm:$0xff] %v2680_v57 }
  0x3f   :  { %431 = vmatpush.msrb.mxu2 %v2486_v2  ;;  %590 = vmatpush.msrb.mxu0 %v2481_v0  ;;  %3666 = vst [vmem:[#allocation48_spill] sm:$0xff] %v2686_v58 }
  0x40   :  { %213 = vmatpush.msrb.mxu1 %v2631_v46  ;;  %267 = vmatpush.msra.mxu3 %v2656_v53  ;;  %3667 = vst [vmem:[#allocation49_spill] sm:$0xff] %v2692_v59 }
  0x41   :  { %432 = vmatpush.msrb.mxu2 %v2488_v3  ;;  %591 = vmatpush.msrb.mxu0 %v2483_v1  ;;  %3668 = vst [vmem:[#allocation50_spill] sm:$0xff] %v2698_v60 }
  0x42   :  { %214 = vmatpush.msrb.mxu1 %v2638_v48  ;;  %268 = vmatmul.f32.vlgmr.msra.gmra.mxu3 %v2627_v45  ;;  %3669 = vst [vmem:[#allocation51_spill] sm:$0xff] %v2704_v61 }
  0x43   :  { %433 = vmatpush.msrb.mxu2 %v2495_v5  ;;  %592 = vmatpush.msrb.mxu0 %v2491_v4  ;;  %3670 = vst [vmem:[#allocation52_spill] sm:$0xff] %v2710_v62 }
  0x44   :  { %215 = vmatpush.msrb.mxu1 %v2646_v50  ;;  %451 = vmatpush.msrb.mxu3 %v2511_v10  ;;  %3671 = vst [vmem:[#allocation53_spill] sm:$0xff] %v2716_v63 }
  0x45   :  { %434 = vmatpush.msrb.mxu2 %v2502_v7  ;;  %593 = vmatpush.msrb.mxu0 %v2498_v6 }
  0x46   :  { %216 = vmatpush.msrb.mxu1 %v2654_v52  ;;  %452 = vmatpush.msrb.mxu3 %v2518_v12 }
  0x47   :  { %435 = vmatpush.msrb.mxu2 %v2509_v9  ;;  %594 = vmatpush.msrb.mxu0 %v2505_v8 }
  0x48   :  { %217 = vmatpush.msrb.mxu1 %v2662_v54  ;;  %453 = vmatpush.msrb.mxu3 %v2523_v14 }
  0x49   :  { %436 = vmatpush.msrb.mxu2 %v2521_v13  ;;  %595 = vmatpush.msrb.mxu0 %v2514_v11 }
  0x4a   :  { %218 = vmatpush.msrb.mxu1 %v2668_v55  ;;  %454 = vmatpush.msrb.mxu3 %v2533_v17 }
  0x4b   :  { %437 = vmatpush.msrb.mxu2 %v2531_v16  ;;  %596 = vmatpush.msrb.mxu0 %v2526_v15 }
  0x4c   :  { %219 = vmatpush.msrb.mxu1 %v2674_v56  ;;  %455 = vmatpush.msrb.mxu3 %v2543_v20 }
  0x4d   :  { %438 = vmatpush.msrb.mxu2 %v2541_v19  ;;  %597 = vmatpush.msrb.mxu0 %v2536_v18 }
  0x4e   :  { %220 = vmatpush.msrb.mxu1 %v2680_v57  ;;  %456 = vmatpush.msrb.mxu3 %v2553_v23 }
  0x4f   :  { %439 = vmatpush.msrb.mxu2 %v2551_v22  ;;  %598 = vmatpush.msrb.mxu0 %v2546_v21  ;;  %v2722_v21 = vld [vmem:[#allocation8 + $0x8] sm:$0xff] }
  0x50   :  { %221 = vmatpush.msrb.mxu1 %v2686_v58  ;;  %457 = vmatpush.msrb.mxu3 %v2563_v26  ;;  %3672 = vst [vmem:[#allocation54_spill] sm:$0xff] %v2722_v21 }
  0x51   :  { %440 = vmatpush.msrb.mxu2 %v2561_v25  ;;  %599 = vmatpush.msrb.mxu0 %v2556_v24 }
  0x52   :  { %222 = vmatpush.msrb.mxu1 %v2692_v59  ;;  %458 = vmatpush.msrb.mxu3 %v2573_v29 }
  0x53   :  { %441 = vmatpush.msrb.mxu2 %v2571_v28  ;;  %600 = vmatpush.msrb.mxu0 %v2566_v27 }
  0x54   :  { %223 = vmatpush.msrb.mxu1 %v2698_v60  ;;  %459 = vmatpush.msrb.mxu3 %v2583_v32 }
  0x55   :  { %442 = vmatpush.msrb.mxu2 %v2581_v31  ;;  %601 = vmatpush.msrb.mxu0 %v2576_v30 }
  0x56   :  { %224 = vmatpush.msrb.mxu1 %v2704_v61  ;;  %460 = vmatpush.msrb.mxu3 %v2593_v35 }
  0x57   :  { %443 = vmatpush.msrb.mxu2 %v2591_v34  ;;  %602 = vmatpush.msrb.mxu0 %v2586_v33 }
  0x58   :  { %225 = vmatpush.msrb.mxu1 %v2710_v62  ;;  %461 = vmatpush.msrb.mxu3 %v2603_v38 }
  0x59   :  { %444 = vmatpush.msrb.mxu2 %v2601_v37  ;;  %603 = vmatpush.msrb.mxu0 %v2596_v36 }
  0x5a   :  { %226 = vmatpush.msrb.mxu1 %v2716_v63  ;;  %462 = vmatpush.msrb.mxu3 %v2613_v41 }
  0x5b   :  { %445 = vmatpush.msrb.mxu2 %v2611_v40  ;;  %604 = vmatpush.msrb.mxu0 %v2606_v39 }
  0x5c   :  { %227 = vmatpush.msrb.mxu1 %v2722_v21  ;;  %463 = vmatpush.msrb.mxu3 %v2633_v47 }
  0x5d   :  { %228 = vmatmul.f32.vlgmr.msrb.gmra.mxu1 %v2627_v45  ;;  %446 = vmatpush.msrb.mxu2 %v2623_v44  ;;  %v183_v45 = vld [vmem:[#allocation11] ss:$2 sm:$0xf] }
  0x5e   :  { %411 = vmatpush.msra.mxu1 %v2621_v43  ;;  %464 = vmatpush.msrb.mxu3 %v2642_v49  ;;  %v2813_v33 = vperm.slane %v183_v45, 3 }
  0x5f   :  { %630 = vmatpush.msra.mxu2 %v2486_v2  ;;  %605 = vmatpush.msrb.mxu0 %v2616_v42 }
  0x60   :  { %412 = vmatpush.msra.mxu1 %v2631_v46  ;;  %465 = vmatpush.msrb.mxu3 %v2648_v51 }
  0x61   :  { %631 = vmatpush.msra.mxu2 %v2488_v3 }
  0x62   :  { %413 = vmatpush.msra.mxu1 %v2638_v48  ;;  %466 = vmatpush.msrb.mxu3 %v2656_v53 }
  0x63   :  { %632 = vmatpush.msra.mxu2 %v2495_v5 }
  0x64   :  { %414 = vmatpush.msra.mxu1 %v2646_v50  ;;  %650 = vmatpush.msra.mxu3 %v2511_v10 }
  0x65   :  { %633 = vmatpush.msra.mxu2 %v2502_v7 }
  0x66   :  { %415 = vmatpush.msra.mxu1 %v2654_v52  ;;  %651 = vmatpush.msra.mxu3 %v2518_v12 }
  0x67   :  { %634 = vmatpush.msra.mxu2 %v2509_v9 }
  0x68   :  { %416 = vmatpush.msra.mxu1 %v2662_v54  ;;  %652 = vmatpush.msra.mxu3 %v2523_v14 }
  0x69   :  { %635 = vmatpush.msra.mxu2 %v2521_v13 }
  0x6a   :  { %417 = vmatpush.msra.mxu1 %v2668_v55  ;;  %653 = vmatpush.msra.mxu3 %v2533_v17 }
  0x6b   :  { %636 = vmatpush.msra.mxu2 %v2531_v16 }
  0x6c   :  { %418 = vmatpush.msra.mxu1 %v2674_v56  ;;  %654 = vmatpush.msra.mxu3 %v2543_v20 }
  0x6d   :  { %637 = vmatpush.msra.mxu2 %v2541_v19 }
  0x6e   :  { %419 = vmatpush.msra.mxu1 %v2680_v57  ;;  %655 = vmatpush.msra.mxu3 %v2553_v23 }
  0x6f   :  { %638 = vmatpush.msra.mxu2 %v2551_v22 }
  0x70   :  { %420 = vmatpush.msra.mxu1 %v2686_v58  ;;  %656 = vmatpush.msra.mxu3 %v2563_v26 }
  0x71   :  { %639 = vmatpush.msra.mxu2 %v2561_v25  ;;  %v185_v25 = vld [vmem:[#allocation11 + $0x1] ss:$2 sm:$0xf] }
  0x72   :  { %421 = vmatpush.msra.mxu1 %v2692_v59  ;;  %657 = vmatpush.msra.mxu3 %v2573_v29 }
  0x73   :  { %640 = vmatpush.msra.mxu2 %v2571_v28 }
  0x74   :  { %422 = vmatpush.msra.mxu1 %v2698_v60  ;;  %658 = vmatpush.msra.mxu3 %v2583_v32 }
  0x75   :  { %641 = vmatpush.msra.mxu2 %v2581_v31 }
  0x76   :  { %423 = vmatpush.msra.mxu1 %v2704_v61  ;;  %659 = vmatpush.msra.mxu3 %v2593_v35 }
  0x77   :  { %642 = vmatpush.msra.mxu2 %v2591_v34 }
  0x78   :  { %424 = vmatpush.msra.mxu1 %v2710_v62  ;;  %660 = vmatpush.msra.mxu3 %v2603_v38 }
  0x79   :  { %643 = vmatpush.msra.mxu2 %v2601_v37 }
  0x7a   :  { %425 = vmatpush.msra.mxu1 %v2716_v63  ;;  %661 = vmatpush.msra.mxu3 %v2613_v41 }
  0x7b   :  { %644 = vmatpush.msra.mxu2 %v2611_v40  ;;  %v190_v40 = vld [vmem:[#allocation2 + $0x10] sm:$0x3] }
  0x7c   :  { %426 = vmatpush.msra.mxu1 %v2722_v21  ;;  %662 = vmatpush.msra.mxu3 %v2633_v47 }
  0x7d   :  { %645 = vmatpush.msra.mxu2 %v2623_v44 }
  0x7e   :  { %610 = vmatpush.msrb.mxu1 %v2621_v43  ;;  %663 = vmatpush.msra.mxu3 %v2642_v49  ;;  %v2810_v49 = vperm.slane %v183_v45, 2 }
  0x80   :  { %611 = vmatpush.msrb.mxu1 %v2631_v46  ;;  %664 = vmatpush.msra.mxu3 %v2648_v51  ;;  %v2807_v51 = vperm.slane %v183_v45, 0 }
  0x82   :  { %612 = vmatpush.msrb.mxu1 %v2638_v48  ;;  %665 = vmatpush.msra.mxu3 %v2656_v53  ;;  %v188_v53 = vld [vmem:[#allocation2] sm:$0x3] }
  0x84   :  { %613 = vmatpush.msrb.mxu1 %v2646_v50 }
  0x86   :  { %614 = vmatpush.msrb.mxu1 %v2654_v52 }
  0x88   :  { %615 = vmatpush.msrb.mxu1 %v2662_v54 }
  0x8a   :  { %616 = vmatpush.msrb.mxu1 %v2668_v55 }
  0x8c   :  { %617 = vmatpush.msrb.mxu1 %v2674_v56 }
  0x8e   :  { %618 = vmatpush.msrb.mxu1 %v2680_v57  ;;  %v2829_v57 = vperm.slane %v185_v25, 0 }
  0x90   :  { %619 = vmatpush.msrb.mxu1 %v2686_v58 }
  0x92   :  { %620 = vmatpush.msrb.mxu1 %v2692_v59 }
  0x94   :  { %621 = vmatpush.msrb.mxu1 %v2698_v60 }
  0x96   :  { %622 = vmatpush.msrb.mxu1 %v2704_v61 }
  0x98   :  { %623 = vmatpush.msrb.mxu1 %v2710_v62 }
  0x9a   :  { %624 = vmatpush.msrb.mxu1 %v2716_v63  ;;  %v191_v63 = vld [vmem:[#allocation2 + $0x18] sm:$0x3] }
  0x9c   :  { %625 = vmatpush.msrb.mxu1 %v2722_v21 }
  0xba   :  { %v209_v44 = vpop.f32.mrf.mxu1 }
  0xbb   :  { %v272_v42 = vadd.f32 %v209_v44, %v188_v53 }
  0xbd   :  { %v285_v39 = vmul.f32 %v2807_v51, %v272_v42 }
  0xbf   :  { %v1871_v47 = vmul.f32 -1.442695, %v285_v39 }
  0xc1   :  { %v249_v37 = vpop.f32.mrf.mxu2  ;;  %1917 = vpow2.f32 %v1871_v47 }
  0xc2   :  { %v274_v36 = vadd.f32 %v249_v37, %v190_v40  ;;  %v189_v37 = vld [vmem:[#allocation2 + $0x8] sm:$0x3] }
  0xc4   :  { %v287_v62 = vmul.f32 %v2810_v49, %v274_v36  ;;  %v2816_v36 = vperm.slane %v183_v45, 1 }
  0xc5   :  { %v269_v21 = vpop.f32.mrf.mxu3 }
  0xc6   :  { %v1873_v34 = vmul.f32 -1.442695, %v287_v62  ;;  %v275_v61 = vadd.f32 %v269_v21, %v191_v63 }
  0xc7   :  { %v1918_v44 = vpop.eup %1917 }
  0xc8   :  { %1919 = vpow2.f32 %v1873_v34  ;;  %v288_v53 = vmul.f32 %v2813_v33, %v275_v61  ;;  %v301_v42 = vadd.f32 1.0, %v1918_v44 }
  0xca   :  { %v1874_v31 = vmul.f32 -1.442695, %v288_v53  ;;  %1921 = vrcp.f32 %v301_v42  ;;  %vm310_vm0 = vweird.f32 %v301_v42 }
  0xcc   :  { %1923 = vpow2.f32 %v1874_v31 }
  0xce   :  { %v1920_v41 = vpop.eup %1919 }
  0xcf   :  { %v303_v60 = vadd.f32 1.0, %v1920_v41 }
  0xd0   :  { %v1922_v47 = vpop.eup %1921 }
  0xd1   :  { %1925 = vrcp.f32 %v303_v60  ;;  %v306_v30 = vmul.f32 %v1922_v47, %v301_v42  ;;  %vm311_vm1 = vweird.f32 %v1922_v47  ;;  %vm340_vm2 = vweird.f32 %v303_v60 }
  0xd2   :  { %v1924_v34 = vpop.eup %1923  ;;  %vm2822_vm4 = vmor %vm310_vm0, %vm311_vm1 }
  0xd3   :  { %v2819_v38 = vadd.f32 1.0, %v1924_v34  ;;  %v307_v41 = vsub.f32 1.0, %v306_v30 }
  0xd5   :  { %v308_v53 = vmul.f32 %v1922_v47, %v307_v41  ;;  %vm355_vm10 = vweird.f32 %v2819_v38 }
  0xd7   :  { %v1926_v62 = vpop.eup %1925  ;;  %v309_v34 = vadd.f32 %v1922_v47, %v308_v53 }
  0xd8   :  { %v336_v61 = vmul.f32 %v1926_v62, %v303_v60  ;;  %vm341_vm3 = vweird.f32 %v1926_v62 }
  0xd9   :  { %vm342_vm5 = vmor %vm340_vm2, %vm341_vm3  ;;  %v313_v27 = vsel %vm2822_vm4, %v1922_v47, %v309_v34 }
  0xda   :  { %v229_v39 = vpop.f32.mrf.mxu1  ;;  %v337_v44 = vsub.f32 1.0, %v336_v61  ;;  %v344_v61 = vand.u32 2147483647, %v303_v60 }
  0xdb   :  { %v273_v40 = vadd.f32 %v229_v39, %v189_v37  ;;  %v314_v39 = vand.u32 2147483647, %v301_v42 }
  0xdc   :  { %v338_v28 = vmul.f32 %v1926_v62, %v337_v44  ;;  %vm345_vm7 = vcmp.eq.f32.partialorder %v344_v61, 8.507059e+37  ;;  %v187_v61 = vld [vmem:[#allocation7] sm:$0x3] }
  0xdd   :  { %v286_v21 = vmul.f32 %v2816_v36, %v273_v40  ;;  %v316_v40 = vand.u32 2147483648, %v301_v42  ;;  %vm315_vm6 = vcmp.eq.f32.partialorder %v314_v39, 8.507059e+37  ;;  %v2831_v39 = vperm.slane %v185_v25, 2 }
  0xde   :  { %v339_v30 = vadd.f32 %v1926_v62, %v338_v28 }
  0xdf   :  { %v1872_v63 = vmul.f32 -1.442695, %v286_v21  ;;  %v346_v21 = vand.u32 2147483648, %v303_v60 }
  0xe0   :  { %v343_v35 = vsel %vm342_vm5, %v1926_v62, %v339_v30 }
  0xe1   :  { %1927 = vpow2.f32 %v1872_v63  ;;  %v347_v59 = vor.u32 1.1754944e-38, %v346_v21  ;;  %v359_v63 = vand.u32 2147483647, %v2819_v38 }
  0xe2   :  { %1929 = vrcp.f32 %v2819_v38 }
  0xe3   :  { %v348_v32 = vsel %vm345_vm7, %v347_v59, %v343_v35  ;;  %v361_v35 = vand.u32 2147483648, %v2819_v38  ;;  %v2837_v59 = vperm.slane %v185_v25, 1  ;;  %vm360_vm15 = vcmp.eq.f32.partialorder %v359_v63, 8.507059e+37  ;;  %v3706_v63 = vld [vmem:[#allocation46_spill] sm:$0xff] }
  0xe4   :  { %v367_v47 = vmul.f32 %v348_v32, %v2810_v49 }
  0xe6   :  { %v380_v32 = vadd.f32 %v2831_v39, %v367_v47 }
  0xe7   :  { %v1928_v31 = vpop.eup %1927 }
  0xe8   :  { %v302_v45 = vadd.f32 1.0, %v1928_v31  ;;  %v1930_v37 = vpop.eup %1929  ;;  %v317_v31 = vor.u32 1.1754944e-38, %v316_v40 }
  0xe9   :  { %v351_v41 = vmul.f32 %v1930_v37, %v2819_v38  ;;  %vm356_vm11 = vweird.f32 %v1930_v37 }
  0xea   :  { %1931 = vrcp.f32 %v302_v45  ;;  %v318_v24 = vsel %vm315_vm6, %v317_v31, %v313_v27  ;;  %v331_v28 = vand.u32 2147483648, %v302_v45  ;;  %v329_v22 = vand.u32 2147483647, %v302_v45  ;;  %vm357_vm14 = vmor %vm355_vm10, %vm356_vm11 }
  0xeb   :  { %v352_v53 = vsub.f32 1.0, %v351_v41  ;;  %v365_v21 = vmul.f32 %v318_v24, %v2807_v51  ;;  %vm325_vm9 = vweird.f32 %v302_v45  ;;  %v362_v41 = vor.u32 1.1754944e-38, %v361_v35  ;;  %v3703_v35 = vld [vmem:[#allocation41_spill] sm:$0xff] }
  0xec   :  { %v332_v27 = vor.u32 1.1754944e-38, %v331_v28  ;;  %vm330_vm13 = vcmp.eq.f32.partialorder %v329_v22, 8.507059e+37 }
  0xed   :  { %v353_v40 = vmul.f32 %v1930_v37, %v352_v53  ;;  %v378_v24 = vadd.f32 %v2829_v57, %v365_v21 }
  0xef   :  { %v354_v34 = vadd.f32 %v1930_v37, %v353_v40 }
  0xf0   :  { %v1932_v44 = vpop.eup %1931 }
  0xf1   :  { %v321_v42 = vmul.f32 %v1932_v44, %v302_v45  ;;  %vm326_vm8 = vweird.f32 %v1932_v44 }
  0xf2   :  { %vm327_vm12 = vmor %vm325_vm9, %vm326_vm8 }
  0xf3   :  { %v322_v58 = vsub.f32 1.0, %v321_v42  ;;  %v383_v42 = vmul.f32 %v380_v32, %v378_v24  ;;  %v388_v32 = vld [vmem:[#allocation2 + $0x8] sm:$0xc] }
  0xf5   :  { %v323_v60 = vmul.f32 %v1932_v44, %v322_v58 }
  0xf7   :  { %v324_v62 = vadd.f32 %v1932_v44, %v323_v60  ;;  %v2848_v60 = vperm.slane %v185_v25, 3  ;;  %v3697_v25 = vld [vmem:[#allocation36_spill] sm:$0xff] }
  0xf9   :  { %v328_v58 = vsel %vm327_vm12, %v1932_v44, %v324_v62  ;;  %v358_v44 = vsel %vm357_vm14, %v1930_v37, %v354_v34  ;;  %v3700_v37 = vld [vmem:[#allocation53_spill] sm:$0xff]  ;;  %v3701_v62 = vld [vmem:[#allocation39_spill] sm:$0xff]  ;;  %v3705_v34 = vld [vmem:[#allocation42_spill] sm:$0xff] }
  0xfa   :  { %v333_v30 = vsel %vm330_vm13, %v332_v27, %v328_v58  ;;  %v363_v53 = vsel %vm360_vm15, %v362_v41, %v358_v44  ;;  %v3702_v27 = vld [vmem:[#allocation45_spill] sm:$0xff]  ;;  %v3704_v58 = vld [vmem:[#allocation54_spill] sm:$0xff] }
  0xfb   :  { %v366_v45 = vmul.f32 %v333_v30, %v2816_v36  ;;  %v368_v38 = vmul.f32 %v363_v53, %v2813_v33  ;;  %v387_v30 = vld [vmem:[#allocation2] sm:$0xc]  ;;  %v389_v53 = vld [vmem:[#allocation2 + $0x10] sm:$0xc] }
  0xfd   :  { %v379_v31 = vadd.f32 %v2837_v59, %v366_v45  ;;  %v381_v40 = vadd.f32 %v2848_v60, %v368_v38 }
  0xff   :  { %v382_v22 = vmul.f32 %v379_v31, %v187_v61 }
 0x101   :  { %v2844_v28 = vadd.f32 %v383_v42, %v382_v22 }
 0x103   :  { %1933 = vtanh.f32 %v2844_v28 }
 0x109   :  { %v1934_v21 = vpop.eup %1933 }
 0x10a   :  { %v2851_v47 = vmul.f32 %v1934_v21, %v381_v40 }
 0x10c   :  { %407 = vmatmul.f32.vlgmr.msra.gmra.mxu0 %v2851_v47  ;;  %427 = vmatmul.f32.vlgmr.msra.gmra.mxu1 %v2851_v47 }
 0x10d   :  { %447 = vmatmul.f32.vlgmr.msrb.gmra.mxu2 %v2851_v47  ;;  %467 = vmatmul.f32.vlgmr.msrb.gmra.mxu3 %v2851_v47 }
 0x10e   :  { %789 = vmatpush.msra.mxu0 %v2481_v0  ;;  %809 = vmatpush.msra.mxu1 %v2621_v43  ;;  %v3675_v0 = vld [vmem:[#allocation23_spill] sm:$0xff] }
 0x10f   :  { %829 = vmatpush.msrb.mxu2 %v2486_v2  ;;  %849 = vmatpush.msrb.mxu3 %v2511_v10  ;;  %v3677_v2 = vld [vmem:[#allocation24_spill] sm:$0xff] }
 0x110   :  { %790 = vmatpush.msra.mxu0 %v2483_v1  ;;  %810 = vmatpush.msra.mxu1 %v2631_v46  ;;  %v3676_v1 = vld [vmem:[#allocation47_spill] sm:$0xff]  ;;  %v3685_v10 = vld [vmem:[#allocation28_spill] sm:$0xff] }
 0x111   :  { %830 = vmatpush.msrb.mxu2 %v2488_v3  ;;  %850 = vmatpush.msrb.mxu3 %v2518_v12  ;;  %v3678_v3 = vld [vmem:[#allocation31_spill] sm:$0xff]  ;;  %v3687_v12 = vld [vmem:[#allocation29_spill] sm:$0xff] }
 0x112   :  { %791 = vmatpush.msra.mxu0 %v2491_v4  ;;  %811 = vmatpush.msra.mxu1 %v2638_v48  ;;  %v3679_v4 = vld [vmem:[#allocation25_spill] sm:$0xff] }
 0x113   :  { %831 = vmatpush.msrb.mxu2 %v2495_v5  ;;  %851 = vmatpush.msrb.mxu3 %v2523_v14  ;;  %v3680_v5 = vld [vmem:[#allocation48_spill] sm:$0xff]  ;;  %v3689_v14 = vld [vmem:[#allocation30_spill] sm:$0xff] }
 0x114   :  { %792 = vmatpush.msra.mxu0 %v2498_v6  ;;  %812 = vmatpush.msra.mxu1 %v2646_v50  ;;  %v3681_v6 = vld [vmem:[#allocation26_spill] sm:$0xff] }
 0x115   :  { %832 = vmatpush.msrb.mxu2 %v2502_v7  ;;  %852 = vmatpush.msrb.mxu3 %v2533_v17  ;;  %v3682_v7 = vld [vmem:[#allocation34_spill] sm:$0xff]  ;;  %v3692_v17 = vld [vmem:[#allocation51_spill] sm:$0xff] }
 0x116   :  { %793 = vmatpush.msra.mxu0 %v2505_v8  ;;  %813 = vmatpush.msra.mxu1 %v2654_v52  ;;  %v3683_v8 = vld [vmem:[#allocation27_spill] sm:$0xff] }
 0x117   :  { %833 = vmatpush.msrb.mxu2 %v2509_v9  ;;  %853 = vmatpush.msrb.mxu3 %v2543_v20  ;;  %v3684_v9 = vld [vmem:[#allocation49_spill] sm:$0xff]  ;;  %v3695_v20 = vld [vmem:[#allocation35_spill] sm:$0xff] }
 0x118   :  { %794 = vmatpush.msra.mxu0 %v2514_v11  ;;  %814 = vmatpush.msra.mxu1 %v2662_v54  ;;  %v3686_v11 = vld [vmem:[#allocation37_spill] sm:$0xff] }
 0x119   :  { %834 = vmatpush.msrb.mxu2 %v2521_v13  ;;  %854 = vmatpush.msrb.mxu3 %v2553_v23  ;;  %v3688_v13 = vld [vmem:[#allocation50_spill] sm:$0xff]  ;;  %v3696_v23 = vld [vmem:[#allocation52_spill] sm:$0xff] }
 0x11a   :  { %795 = vmatpush.msra.mxu0 %v2526_v15  ;;  %815 = vmatpush.msra.mxu1 %v2668_v55  ;;  %v3690_v15 = vld [vmem:[#allocation40_spill] sm:$0xff] }
 0x11b   :  { %835 = vmatpush.msrb.mxu2 %v2531_v16  ;;  %855 = vmatpush.msrb.mxu3 %v2563_v26  ;;  %v3691_v16 = vld [vmem:[#allocation32_spill] sm:$0xff] }
 0x11c   :  { %796 = vmatpush.msra.mxu0 %v2536_v18  ;;  %816 = vmatpush.msra.mxu1 %v2674_v56  ;;  %v3693_v18 = vld [vmem:[#allocation33_spill] sm:$0xff]  ;;  %v3698_v26 = vld [vmem:[#allocation44_spill] sm:$0xff] }
 0x11d   :  { %836 = vmatpush.msrb.mxu2 %v2541_v19  ;;  %856 = vmatpush.msrb.mxu3 %v2573_v29  ;;  %v3694_v19 = vld [vmem:[#allocation43_spill] sm:$0xff]  ;;  %v3699_v29 = vld [vmem:[#allocation38_spill] sm:$0xff] }
 0x11e   :  { %797 = vmatpush.msra.mxu0 %v3675_v0  ;;  %817 = vmatpush.msra.mxu1 %v3676_v1  ;;  %v390_v0 = vld [vmem:[#allocation2 + $0x18] sm:$0xc] }
 0x11f   :  { %837 = vmatpush.msrb.mxu2 %v3677_v2  ;;  %857 = vmatpush.msrb.mxu3 %v3678_v3 }
 0x120   :  { %798 = vmatpush.msra.mxu0 %v3679_v4  ;;  %818 = vmatpush.msra.mxu1 %v3680_v5 }
 0x121   :  { %838 = vmatpush.msrb.mxu2 %v3681_v6  ;;  %858 = vmatpush.msrb.mxu3 %v3682_v7 }
 0x122   :  { %799 = vmatpush.msra.mxu0 %v3683_v8  ;;  %819 = vmatpush.msra.mxu1 %v3684_v9 }
 0x123   :  { %839 = vmatpush.msrb.mxu2 %v3685_v10  ;;  %859 = vmatpush.msrb.mxu3 %v3686_v11 }
 0x124   :  { %800 = vmatpush.msra.mxu0 %v3687_v12  ;;  %820 = vmatpush.msra.mxu1 %v3688_v13 }
 0x125   :  { %840 = vmatpush.msrb.mxu2 %v3689_v14  ;;  %860 = vmatpush.msrb.mxu3 %v3690_v15 }
 0x126   :  { %801 = vmatpush.msra.mxu0 %v3691_v16  ;;  %821 = vmatpush.msra.mxu1 %v3692_v17 }
 0x127   :  { %841 = vmatpush.msrb.mxu2 %v3693_v18  ;;  %861 = vmatpush.msrb.mxu3 %v3694_v19 }
 0x128   :  { %802 = vmatpush.msra.mxu0 %v3695_v20  ;;  %822 = vmatpush.msra.mxu1 %v3696_v23 }
 0x129   :  { %842 = vmatpush.msrb.mxu2 %v3697_v25  ;;  %862 = vmatpush.msrb.mxu3 %v3698_v26 }
 0x12a   :  { %803 = vmatpush.msra.mxu0 %v3699_v29  ;;  %823 = vmatpush.msra.mxu1 %v3700_v37 }
 0x12b   :  { %843 = vmatpush.msrb.mxu2 %v3701_v62  ;;  %863 = vmatpush.msrb.mxu3 %v3702_v27 }
 0x12c   :  { %804 = vmatpush.msra.mxu0 %v3703_v35  ;;  %824 = vmatpush.msra.mxu1 %v3704_v58 }
 0x12d   :  { %844 = vmatpush.msrb.mxu2 %v3705_v34  ;;  %864 = vmatpush.msrb.mxu3 %v3706_v63 }
 0x189   :  { %v408_v24 = vpop.f32.mrf.mxu0  ;;  %v428_v45 = vpop.f32.mrf.mxu1 }
 0x18a   :  { %v475_v61 = vrot.slane %v408_v24, 6  ;;  %v476_v41 = vrot.slane %v428_v45, 6 }
 0x18c   :  { %v483_v31 = vadd.f32 %v475_v61, %v387_v30  ;;  %v484_v44 = vadd.f32 %v476_v41, %v388_v32 }
 0x18e   :  { %v487_v22 = vmul.f32 %v483_v31, %v2807_v51  ;;  %v488_v42 = vmul.f32 %v484_v44, %v2816_v36 }
 0x190   :  { %v1875_v38 = vmul.f32 -1.442695, %v487_v22  ;;  %v1876_v40 = vmul.f32 -1.442695, %v488_v42  ;;  %v448_v21 = vpop.f32.mrf.mxu2  ;;  %v468_v2 = vpop.f32.mrf.mxu3 }
 0x191   :  { %v477_v3 = vrot.slane %v448_v21, 6  ;;  %v478_v4 = vrot.slane %v468_v2, 6 }
 0x192   :  { %1935 = vpow2.f32 %v1875_v38 }
 0x193   :  { %1937 = vpow2.f32 %v1876_v40  ;;  %v485_v6 = vadd.f32 %v477_v3, %v389_v53  ;;  %v486_v7 = vadd.f32 %v478_v4, %v390_v0 }
 0x195   :  { %v489_v8 = vmul.f32 %v485_v6, %v2810_v49  ;;  %v490_v10 = vmul.f32 %v486_v7, %v2813_v33 }
 0x197   :  { %v1877_v11 = vmul.f32 -1.442695, %v489_v8  ;;  %v1878_v12 = vmul.f32 -1.442695, %v490_v10 }
 0x198   :  { %v1936_v14 = vpop.eup %1935 }
 0x199   :  { %v1938_v15 = vpop.eup %1937  ;;  %v503_v16 = vadd.f32 1.0, %v1936_v14  ;;  %1939 = vpow2.f32 %v1877_v11 }
 0x19a   :  { %v504_v18 = vadd.f32 1.0, %v1938_v15  ;;  %1941 = vpow2.f32 %v1878_v12 }
 0x19b   :  { %1943 = vrcp.f32 %v503_v16  ;;  %vm512_vm2 = vweird.f32 %v503_v16  ;;  %v516_v53 = vand.u32 2147483647, %v503_v16  ;;  %v518_v38 = vand.u32 2147483648, %v503_v16 }
 0x19c   :  { %1945 = vrcp.f32 %v504_v18  ;;  %v531_v41 = vand.u32 2147483647, %v504_v18  ;;  %v533_v31 = vand.u32 2147483648, %v504_v18  ;;  %vm527_vm4 = vweird.f32 %v504_v18 }
 0x19d   :  { %vm517_vm7 = vcmp.eq.f32.partialorder %v516_v53, 8.507059e+37  ;;  %v519_v10 = vor.u32 1.1754944e-38, %v518_v38 }
 0x19e   :  { %vm532_vm6 = vcmp.eq.f32.partialorder %v531_v41, 8.507059e+37  ;;  %v534_v3 = vor.u32 1.1754944e-38, %v533_v31 }
 0x19f   :  { %v1940_v20 = vpop.eup %1939 }
 0x1a0   :  { %v1942_v25 = vpop.eup %1941  ;;  %v505_v29 = vadd.f32 1.0, %v1940_v20 }
 0x1a1   :  { %v1944_v62 = vpop.eup %1943  ;;  %v2925_v35 = vadd.f32 1.0, %v1942_v25 }
 0x1a2   :  { %v1946_v34 = vpop.eup %1945  ;;  %v508_v30 = vmul.f32 %v1944_v62, %v503_v16  ;;  %1947 = vrcp.f32 %v505_v29  ;;  %vm513_vm0 = vweird.f32 %v1944_v62  ;;  %v548_v12 = vand.u32 2147483648, %v505_v29 }
 0x1a3   :  { %v523_v24 = vmul.f32 %v1946_v34, %v504_v18  ;;  %1949 = vrcp.f32 %v2925_v35  ;;  %vm528_vm1 = vweird.f32 %v1946_v34  ;;  %vm2928_vm3 = vmor %vm512_vm2, %vm513_vm0  ;;  %v546_v15 = vand.u32 2147483647, %v505_v29 }
 0x1a4   :  { %v509_v32 = vsub.f32 1.0, %v508_v30  ;;  %vm529_vm5 = vmor %vm527_vm4, %vm528_vm1  ;;  %vm542_vm9 = vweird.f32 %v505_v29  ;;  %v563_v41 = vand.u32 2147483648, %v2925_v35  ;;  %vm557_vm13 = vweird.f32 %v2925_v35 }
 0x1a5   :  { %v524_v45 = vsub.f32 1.0, %v523_v24  ;;  %vm547_vm11 = vcmp.eq.f32.partialorder %v546_v15, 8.507059e+37  ;;  %v2977_v15 = vld [vmem:[#allocation8 + $0x1b0] sm:$0xff] }
 0x1a6   :  { %v510_v61 = vmul.f32 %v1944_v62, %v509_v32  ;;  %v564_v38 = vor.u32 1.1754944e-38, %v563_v41  ;;  %v3037_v41 = vld [vmem:[#allocation8 + $0xf0] sm:$0xff] }
 0x1a7   :  { %v525_v44 = vmul.f32 %v1946_v34, %v524_v45  ;;  %3714 = vst [vmem:[#allocation48_spill] sm:$0xff] %v3037_v41 }
 0x1a8   :  { %v1948_v22 = vpop.eup %1947  ;;  %v511_v42 = vadd.f32 %v1944_v62, %v510_v61 }
 0x1a9   :  { %v526_v21 = vadd.f32 %v1946_v34, %v525_v44  ;;  %v538_v0 = vmul.f32 %v1948_v22, %v505_v29  ;;  %v1950_v2 = vpop.eup %1949  ;;  %vm543_vm8 = vweird.f32 %v1948_v22  ;;  %v561_v29 = vand.u32 2147483647, %v2925_v35 }
 0x1aa   :  { %v515_v4 = vsel %vm2928_vm3, %v1944_v62, %v511_v42  ;;  %v553_v8 = vmul.f32 %v1950_v2, %v2925_v35  ;;  %vm544_vm10 = vmor %vm542_vm9, %vm543_vm8  ;;  %v549_v62 = vor.u32 1.1754944e-38, %v548_v12  ;;  %vm558_vm12 = vweird.f32 %v1950_v2  ;;  %v2967_v12 = vld [vmem:[#allocation8 + $0x1d0] sm:$0xff] }
 0x1ab   :  { %v530_v6 = vsel %vm529_vm5, %v1946_v34, %v526_v21  ;;  %v539_v7 = vsub.f32 1.0, %v538_v0  ;;  %v520_v18 = vsel %vm517_vm7, %v519_v10, %v515_v4  ;;  %vm559_vm14 = vmor %vm557_vm13, %vm558_vm12  ;;  %vm562_vm15 = vcmp.eq.f32.partialorder %v561_v29, 8.507059e+37  ;;  %v2960_v10 = vld [vmem:[#allocation8 + $0x1f8] sm:$0xff]  ;;  %v3047_v29 = vld [vmem:[#allocation8 + $0xd0] sm:$0xff] }
 0x1ac   :  { %v535_v11 = vsel %vm532_vm6, %v534_v3, %v530_v6  ;;  %v554_v16 = vsub.f32 1.0, %v553_v8  ;;  %v567_v34 = vmul.f32 %v520_v18, %v2807_v51  ;;  %v2987_v18 = vld [vmem:[#allocation8 + $0x190] sm:$0xff]  ;;  %3717 = vst [vmem:[#allocation27_spill] sm:$0xff] %v3047_v29 }
 0x1ad   :  { %v540_v14 = vmul.f32 %v1948_v22, %v539_v7  ;;  %v568_v20 = vmul.f32 %v535_v11, %v2816_v36  ;;  %v2963_v11 = vld [vmem:[#allocation8 + $0x1c0] sm:$0xff] }
 0x1ae   :  { %v555_v30 = vmul.f32 %v1950_v2, %v554_v16  ;;  %v571_v44 = vadd.f32 %v567_v34, %v2829_v57  ;;  %v2980_v16 = vld [vmem:[#allocation8 + $0x1b8] sm:$0xff] }
 0x1af   :  { %v541_v25 = vadd.f32 %v1948_v22, %v540_v14  ;;  %v572_v31 = vadd.f32 %v568_v20, %v2837_v59  ;;  %v2970_v14 = vld [vmem:[#allocation8 + $0x1d8] sm:$0xff] }
 0x1b0   :  { %v556_v45 = vadd.f32 %v1950_v2, %v555_v30  ;;  %v2990_v20 = vld [vmem:[#allocation8 + $0x198] sm:$0xff] }
 0x1b1   :  { %v545_v24 = vsel %vm544_vm10, %v1948_v22, %v541_v25  ;;  %v576_v22 = vrot.slane %v2844_v28, 6  ;;  %v2953_v28 = vld [vmem:[#allocation8 + $0x1e0] sm:$0xff]  ;;  %v2997_v25 = vld [vmem:[#allocation8 + $0x170] sm:$0xff]  ;;  %v3000_v30 = vld [vmem:[#allocation8 + $0x178] sm:$0xff] }
 0x1b2   :  { %v550_v32 = vsel %vm547_vm11, %v549_v62, %v545_v24  ;;  %v560_v53 = vsel %vm559_vm14, %v1950_v2, %v556_v45  ;;  %v2957_v2 = vld [vmem:[#allocation8 + $0x1f0] sm:$0xff]  ;;  %v3010_v34 = vld [vmem:[#allocation8 + $0x158] sm:$0xff] }
 0x1b3   :  { %v569_v61 = vmul.f32 %v550_v32, %v2810_v49  ;;  %v578_v40 = vmul.f32 %v576_v22, %v572_v31  ;;  %v565_v0 = vsel %vm562_vm15, %v564_v38, %v560_v53  ;;  %v3007_v62 = vld [vmem:[#allocation8 + $0x150] sm:$0xff]  ;;  %v3020_v32 = vld [vmem:[#allocation8 + $0x138] sm:$0xff] }
 0x1b4   :  { %v570_v4 = vmul.f32 %v565_v0, %v2813_v33  ;;  %v3017_v24 = vld [vmem:[#allocation8 + $0x130] sm:$0xff]  ;;  %3709 = vst [vmem:[#allocation23_spill] sm:$0xff] %v3020_v32  ;;  %v3040_v31 = vld [vmem:[#allocation8 + $0xf8] sm:$0xff]  ;;  %v3089_v0 = vld [vmem:[#allocation8 + $0x20] sm:$0xff] }
 0x1b5   :  { %v573_v42 = vadd.f32 %v569_v61, %v2831_v39  ;;  %v3027_v45 = vld [vmem:[#allocation8 + $0x110] sm:$0xff]  ;;  %v3030_v61 = vld [vmem:[#allocation8 + $0x118] sm:$0xff]  ;;  %3715 = vst [vmem:[#allocation26_spill] sm:$0xff] %v3040_v31 }
 0x1b6   :  { %v574_v35 = vadd.f32 %v570_v4, %v2848_v60  ;;  %3711 = vst [vmem:[#allocation24_spill] sm:$0xff] %v3027_v45  ;;  %v3060_v22 = vld [vmem:[#allocation8 + $0xb8] sm:$0xff]  ;;  %v3067_v53 = vld [vmem:[#allocation8 + $0x90] sm:$0xff]  ;;  %v584_v4 = vld [vmem:[#allocation2 + $0x8] sm:$0x30] }
 0x1b7   :  { %v579_v21 = vmul.f32 %v573_v42, %v571_v44  ;;  %3712 = vst [vmem:[#allocation31_spill] sm:$0xff] %v3030_v61  ;;  %v3050_v44 = vld [vmem:[#allocation8 + $0xd8] sm:$0xff]  ;;  %v3057_v42 = vld [vmem:[#allocation8 + $0xb0] sm:$0xff] }
 0x1b8   :  { %3718 = vst [vmem:[#allocation49_spill] sm:$0xff] %v3050_v44  ;;  %v3070_v38 = vld [vmem:[#allocation8 + $0x98] sm:$0xff] }
 0x1b9   :  { %v2945_v3 = vadd.f32 %v579_v21, %v578_v40  ;;  %3720 = vst [vmem:[#allocation37_spill] sm:$0xff] %v3057_v42  ;;  %v3077_v40 = vld [vmem:[#allocation8 + $0x70] sm:$0xff] }
 0x1ba   :  { %3721 = vst [vmem:[#allocation29_spill] sm:$0xff] %v3060_v22  ;;  %v3085_v21 = vld [vmem:[#allocation8 + $0x50] sm:$0xff] }
 0x1bb   :  { %1951 = vtanh.f32 %v2945_v3  ;;  %3723 = vst [vmem:[#allocation30_spill] sm:$0xff] %v3067_v53 }
 0x1bc   :  { %3724 = vst [vmem:[#allocation40_spill] sm:$0xff] %v3070_v38 }
 0x1bd   :  { %3726 = vst [vmem:[#allocation51_spill] sm:$0xff] %v3077_v40 }
 0x1be   :  { %3728 = vst [vmem:[#allocation43_spill] sm:$0xff] %v3085_v21 }
 0x1bf   :  { %3729 = vst [vmem:[#allocation35_spill] sm:$0xff] %v3089_v0 }
 0x1c1   :  { %v1952_v6 = vpop.eup %1951 }
 0x1c2   :  { %v2950_v7 = vmul.f32 %v1952_v6, %v574_v35 }
 0x1c4   :  { %v588_v8 = vrot.slane %v2950_v7, 2 }
 0x1c6   :  { %606 = vmatmul.f32.vlgmr.msrb.gmra.mxu0 %v588_v8  ;;  %626 = vmatmul.f32.vlgmr.msrb.gmra.mxu1 %v588_v8 }
 0x1c7   :  { %646 = vmatmul.f32.vlgmr.msra.gmra.mxu2 %v588_v8  ;;  %666 = vmatmul.f32.vlgmr.msra.gmra.mxu3 %v588_v8 }
 0x1c8   :  { %988 = vmatpush.msrb.mxu0 %v2953_v28  ;;  %1008 = vmatpush.msrb.mxu1 %v2621_v43  ;;  %v2973_v43 = vld [vmem:[#allocation8 + $0x1a0] sm:$0xff] }
 0x1c9   :  { %1028 = vmatpush.msra.mxu2 %v2957_v2  ;;  %1048 = vmatpush.msra.mxu3 %v2960_v10 }
 0x1ca   :  { %989 = vmatpush.msrb.mxu0 %v2963_v11  ;;  %1009 = vmatpush.msrb.mxu1 %v2631_v46  ;;  %v2983_v46 = vld [vmem:[#allocation8 + $0x180] sm:$0xff] }
 0x1cb   :  { %1029 = vmatpush.msra.mxu2 %v2967_v12  ;;  %1049 = vmatpush.msra.mxu3 %v2970_v14 }
 0x1cc   :  { %990 = vmatpush.msrb.mxu0 %v2973_v43  ;;  %1010 = vmatpush.msrb.mxu1 %v2638_v48  ;;  %v2993_v48 = vld [vmem:[#allocation8 + $0x160] sm:$0xff] }
 0x1cd   :  { %1030 = vmatpush.msra.mxu2 %v2977_v15  ;;  %1050 = vmatpush.msra.mxu3 %v2980_v16 }
 0x1ce   :  { %991 = vmatpush.msrb.mxu0 %v2983_v46  ;;  %1011 = vmatpush.msrb.mxu1 %v2646_v50  ;;  %v3003_v50 = vld [vmem:[#allocation8 + $0x140] sm:$0xff] }
 0x1cf   :  { %1031 = vmatpush.msra.mxu2 %v2987_v18  ;;  %1051 = vmatpush.msra.mxu3 %v2990_v20 }
 0x1d0   :  { %992 = vmatpush.msrb.mxu0 %v2993_v48  ;;  %1012 = vmatpush.msrb.mxu1 %v2654_v52  ;;  %v3013_v52 = vld [vmem:[#allocation8 + $0x120] sm:$0xff] }
 0x1d1   :  { %1032 = vmatpush.msra.mxu2 %v2997_v25  ;;  %1052 = vmatpush.msra.mxu3 %v3000_v30 }
 0x1d2   :  { %993 = vmatpush.msrb.mxu0 %v3003_v50  ;;  %1013 = vmatpush.msrb.mxu1 %v2662_v54  ;;  %v3023_v54 = vld [vmem:[#allocation8 + $0x100] sm:$0xff] }
 0x1d3   :  { %1033 = vmatpush.msra.mxu2 %v3007_v62  ;;  %1053 = vmatpush.msra.mxu3 %v3010_v34  ;;  %3710 = vst [vmem:[#allocation47_spill] sm:$0xff] %v3023_v54 }
 0x1d4   :  { %994 = vmatpush.msrb.mxu0 %v3013_v52  ;;  %1014 = vmatpush.msrb.mxu1 %v2668_v55  ;;  %v3033_v55 = vld [vmem:[#allocation8 + $0xe0] sm:$0xff] }
 0x1d5   :  { %1034 = vmatpush.msra.mxu2 %v3017_v24  ;;  %1054 = vmatpush.msra.mxu3 %v3020_v32  ;;  %3713 = vst [vmem:[#allocation25_spill] sm:$0xff] %v3033_v55 }
 0x1d6   :  { %995 = vmatpush.msrb.mxu0 %v3023_v54  ;;  %1015 = vmatpush.msrb.mxu1 %v2674_v56  ;;  %v3043_v56 = vld [vmem:[#allocation8 + $0xc0] sm:$0xff] }
 0x1d7   :  { %1035 = vmatpush.msra.mxu2 %v3027_v45  ;;  %1055 = vmatpush.msra.mxu3 %v3030_v61  ;;  %3716 = vst [vmem:[#allocation34_spill] sm:$0xff] %v3043_v56 }
 0x1d8   :  { %996 = vmatpush.msrb.mxu0 %v3033_v55  ;;  %1016 = vmatpush.msrb.mxu1 %v3676_v1  ;;  %v3053_v1 = vld [vmem:[#allocation8 + $0xa0] sm:$0xff] }
 0x1d9   :  { %1036 = vmatpush.msra.mxu2 %v3037_v41  ;;  %1056 = vmatpush.msra.mxu3 %v3040_v31  ;;  %3719 = vst [vmem:[#allocation28_spill] sm:$0xff] %v3053_v1 }
 0x1da   :  { %997 = vmatpush.msrb.mxu0 %v3043_v56  ;;  %1017 = vmatpush.msrb.mxu1 %v3680_v5  ;;  %v3063_v5 = vld [vmem:[#allocation8 + $0x80] sm:$0xff] }
 0x1db   :  { %1037 = vmatpush.msra.mxu2 %v3047_v29  ;;  %1057 = vmatpush.msra.mxu3 %v3050_v44  ;;  %3722 = vst [vmem:[#allocation50_spill] sm:$0xff] %v3063_v5 }
 0x1dc   :  { %998 = vmatpush.msrb.mxu0 %v3053_v1  ;;  %1018 = vmatpush.msrb.mxu1 %v3684_v9  ;;  %v3073_v9 = vld [vmem:[#allocation8 + $0x60] sm:$0xff] }
 0x1dd   :  { %1038 = vmatpush.msra.mxu2 %v3057_v42  ;;  %1058 = vmatpush.msra.mxu3 %v3060_v22  ;;  %3725 = vst [vmem:[#allocation32_spill] sm:$0xff] %v3073_v9 }
 0x1de   :  { %999 = vmatpush.msrb.mxu0 %v3063_v5  ;;  %1019 = vmatpush.msrb.mxu1 %v3688_v13  ;;  %v3081_v13 = vld [vmem:[#allocation8 + $0x40] sm:$0xff] }
 0x1df   :  { %1039 = vmatpush.msra.mxu2 %v3067_v53  ;;  %1059 = vmatpush.msra.mxu3 %v3070_v38  ;;  %3727 = vst [vmem:[#allocation33_spill] sm:$0xff] %v3081_v13 }
 0x1e0   :  { %1000 = vmatpush.msrb.mxu0 %v3073_v9  ;;  %1020 = vmatpush.msrb.mxu1 %v3692_v17  ;;  %v3093_v17 = vld [vmem:[#allocation8 + $0x30] sm:$0xff]  ;;  %v586_v9 = vld [vmem:[#allocation2 + $0x18] sm:$0x30] }
 0x1e1   :  { %1040 = vmatpush.msra.mxu2 %v3077_v40  ;;  %1060 = vmatpush.msra.mxu3 %v3694_v19  ;;  %3730 = vst [vmem:[#allocation52_spill] sm:$0xff] %v3093_v17  ;;  %v3097_v19 = vld [vmem:[#allocation8] sm:$0xff] }
 0x1e2   :  { %1001 = vmatpush.msrb.mxu0 %v3081_v13  ;;  %1021 = vmatpush.msrb.mxu1 %v3696_v23  ;;  %3731 = vst [vmem:[#allocation36_spill] sm:$0xff] %v3097_v19  ;;  %v3101_v23 = vld [vmem:[#allocation8 + $0x10] sm:$0xff] }
 0x1e3   :  { %1041 = vmatpush.msra.mxu2 %v3085_v21  ;;  %1061 = vmatpush.msra.mxu3 %v3698_v26  ;;  %3732 = vst [vmem:[#allocation44_spill] sm:$0xff] %v3101_v23  ;;  %v583_v26 = vld [vmem:[#allocation2] sm:$0x30]  ;;  %v585_v21 = vld [vmem:[#allocation2 + $0x10] sm:$0x30] }
 0x1e4   :  { %1002 = vmatpush.msrb.mxu0 %v3089_v0  ;;  %1022 = vmatpush.msrb.mxu1 %v3700_v37 }
 0x1e5   :  { %1042 = vmatpush.msra.mxu2 %v3093_v17  ;;  %1062 = vmatpush.msra.mxu3 %v3702_v27 }
 0x1e6   :  { %1003 = vmatpush.msrb.mxu0 %v3097_v19  ;;  %1023 = vmatpush.msrb.mxu1 %v3704_v58 }
 0x1e7   :  { %1043 = vmatpush.msra.mxu2 %v3101_v23  ;;  %1063 = vmatpush.msra.mxu3 %v3706_v63 }
 0x243   :  { %v607_v37 = vpop.f32.mrf.mxu0  ;;  %v627_v35 = vpop.f32.mrf.mxu1 }
 0x244   :  { %v674_v6 = vrot.slane %v607_v37, 4  ;;  %v675_v8 = vrot.slane %v627_v35, 4 }
 0x246   :  { %v682_v17 = vadd.f32 %v674_v6, %v583_v26  ;;  %v683_v27 = vadd.f32 %v675_v8, %v584_v4 }
 0x248   :  { %v686_v0 = vmul.f32 %v682_v17, %v2807_v51  ;;  %v687_v19 = vmul.f32 %v683_v27, %v2816_v36 }
 0x24a   :  { %v1879_v58 = vmul.f32 -1.442695, %v686_v0  ;;  %v1880_v13 = vmul.f32 -1.442695, %v687_v19  ;;  %v647_v40 = vpop.f32.mrf.mxu2  ;;  %v667_v23 = vpop.f32.mrf.mxu3 }
 0x24b   :  { %v676_v38 = vrot.slane %v647_v40, 4  ;;  %v677_v63 = vrot.slane %v667_v23, 4 }
 0x24c   :  { %1953 = vpow2.f32 %v1879_v58 }
 0x24d   :  { %1955 = vpow2.f32 %v1880_v13  ;;  %v684_v53 = vadd.f32 %v676_v38, %v585_v21  ;;  %v685_v5 = vadd.f32 %v677_v63, %v586_v9 }
 0x24f   :  { %v688_v37 = vmul.f32 %v684_v53, %v2810_v49  ;;  %v689_v26 = vmul.f32 %v685_v5, %v2813_v33 }
 0x251   :  { %v1881_v4 = vmul.f32 -1.442695, %v688_v37  ;;  %v1882_v17 = vmul.f32 -1.442695, %v689_v26 }
 0x252   :  { %v1954_v35 = vpop.eup %1953 }
 0x253   :  { %v1956_v6 = vpop.eup %1955  ;;  %v702_v8 = vadd.f32 1.0, %v1954_v35  ;;  %1957 = vpow2.f32 %v1881_v4 }
 0x254   :  { %v703_v0 = vadd.f32 1.0, %v1956_v6  ;;  %1959 = vpow2.f32 %v1882_v17 }
 0x255   :  { %1961 = vrcp.f32 %v702_v8  ;;  %vm711_vm2 = vweird.f32 %v702_v8  ;;  %v715_v35 = vand.u32 2147483647, %v702_v8  ;;  %v717_v6 = vand.u32 2147483648, %v702_v8 }
 0x256   :  { %1963 = vrcp.f32 %v703_v0  ;;  %v730_v63 = vand.u32 2147483647, %v703_v0  ;;  %v732_v37 = vand.u32 2147483648, %v703_v0  ;;  %vm726_vm4 = vweird.f32 %v703_v0 }
 0x257   :  { %vm716_vm7 = vcmp.eq.f32.partialorder %v715_v35, 8.507059e+37 }
 0x258   :  { %vm731_vm6 = vcmp.eq.f32.partialorder %v730_v63, 8.507059e+37 }
 0x259   :  { %v1958_v40 = vpop.eup %1957 }
 0x25a   :  { %v1960_v19 = vpop.eup %1959  ;;  %v704_v23 = vadd.f32 1.0, %v1958_v40 }
 0x25b   :  { %v1962_v13 = vpop.eup %1961  ;;  %v3109_v38 = vadd.f32 1.0, %v1960_v19 }
 0x25c   :  { %v1964_v9 = vpop.eup %1963  ;;  %v707_v53 = vmul.f32 %v1962_v13, %v702_v8  ;;  %1965 = vrcp.f32 %v704_v23  ;;  %vm712_vm0 = vweird.f32 %v1962_v13  ;;  %v718_v8 = vor.u32 1.1754944e-38, %v717_v6 }
 0x25d   :  { %v722_v5 = vmul.f32 %v1964_v9, %v703_v0  ;;  %1967 = vrcp.f32 %v3109_v38  ;;  %vm727_vm1 = vweird.f32 %v1964_v9  ;;  %vm3112_vm3 = vmor %vm711_vm2, %vm712_vm0  ;;  %v747_v44 = vand.u32 2147483648, %v704_v23 }
 0x25e   :  { %v708_v21 = vsub.f32 1.0, %v707_v53  ;;  %vm728_vm5 = vmor %vm726_vm4, %vm727_vm1  ;;  %vm741_vm9 = vweird.f32 %v704_v23  ;;  %v762_v40 = vand.u32 2147483648, %v3109_v38  ;;  %vm756_vm13 = vweird.f32 %v3109_v38 }
 0x25f   :  { %v723_v27 = vsub.f32 1.0, %v722_v5  ;;  %v733_v5 = vor.u32 1.1754944e-38, %v732_v37  ;;  %vm1764_vm0 = vcmask 1041408   ;;  %vm1766_vm1 = vcmask 1043456  }
 0x260   :  { %v709_v58 = vmul.f32 %v1962_v13, %v708_v21 }
 0x261   :  { %v724_v26 = vmul.f32 %v1964_v9, %v723_v27 }
 0x262   :  { %v1966_v4 = vpop.eup %1965  ;;  %v710_v17 = vadd.f32 %v1962_v13, %v709_v58 }
 0x263   :  { %v725_v19 = vadd.f32 %v1964_v9, %v724_v26  ;;  %v737_v53 = vmul.f32 %v1966_v4, %v704_v23  ;;  %v1968_v22 = vpop.eup %1967  ;;  %vm742_vm8 = vweird.f32 %v1966_v4  ;;  %v745_v26 = vand.u32 2147483647, %v704_v23 }
 0x264   :  { %v714_v21 = vsel %vm3112_vm3, %v1962_v13, %v710_v17  ;;  %v752_v58 = vmul.f32 %v1968_v22, %v3109_v38  ;;  %vm743_vm10 = vmor %vm741_vm9, %vm742_vm8  ;;  %v748_v13 = vor.u32 1.1754944e-38, %v747_v44  ;;  %vm757_vm12 = vweird.f32 %v1968_v22 }
 0x265   :  { %v729_v27 = vsel %vm728_vm5, %v1964_v9, %v725_v19  ;;  %v738_v42 = vsub.f32 1.0, %v737_v53  ;;  %v719_v56 = vsel %vm716_vm7, %v718_v8, %v714_v21  ;;  %vm746_vm11 = vcmp.eq.f32.partialorder %v745_v26, 8.507059e+37  ;;  %vm758_vm14 = vmor %vm756_vm13, %vm757_vm12 }
 0x266   :  { %v734_v1 = vsel %vm731_vm6, %v733_v5, %v729_v27  ;;  %v753_v0 = vsub.f32 1.0, %v752_v58  ;;  %v766_v9 = vmul.f32 %v719_v56, %v2807_v51 }
 0x267   :  { %v739_v29 = vmul.f32 %v1966_v4, %v738_v42  ;;  %v767_v31 = vmul.f32 %v734_v1, %v2816_v36  ;;  %v775_v1 = vrot.slane %v2945_v3, 6 }
 0x268   :  { %v754_v37 = vmul.f32 %v1968_v22, %v753_v0  ;;  %v770_v56 = vadd.f32 %v766_v9, %v2829_v57  ;;  %v3141_v0 = vld [vmem:[#allocation8 + $0x1e8] sm:$0xff] }
 0x269   :  { %v740_v63 = vadd.f32 %v1966_v4, %v739_v29  ;;  %v771_v19 = vadd.f32 %v767_v31, %v2837_v59  ;;  %v760_v29 = vand.u32 2147483647, %v3109_v38  ;;  %v3177_v9 = vld [vmem:[#allocation8 + $0x128] sm:$0xff] }
 0x26a   :  { %v755_v6 = vadd.f32 %v1968_v22, %v754_v37  ;;  %v3165_v37 = vld [vmem:[#allocation8 + $0x168] sm:$0xff] }
 0x26b   :  { %v744_v17 = vsel %vm743_vm10, %v1966_v4, %v740_v63  ;;  %v763_v4 = vor.u32 1.1754944e-38, %v762_v40  ;;  %v777_v53 = vmul.f32 %v775_v1, %v771_v19  ;;  %vm761_vm15 = vcmp.eq.f32.partialorder %v760_v29, 8.507059e+37  ;;  %v3159_v63 = vld [vmem:[#allocation8 + $0x188] sm:$0xff]  ;;  %v3740_v19 = vld [vmem:[#allocation27_spill] sm:$0xff] }
 0x26c   :  { %v749_v35 = vsel %vm746_vm11, %v748_v13, %v744_v17  ;;  %v759_v23 = vsel %vm758_vm14, %v1968_v22, %v755_v6  ;;  %v1765_v22 = vsel %vm1764_vm0, %v2851_v47, %v2950_v7  ;;  %v3147_v47 = vld [vmem:[#allocation8 + $0x1c8] sm:$0xff]  ;;  %v3737_v6 = vld [vmem:[#allocation26_spill] sm:$0xff] }
 0x26d   :  { %v768_v42 = vmul.f32 %v749_v35, %v2810_v49  ;;  %v764_v21 = vsel %vm761_vm15, %v763_v4, %v759_v23  ;;  %v3153_v7 = vld [vmem:[#allocation8 + $0x1a8] sm:$0xff]  ;;  %v3746_v4 = vld [vmem:[#allocation50_spill] sm:$0xff] }
 0x26e   :  { %v769_v31 = vmul.f32 %v764_v21, %v2813_v33  ;;  %v3171_v13 = vld [vmem:[#allocation8 + $0x148] sm:$0xff] }
 0x26f   :  { %v772_v44 = vadd.f32 %v768_v42, %v2831_v39  ;;  %v3183_v17 = vld [vmem:[#allocation8 + $0x108] sm:$0xff]  ;;  %v3738_v42 = vld [vmem:[#allocation34_spill] sm:$0xff] }
 0x270   :  { %v773_v38 = vadd.f32 %v769_v31, %v2848_v60  ;;  %3735 = vst [vmem:[#allocation38_spill] sm:$0xff] %v3183_v17  ;;  %v3189_v35 = vld [vmem:[#allocation8 + $0xe8] sm:$0xff] }
 0x271   :  { %v778_v5 = vmul.f32 %v772_v44, %v770_v56  ;;  %3736 = vst [vmem:[#allocation53_spill] sm:$0xff] %v3189_v35  ;;  %v3195_v40 = vld [vmem:[#allocation8 + $0xc8] sm:$0xff] }
 0x272   :  { %3739 = vst [vmem:[#allocation39_spill] sm:$0xff] %v3195_v40  ;;  %v3741_v29 = vld [vmem:[#allocation49_spill] sm:$0xff]  ;;  %v3742_v1 = vld [vmem:[#allocation28_spill] sm:$0xff] }
 0x273   :  { %v3129_v27 = vadd.f32 %v778_v5, %v777_v53  ;;  %v3201_v56 = vld [vmem:[#allocation8 + $0xa8] sm:$0xff]  ;;  %v3748_v5 = vld [vmem:[#allocation30_spill] sm:$0xff] }
 0x274   :  { %3743 = vst [vmem:[#allocation45_spill] sm:$0xff] %v3201_v56  ;;  %v3744_v44 = vld [vmem:[#allocation37_spill] sm:$0xff]  ;;  %v3749_v21 = vld [vmem:[#allocation40_spill] sm:$0xff] }
 0x275   :  { %1969 = vtanh.f32 %v3129_v27  ;;  %v3745_v23 = vld [vmem:[#allocation29_spill] sm:$0xff]  ;;  %v3750_v31 = vld [vmem:[#allocation32_spill] sm:$0xff] }
 0x276   :  { %v3207_v53 = vld [vmem:[#allocation8 + $0x88] sm:$0xff] }
 0x277   :  { %3747 = vst [vmem:[#allocation41_spill] sm:$0xff] %v3207_v53 }
 0x27b   :  { %v1970_v3 = vpop.eup %1969 }
 0x27c   :  { %v781_v58 = vmul.f32 %v1970_v3, %v773_v38  ;;  %v3213_v38 = vld [vmem:[#allocation8 + $0x68] sm:$0xff]  ;;  %v3752_v3 = vld [vmem:[#allocation51_spill] sm:$0xff] }
 0x27d   :  { %3751 = vst [vmem:[#allocation54_spill] sm:$0xff] %v3213_v38 }
 0x27e   :  { %v787_v8 = vrot.slane %v781_v58, 4  ;;  %v3138_v26 = vsel %vm1766_vm1, %v1765_v22, %v781_v58  ;;  %v3217_v58 = vld [vmem:[#allocation8 + $0x78] sm:$0xff]  ;;  %v3754_v22 = vld [vmem:[#allocation33_spill] sm:$0xff] }
 0x27f   :  { %3753 = vst [vmem:[#allocation42_spill] sm:$0xff] %v3217_v58 }
 0x280   :  { %805 = vmatmul.f32.vlgmr.msra.gmra.mxu0 %v787_v8  ;;  %825 = vmatmul.f32.vlgmr.msra.gmra.mxu1 %v787_v8 }
 0x281   :  { %845 = vmatmul.f32.vlgmr.msrb.gmra.mxu2 %v787_v8  ;;  %865 = vmatmul.f32.vlgmr.msrb.gmra.mxu3 %v787_v8  ;;  %v3221_v8 = vld [vmem:[#allocation8 + $0x48] sm:$0xff] }
 0x282   :  { %1172 = vmatpush.msra.mxu0 %v2953_v28  ;;  %1192 = vmatpush.msra.mxu1 %v3141_v0  ;;  %3755 = vst [vmem:[#allocation46_spill] sm:$0xff] %v3221_v8 }
 0x283   :  { %1212 = vmatpush.msrb.mxu2 %v2957_v2  ;;  %1232 = vmatpush.msrb.mxu3 %v2960_v10 }
 0x284   :  { %1173 = vmatpush.msra.mxu0 %v2963_v11  ;;  %1193 = vmatpush.msra.mxu1 %v3147_v47 }
 0x285   :  { %1213 = vmatpush.msrb.mxu2 %v2967_v12  ;;  %1233 = vmatpush.msrb.mxu3 %v2970_v14 }
 0x286   :  { %1174 = vmatpush.msra.mxu0 %v2973_v43  ;;  %1194 = vmatpush.msra.mxu1 %v3153_v7 }
 0x287   :  { %1214 = vmatpush.msrb.mxu2 %v2977_v15  ;;  %1234 = vmatpush.msrb.mxu3 %v2980_v16 }
 0x288   :  { %1175 = vmatpush.msra.mxu0 %v2983_v46  ;;  %1195 = vmatpush.msra.mxu1 %v3159_v63 }
 0x289   :  { %1215 = vmatpush.msrb.mxu2 %v2987_v18  ;;  %1235 = vmatpush.msrb.mxu3 %v2990_v20 }
 0x28a   :  { %1176 = vmatpush.msra.mxu0 %v2993_v48  ;;  %1196 = vmatpush.msra.mxu1 %v3165_v37 }
 0x28b   :  { %1216 = vmatpush.msrb.mxu2 %v2997_v25  ;;  %1236 = vmatpush.msrb.mxu3 %v3000_v30 }
 0x28c   :  { %1177 = vmatpush.msra.mxu0 %v3003_v50  ;;  %1197 = vmatpush.msra.mxu1 %v3171_v13 }
 0x28d   :  { %1217 = vmatpush.msrb.mxu2 %v3007_v62  ;;  %1237 = vmatpush.msrb.mxu3 %v3010_v34 }
 0x28e   :  { %1178 = vmatpush.msra.mxu0 %v3013_v52  ;;  %1198 = vmatpush.msra.mxu1 %v3177_v9 }
 0x28f   :  { %1218 = vmatpush.msrb.mxu2 %v3017_v24  ;;  %1238 = vmatpush.msrb.mxu3 %v3020_v32 }
 0x290   :  { %1179 = vmatpush.msra.mxu0 %v3023_v54  ;;  %1199 = vmatpush.msra.mxu1 %v3183_v17 }
 0x291   :  { %1219 = vmatpush.msrb.mxu2 %v3027_v45  ;;  %1239 = vmatpush.msrb.mxu3 %v3030_v61 }
 0x292   :  { %1180 = vmatpush.msra.mxu0 %v3033_v55  ;;  %1200 = vmatpush.msra.mxu1 %v3189_v35 }
 0x293   :  { %1220 = vmatpush.msrb.mxu2 %v3037_v41  ;;  %1240 = vmatpush.msrb.mxu3 %v3737_v6 }
 0x294   :  { %1181 = vmatpush.msra.mxu0 %v3738_v42  ;;  %1201 = vmatpush.msra.mxu1 %v3195_v40 }
 0x295   :  { %1221 = vmatpush.msrb.mxu2 %v3740_v19  ;;  %1241 = vmatpush.msrb.mxu3 %v3741_v29  ;;  %v785_v19 = vld [vmem:[#allocation2 + $0x18] sm:$0xc0] }
 0x296   :  { %1182 = vmatpush.msra.mxu0 %v3742_v1  ;;  %1202 = vmatpush.msra.mxu1 %v3201_v56  ;;  %v784_v1 = vld [vmem:[#allocation2 + $0x10] sm:$0xc0] }
 0x297   :  { %1222 = vmatpush.msrb.mxu2 %v3744_v44  ;;  %1242 = vmatpush.msrb.mxu3 %v3745_v23 }
 0x298   :  { %1183 = vmatpush.msra.mxu0 %v3746_v4  ;;  %1203 = vmatpush.msra.mxu1 %v3207_v53  ;;  %v783_v53 = vld [vmem:[#allocation2 + $0x8] sm:$0xc0] }
 0x299   :  { %1223 = vmatpush.msrb.mxu2 %v3748_v5  ;;  %1243 = vmatpush.msrb.mxu3 %v3749_v21  ;;  %v3756_v5 = vld [vmem:[#allocation43_spill] sm:$0xff] }
 0x29a   :  { %1184 = vmatpush.msra.mxu0 %v3750_v31  ;;  %1204 = vmatpush.msra.mxu1 %v3213_v38  ;;  %v3225_v21 = vld [vmem:[#allocation8 + $0x58] sm:$0xff]  ;;  %v3229_v38 = vld [vmem:[#allocation8 + $0x28] sm:$0xff] }
 0x29b   :  { %1224 = vmatpush.msrb.mxu2 %v3752_v3  ;;  %1244 = vmatpush.msrb.mxu3 %v3217_v58  ;;  %3757 = vst [vmem:[#allocation55_spill] sm:$0xff] %v3225_v21  ;;  %v3758_v31 = vld [vmem:[#allocation35_spill] sm:$0xff]  ;;  %v3760_v3 = vld [vmem:[#allocation52_spill] sm:$0xff] }
 0x29c   :  { %1185 = vmatpush.msra.mxu0 %v3754_v22  ;;  %1205 = vmatpush.msra.mxu1 %v3221_v8  ;;  %3759 = vst [vmem:[#allocation56_spill] sm:$0xff] %v3229_v38  ;;  %v3233_v58 = vld [vmem:[#allocation8 + $0x38] sm:$0xff]  ;;  %v3762_v22 = vld [vmem:[#allocation36_spill] sm:$0xff] }
 0x29d   :  { %1225 = vmatpush.msrb.mxu2 %v3756_v5  ;;  %1245 = vmatpush.msrb.mxu3 %v3225_v21  ;;  %3761 = vst [vmem:[#allocation57_spill] sm:$0xff] %v3233_v58  ;;  %v3237_v8 = vld [vmem:[#allocation8 + $0x8] sm:$0xff]  ;;  %v3241_v21 = vld [vmem:[#allocation8 + $0x18] sm:$0xff] }
 0x29e   :  { %1186 = vmatpush.msra.mxu0 %v3758_v31  ;;  %1206 = vmatpush.msra.mxu1 %v3229_v38  ;;  %3763 = vst [vmem:[#allocation58_spill] sm:$0xff] %v3237_v8  ;;  %v3764_v5 = vld [vmem:[#allocation44_spill] sm:$0xff]  ;;  %v782_v31 = vld [vmem:[#allocation2] sm:$0xc0] }
 0x29f   :  { %1226 = vmatpush.msrb.mxu2 %v3760_v3  ;;  %1246 = vmatpush.msrb.mxu3 %v3233_v58  ;;  %3765 = vst [vmem:[#allocation59_spill] sm:$0xff] %v3241_v21 }
 0x2a0   :  { %1187 = vmatpush.msra.mxu0 %v3762_v22  ;;  %1207 = vmatpush.msra.mxu1 %v3237_v8 }
 0x2a1   :  { %1227 = vmatpush.msrb.mxu2 %v3764_v5  ;;  %1247 = vmatpush.msrb.mxu3 %v3241_v21 }
 0x2fd   :  { %v806_v38 = vpop.f32.mrf.mxu0  ;;  %v826_v3 = vpop.f32.mrf.mxu1 }
 0x2fe   :  { %v873_v4 = vrot.slane %v806_v38, 2  ;;  %v874_v23 = vrot.slane %v826_v3, 2 }
 0x300   :  { %v881_v44 = vadd.f32 %v873_v4, %v782_v31  ;;  %v882_v58 = vadd.f32 %v874_v23, %v783_v53 }
 0x302   :  { %v885_v22 = vmul.f32 %v881_v44, %v2807_v51  ;;  %v886_v56 = vmul.f32 %v882_v58, %v2816_v36 }
 0x304   :  { %v1883_v8 = vmul.f32 -1.442695, %v885_v22  ;;  %v1884_v29 = vmul.f32 -1.442695, %v886_v56  ;;  %v846_v5 = vpop.f32.mrf.mxu2  ;;  %v866_v40 = vpop.f32.mrf.mxu3 }
 0x305   :  { %v875_v42 = vrot.slane %v846_v5, 2  ;;  %v876_v21 = vrot.slane %v866_v40, 2 }
 0x306   :  { %1971 = vpow2.f32 %v1883_v8 }
 0x307   :  { %1973 = vpow2.f32 %v1884_v29  ;;  %v883_v6 = vadd.f32 %v875_v42, %v784_v1  ;;  %v884_v41 = vadd.f32 %v876_v21, %v785_v19 }
 0x309   :  { %v887_v38 = vmul.f32 %v883_v6, %v2810_v49  ;;  %v888_v23 = vmul.f32 %v884_v41, %v2813_v33 }
 0x30b   :  { %v1885_v4 = vmul.f32 -1.442695, %v887_v38  ;;  %v1886_v44 = vmul.f32 -1.442695, %v888_v23 }
 0x30c   :  { %v1972_v53 = vpop.eup %1971 }
 0x30d   :  { %v1974_v31 = vpop.eup %1973  ;;  %v901_v3 = vadd.f32 1.0, %v1972_v53  ;;  %1975 = vpow2.f32 %v1885_v4 }
 0x30e   :  { %v902_v56 = vadd.f32 1.0, %v1974_v31  ;;  %1977 = vpow2.f32 %v1886_v44 }
 0x30f   :  { %1979 = vrcp.f32 %v901_v3  ;;  %vm910_vm4 = vweird.f32 %v901_v3  ;;  %v914_v53 = vand.u32 2147483647, %v901_v3  ;;  %v916_v31 = vand.u32 2147483648, %v901_v3 }
 0x310   :  { %1981 = vrcp.f32 %v902_v56  ;;  %v929_v8 = vand.u32 2147483647, %v902_v56  ;;  %v931_v38 = vand.u32 2147483648, %v902_v56  ;;  %vm925_vm6 = vweird.f32 %v902_v56 }
 0x311   :  { %vm915_vm9 = vcmp.eq.f32.partialorder %v914_v53, 8.507059e+37 }
 0x312   :  { %vm930_vm8 = vcmp.eq.f32.partialorder %v929_v8, 8.507059e+37 }
 0x313   :  { %v1976_v5 = vpop.eup %1975 }
 0x314   :  { %v1978_v40 = vpop.eup %1977  ;;  %v903_v58 = vadd.f32 1.0, %v1976_v5 }
 0x315   :  { %v1980_v29 = vpop.eup %1979  ;;  %v3248_v42 = vadd.f32 1.0, %v1978_v40 }
 0x316   :  { %v1982_v19 = vpop.eup %1981  ;;  %v906_v6 = vmul.f32 %v1980_v29, %v901_v3  ;;  %1983 = vrcp.f32 %v903_v58  ;;  %vm911_vm2 = vweird.f32 %v1980_v29  ;;  %v917_v3 = vor.u32 1.1754944e-38, %v916_v31 }
 0x317   :  { %v921_v41 = vmul.f32 %v1982_v19, %v902_v56  ;;  %1985 = vrcp.f32 %v3248_v42  ;;  %vm926_vm3 = vweird.f32 %v1982_v19  ;;  %vm3251_vm5 = vmor %vm910_vm4, %vm911_vm2  ;;  %v946_v45 = vand.u32 2147483648, %v903_v58 }
 0x318   :  { %v907_v1 = vsub.f32 1.0, %v906_v6  ;;  %vm927_vm7 = vmor %vm925_vm6, %vm926_vm3  ;;  %vm940_vm11 = vweird.f32 %v903_v58  ;;  %v961_v5 = vand.u32 2147483648, %v3248_v42  ;;  %vm955_vm15 = vweird.f32 %v3248_v42 }
 0x319   :  { %v922_v21 = vsub.f32 1.0, %v921_v41  ;;  %v932_v41 = vor.u32 1.1754944e-38, %v931_v38  ;;  %vm1768_vm4 = vcmask 1045504  }
 0x31a   :  { %v908_v22 = vmul.f32 %v1980_v29, %v907_v1 }
 0x31b   :  { %v923_v23 = vmul.f32 %v1982_v19, %v922_v21 }
 0x31c   :  { %v1984_v4 = vpop.eup %1983  ;;  %v909_v44 = vadd.f32 %v1980_v29, %v908_v22 }
 0x31d   :  { %v924_v40 = vadd.f32 %v1982_v19, %v923_v23  ;;  %v936_v6 = vmul.f32 %v1984_v4, %v903_v58  ;;  %v1986_v35 = vpop.eup %1985  ;;  %vm941_vm10 = vweird.f32 %v1984_v4  ;;  %v944_v23 = vand.u32 2147483647, %v903_v58 }
 0x31e   :  { %v913_v1 = vsel %vm3251_vm5, %v1980_v29, %v909_v44  ;;  %v951_v22 = vmul.f32 %v1986_v35, %v3248_v42  ;;  %vm942_vm12 = vmor %vm940_vm11, %vm941_vm10  ;;  %v947_v29 = vor.u32 1.1754944e-38, %v946_v45  ;;  %vm956_vm14 = vweird.f32 %v1986_v35 }
 0x31f   :  { %v928_v21 = vsel %vm927_vm7, %v1982_v19, %v924_v40  ;;  %v937_v55 = vsub.f32 1.0, %v936_v6  ;;  %v918_v54 = vsel %vm915_vm9, %v917_v3, %v913_v1  ;;  %vm945_vm13 = vcmp.eq.f32.partialorder %v944_v23, 8.507059e+37  ;;  %vm957_vm2 = vmor %vm955_vm15, %vm956_vm14  ;;  %v3789_v23 = vld [vmem:[#allocation32_spill] sm:$0xff] }
 0x320   :  { %v933_v61 = vsel %vm930_vm8, %v932_v41, %v928_v21  ;;  %v952_v56 = vsub.f32 1.0, %v951_v22  ;;  %v965_v19 = vmul.f32 %v918_v54, %v2807_v51 }
 0x321   :  { %v938_v17 = vmul.f32 %v1984_v4, %v937_v55  ;;  %v966_v32 = vmul.f32 %v933_v61, %v2816_v36  ;;  %v959_v61 = vand.u32 2147483647, %v3248_v42 }
 0x322   :  { %v953_v38 = vmul.f32 %v1986_v35, %v952_v56  ;;  %v969_v54 = vadd.f32 %v965_v19, %v2829_v57  ;;  %v3790_v56 = vld [vmem:[#allocation54_spill] sm:$0xff] }
 0x323   :  { %v939_v8 = vadd.f32 %v1984_v4, %v938_v17  ;;  %v970_v40 = vadd.f32 %v966_v32, %v2837_v59  ;;  %v974_v17 = vrot.slane %v3129_v27, 6  ;;  %vm960_vm3 = vcmp.eq.f32.partialorder %v959_v61, 8.507059e+37  ;;  %v3794_v19 = vld [vmem:[#allocation46_spill] sm:$0xff]  ;;  %v3801_v61 = vld [vmem:[#allocation36_spill] sm:$0xff] }
 0x324   :  { %v954_v31 = vadd.f32 %v1986_v35, %v953_v38  ;;  %v3792_v38 = vld [vmem:[#allocation42_spill] sm:$0xff] }
 0x325   :  { %v943_v44 = vsel %vm942_vm12, %v1984_v4, %v939_v8  ;;  %v962_v4 = vor.u32 1.1754944e-38, %v961_v5  ;;  %v976_v6 = vmul.f32 %v974_v17, %v970_v40  ;;  %v3791_v8 = vld [vmem:[#allocation51_spill] sm:$0xff]  ;;  %v3799_v5 = vld [vmem:[#allocation52_spill] sm:$0xff]  ;;  %v3800_v40 = vld [vmem:[#allocation57_spill] sm:$0xff] }
 0x326   :  { %v948_v53 = vsel %vm945_vm13, %v947_v29, %v943_v44  ;;  %v958_v58 = vsel %vm957_vm2, %v1986_v35, %v954_v31  ;;  %v3793_v29 = vld [vmem:[#allocation33_spill] sm:$0xff]  ;;  %v3795_v44 = vld [vmem:[#allocation43_spill] sm:$0xff]  ;;  %v3802_v17 = vld [vmem:[#allocation58_spill] sm:$0xff] }
 0x327   :  { %v967_v55 = vmul.f32 %v948_v53, %v2810_v49  ;;  %v963_v1 = vsel %vm960_vm3, %v962_v4, %v958_v58  ;;  %v3796_v53 = vld [vmem:[#allocation55_spill] sm:$0xff]  ;;  %v982_v4 = vld [vmem:[#allocation2 + $0x28] sm:$0x3] }
 0x328   :  { %v968_v32 = vmul.f32 %v963_v1, %v2813_v33  ;;  %v3797_v31 = vld [vmem:[#allocation35_spill] sm:$0xff] }
 0x329   :  { %v971_v45 = vadd.f32 %v967_v55, %v2831_v39  ;;  %v3798_v55 = vld [vmem:[#allocation56_spill] sm:$0xff]  ;;  %v981_v58 = vld [vmem:[#allocation2 + $0x20] sm:$0x3] }
 0x32a   :  { %v972_v42 = vadd.f32 %v968_v32, %v2848_v60 }
 0x32b   :  { %v977_v41 = vmul.f32 %v971_v45, %v969_v54  ;;  %v3803_v54 = vld [vmem:[#allocation44_spill] sm:$0xff]  ;;  %v3804_v45 = vld [vmem:[#allocation59_spill] sm:$0xff] }
 0x32d   :  { %v3268_v21 = vadd.f32 %v977_v41, %v976_v6 }
 0x32f   :  { %1987 = vtanh.f32 %v3268_v21 }
 0x335   :  { %v1988_v27 = vpop.eup %1987 }
 0x336   :  { %v980_v22 = vmul.f32 %v1988_v27, %v972_v42 }
 0x338   :  { %v986_v3 = vrot.slane %v980_v22, 6  ;;  %v3275_v35 = vsel %vm1768_vm4, %v3138_v26, %v980_v22  ;;  %v3788_v26 = vld [vmem:[#allocation40_spill] sm:$0xff]  ;;  %v983_v22 = vld [vmem:[#allocation2 + $0x30] sm:$0x3] }
 0x33a   :  { %1004 = vmatmul.f32.vlgmr.msrb.gmra.mxu0 %v986_v3  ;;  %1024 = vmatmul.f32.vlgmr.msrb.gmra.mxu1 %v986_v3 }
 0x33b   :  { %1044 = vmatmul.f32.vlgmr.msra.gmra.mxu2 %v986_v3  ;;  %1064 = vmatmul.f32.vlgmr.msra.gmra.mxu3 %v986_v3 }
 0x33c   :  { %1371 = vmatpush.msrb.mxu0 %v2953_v28  ;;  %1391 = vmatpush.msrb.mxu1 %v3141_v0  ;;  %v3768_v28 = vld [vmem:[#allocation23_spill] sm:$0xff] }
 0x33d   :  { %1411 = vmatpush.msra.mxu2 %v2957_v2  ;;  %1431 = vmatpush.msra.mxu3 %v2960_v10  ;;  %v3769_v2 = vld [vmem:[#allocation47_spill] sm:$0xff]  ;;  %v3770_v10 = vld [vmem:[#allocation38_spill] sm:$0xff] }
 0x33e   :  { %1372 = vmatpush.msrb.mxu0 %v2963_v11  ;;  %1392 = vmatpush.msrb.mxu1 %v3147_v47  ;;  %v3771_v11 = vld [vmem:[#allocation24_spill] sm:$0xff] }
 0x33f   :  { %1412 = vmatpush.msra.mxu2 %v2967_v12  ;;  %1432 = vmatpush.msra.mxu3 %v2970_v14  ;;  %v3772_v12 = vld [vmem:[#allocation31_spill] sm:$0xff]  ;;  %v3773_v14 = vld [vmem:[#allocation25_spill] sm:$0xff] }
 0x340   :  { %1373 = vmatpush.msrb.mxu0 %v2973_v43  ;;  %1393 = vmatpush.msrb.mxu1 %v3153_v7  ;;  %v3774_v43 = vld [vmem:[#allocation53_spill] sm:$0xff] }
 0x341   :  { %1413 = vmatpush.msra.mxu2 %v2977_v15  ;;  %1433 = vmatpush.msra.mxu3 %v2980_v16  ;;  %v3775_v15 = vld [vmem:[#allocation48_spill] sm:$0xff]  ;;  %v3776_v16 = vld [vmem:[#allocation26_spill] sm:$0xff] }
 0x342   :  { %1374 = vmatpush.msrb.mxu0 %v2983_v46  ;;  %1394 = vmatpush.msrb.mxu1 %v3159_v63  ;;  %v3777_v46 = vld [vmem:[#allocation34_spill] sm:$0xff] }
 0x343   :  { %1414 = vmatpush.msra.mxu2 %v2987_v18  ;;  %1434 = vmatpush.msra.mxu3 %v2990_v20  ;;  %v3778_v18 = vld [vmem:[#allocation39_spill] sm:$0xff] }
 0x344   :  { %1375 = vmatpush.msrb.mxu0 %v2993_v48  ;;  %1395 = vmatpush.msrb.mxu1 %v3165_v37  ;;  %v3779_v20 = vld [vmem:[#allocation27_spill] sm:$0xff]  ;;  %v3780_v48 = vld [vmem:[#allocation49_spill] sm:$0xff] }
 0x345   :  { %1415 = vmatpush.msra.mxu2 %v2997_v25  ;;  %1435 = vmatpush.msra.mxu3 %v3000_v30  ;;  %v3781_v25 = vld [vmem:[#allocation28_spill] sm:$0xff]  ;;  %v3782_v30 = vld [vmem:[#allocation45_spill] sm:$0xff] }
 0x346   :  { %1376 = vmatpush.msrb.mxu0 %v3003_v50  ;;  %1396 = vmatpush.msrb.mxu1 %v3171_v13  ;;  %v3783_v50 = vld [vmem:[#allocation37_spill] sm:$0xff] }
 0x347   :  { %1416 = vmatpush.msra.mxu2 %v3007_v62  ;;  %1436 = vmatpush.msra.mxu3 %v3010_v34  ;;  %v3784_v62 = vld [vmem:[#allocation29_spill] sm:$0xff]  ;;  %v3785_v34 = vld [vmem:[#allocation50_spill] sm:$0xff] }
 0x348   :  { %1377 = vmatpush.msrb.mxu0 %v3013_v52  ;;  %1397 = vmatpush.msrb.mxu1 %v3177_v9  ;;  %v3786_v52 = vld [vmem:[#allocation41_spill] sm:$0xff] }
 0x349   :  { %1417 = vmatpush.msra.mxu2 %v3017_v24  ;;  %1437 = vmatpush.msra.mxu3 %v3768_v28  ;;  %v3787_v24 = vld [vmem:[#allocation30_spill] sm:$0xff] }
 0x34a   :  { %1378 = vmatpush.msrb.mxu0 %v3769_v2  ;;  %1398 = vmatpush.msrb.mxu1 %v3770_v10  ;;  %v984_v2 = vld [vmem:[#allocation2 + $0x38] sm:$0x3] }
 0x34b   :  { %1418 = vmatpush.msra.mxu2 %v3771_v11  ;;  %1438 = vmatpush.msra.mxu3 %v3772_v12 }
 0x34c   :  { %1379 = vmatpush.msrb.mxu0 %v3773_v14  ;;  %1399 = vmatpush.msrb.mxu1 %v3774_v43 }
 0x34d   :  { %1419 = vmatpush.msra.mxu2 %v3775_v15  ;;  %1439 = vmatpush.msra.mxu3 %v3776_v16 }
 0x34e   :  { %1380 = vmatpush.msrb.mxu0 %v3777_v46  ;;  %1400 = vmatpush.msrb.mxu1 %v3778_v18 }
 0x34f   :  { %1420 = vmatpush.msra.mxu2 %v3779_v20  ;;  %1440 = vmatpush.msra.mxu3 %v3780_v48 }
 0x350   :  { %1381 = vmatpush.msrb.mxu0 %v3781_v25  ;;  %1401 = vmatpush.msrb.mxu1 %v3782_v30 }
 0x351   :  { %1421 = vmatpush.msra.mxu2 %v3783_v50  ;;  %1441 = vmatpush.msra.mxu3 %v3784_v62 }
 0x352   :  { %1382 = vmatpush.msrb.mxu0 %v3785_v34  ;;  %1402 = vmatpush.msrb.mxu1 %v3786_v52 }
 0x353   :  { %1422 = vmatpush.msra.mxu2 %v3787_v24  ;;  %1442 = vmatpush.msra.mxu3 %v3788_v26 }
 0x354   :  { %1383 = vmatpush.msrb.mxu0 %v3789_v23  ;;  %1403 = vmatpush.msrb.mxu1 %v3790_v56 }
 0x355   :  { %1423 = vmatpush.msra.mxu2 %v3791_v8  ;;  %1443 = vmatpush.msra.mxu3 %v3792_v38 }
 0x356   :  { %1384 = vmatpush.msrb.mxu0 %v3793_v29  ;;  %1404 = vmatpush.msrb.mxu1 %v3794_v19 }
 0x357   :  { %1424 = vmatpush.msra.mxu2 %v3795_v44  ;;  %1444 = vmatpush.msra.mxu3 %v3796_v53 }
 0x358   :  { %1385 = vmatpush.msrb.mxu0 %v3797_v31  ;;  %1405 = vmatpush.msrb.mxu1 %v3798_v55 }
 0x359   :  { %1425 = vmatpush.msra.mxu2 %v3799_v5  ;;  %1445 = vmatpush.msra.mxu3 %v3800_v40 }
 0x35a   :  { %1386 = vmatpush.msrb.mxu0 %v3801_v61  ;;  %1406 = vmatpush.msrb.mxu1 %v3802_v17 }
 0x35b   :  { %1426 = vmatpush.msra.mxu2 %v3803_v54  ;;  %1446 = vmatpush.msra.mxu3 %v3804_v45 }
 0x3b7   :  { %v1005_v6 = vpop.f32.mrf.mxu0  ;;  %v1025_v41 = vpop.f32.mrf.mxu1 }
 0x3b8   :  { %v1068_v1 = vadd.f32 %v1005_v6, %v981_v58  ;;  %v1069_v32 = vadd.f32 %v1025_v41, %v982_v4 }
 0x3ba   :  { %v1072_v42 = vmul.f32 %v1068_v1, %v2807_v51  ;;  %v1073_v27 = vmul.f32 %v1069_v32, %v2816_v36 }
 0x3bc   :  { %v1887_v3 = vmul.f32 -1.442695, %v1072_v42  ;;  %v1888_v28 = vmul.f32 -1.442695, %v1073_v27 }
 0x3be   :  { %1989 = vpow2.f32 %v1887_v3  ;;  %v1045_v11 = vpop.f32.mrf.mxu2  ;;  %v1065_v12 = vpop.f32.mrf.mxu3 }
 0x3bf   :  { %1991 = vpow2.f32 %v1888_v28  ;;  %v1070_v14 = vadd.f32 %v1045_v11, %v983_v22  ;;  %v1071_v15 = vadd.f32 %v1065_v12, %v984_v2 }
 0x3c1   :  { %v1074_v16 = vmul.f32 %v1070_v14, %v2810_v49  ;;  %v1075_v46 = vmul.f32 %v1071_v15, %v2813_v33 }
 0x3c3   :  { %v1889_v20 = vmul.f32 -1.442695, %v1074_v16  ;;  %v1890_v48 = vmul.f32 -1.442695, %v1075_v46 }
 0x3c4   :  { %v1990_v25 = vpop.eup %1989 }
 0x3c5   :  { %v1992_v50 = vpop.eup %1991  ;;  %v1088_v62 = vadd.f32 1.0, %v1990_v25  ;;  %1993 = vpow2.f32 %v1889_v20 }
 0x3c6   :  { %v1089_v34 = vadd.f32 1.0, %v1992_v50  ;;  %1995 = vpow2.f32 %v1890_v48 }
 0x3c7   :  { %1997 = vrcp.f32 %v1088_v62  ;;  %vm1097_vm7 = vweird.f32 %v1088_v62  ;;  %v1101_v42 = vand.u32 2147483647, %v1088_v62  ;;  %v1103_v27 = vand.u32 2147483648, %v1088_v62 }
 0x3c8   :  { %1999 = vrcp.f32 %v1089_v34  ;;  %v1116_v4 = vand.u32 2147483647, %v1089_v34  ;;  %v1118_v6 = vand.u32 2147483648, %v1089_v34  ;;  %vm1112_vm9 = vweird.f32 %v1089_v34 }
 0x3c9   :  { %vm1102_vm12 = vcmp.eq.f32.partialorder %v1101_v42, 8.507059e+37  ;;  %v1104_v46 = vor.u32 1.1754944e-38, %v1103_v27 }
 0x3ca   :  { %vm1117_vm11 = vcmp.eq.f32.partialorder %v1116_v4, 8.507059e+37  ;;  %v1119_v11 = vor.u32 1.1754944e-38, %v1118_v6 }
 0x3cb   :  { %v1994_v24 = vpop.eup %1993 }
 0x3cc   :  { %v1996_v26 = vpop.eup %1995  ;;  %v1090_v23 = vadd.f32 1.0, %v1994_v24 }
 0x3cd   :  { %v1998_v8 = vpop.eup %1997  ;;  %v3345_v29 = vadd.f32 1.0, %v1996_v26 }
 0x3ce   :  { %v2000_v44 = vpop.eup %1999  ;;  %v1093_v31 = vmul.f32 %v1998_v8, %v1088_v62  ;;  %2001 = vrcp.f32 %v1090_v23  ;;  %vm1098_vm5 = vweird.f32 %v1998_v8  ;;  %v1133_v48 = vand.u32 2147483648, %v1090_v23 }
 0x3cf   :  { %v1108_v5 = vmul.f32 %v2000_v44, %v1089_v34  ;;  %2003 = vrcp.f32 %v3345_v29  ;;  %vm1113_vm6 = vweird.f32 %v2000_v44  ;;  %vm3348_vm8 = vmor %vm1097_vm7, %vm1098_vm5  ;;  %v1131_v50 = vand.u32 2147483647, %v1090_v23 }
 0x3d0   :  { %v1094_v61 = vsub.f32 1.0, %v1093_v31  ;;  %vm1114_vm10 = vmor %vm1112_vm9, %vm1113_vm6  ;;  %vm1127_vm14 = vweird.f32 %v1090_v23  ;;  %v1148_v6 = vand.u32 2147483648, %v3345_v29  ;;  %vm1142_vm5 = vweird.f32 %v3345_v29 }
 0x3d1   :  { %v1109_v54 = vsub.f32 1.0, %v1108_v5  ;;  %vm1132_vm2 = vcmp.eq.f32.partialorder %v1131_v50, 8.507059e+37  ;;  %v2132_v50 = vld [vmem:[#allocation8 + $0x1b0] sm:$0xff] }
 0x3d2   :  { %v1095_v58 = vmul.f32 %v1998_v8, %v1094_v61  ;;  %v1149_v27 = vor.u32 1.1754944e-38, %v1148_v6  ;;  %v2151_v6 = vld [vmem:[#allocation8 + $0xf8] sm:$0xff] }
 0x3d3   :  { %v1110_v41 = vmul.f32 %v2000_v44, %v1109_v54 }
 0x3d4   :  { %v2002_v1 = vpop.eup %2001  ;;  %v1096_v32 = vadd.f32 %v1998_v8, %v1095_v58 }
 0x3d5   :  { %v1111_v3 = vadd.f32 %v2000_v44, %v1110_v41  ;;  %v1123_v28 = vmul.f32 %v2002_v1, %v1090_v23  ;;  %v2004_v2 = vpop.eup %2003  ;;  %vm1128_vm13 = vweird.f32 %v2002_v1  ;;  %v1146_v23 = vand.u32 2147483647, %v3345_v29 }
 0x3d6   :  { %v1100_v12 = vsel %vm3348_vm8, %v1998_v8, %v1096_v32  ;;  %v1138_v16 = vmul.f32 %v2004_v2, %v3345_v29  ;;  %vm1129_vm15 = vmor %vm1127_vm14, %vm1128_vm13  ;;  %v1134_v8 = vor.u32 1.1754944e-38, %v1133_v48  ;;  %vm1143_vm3 = vweird.f32 %v2004_v2  ;;  %v2130_v48 = vld [vmem:[#allocation8 + $0x1d8] sm:$0xff] }
 0x3d7   :  { %v1115_v14 = vsel %vm1114_vm10, %v2000_v44, %v1111_v3  ;;  %v1124_v15 = vsub.f32 1.0, %v1123_v28  ;;  %v1105_v34 = vsel %vm1102_vm12, %v1104_v46, %v1100_v12  ;;  %v1161_v41 = vrot.slane %v3268_v21, 6  ;;  %vm1144_vm6 = vmor %vm1142_vm5, %vm1143_vm3  ;;  %v2128_v46 = vld [vmem:[#allocation8 + $0x1c0] sm:$0xff] }
 0x3d8   :  { %v1120_v20 = vsel %vm1117_vm11, %v1119_v11, %v1115_v14  ;;  %v1139_v62 = vsub.f32 1.0, %v1138_v16  ;;  %v1152_v44 = vmul.f32 %v1105_v34, %v2807_v51  ;;  %vm1147_vm7 = vcmp.eq.f32.partialorder %v1146_v23, 8.507059e+37  ;;  %v2127_v16 = vld [vmem:[#allocation8 + $0x1f8] sm:$0xff]  ;;  %v2135_v34 = vld [vmem:[#allocation8 + $0x190] sm:$0xff] }
 0x3d9   :  { %v1125_v25 = vmul.f32 %v2002_v1, %v1124_v15  ;;  %v1153_v24 = vmul.f32 %v1120_v20, %v2816_v36  ;;  %v2126_v15 = vld [vmem:[#allocation8 + $0x1f0] sm:$0xff] }
 0x3da   :  { %v1140_v31 = vmul.f32 %v2004_v2, %v1139_v62  ;;  %v1156_v32 = vadd.f32 %v1152_v44, %v2829_v57  ;;  %v2129_v20 = vld [vmem:[#allocation8 + $0x1d0] sm:$0xff]  ;;  %v2133_v62 = vld [vmem:[#allocation8 + $0x1b8] sm:$0xff] }
 0x3db   :  { %v1126_v26 = vadd.f32 %v2002_v1, %v1125_v25  ;;  %v1157_v58 = vadd.f32 %v1153_v24, %v2837_v59  ;;  %v2131_v25 = vld [vmem:[#allocation8 + $0x1a0] sm:$0xff]  ;;  %v2136_v24 = vld [vmem:[#allocation8 + $0x198] sm:$0xff]  ;;  %v2153_v23 = vld [vmem:[#allocation8 + $0xd0] sm:$0xff] }
 0x3dc   :  { %v1141_v54 = vadd.f32 %v2004_v2, %v1140_v31  ;;  %v2139_v31 = vld [vmem:[#allocation8 + $0x178] sm:$0xff] }
 0x3dd   :  { %v1130_v5 = vsel %vm1129_vm15, %v2002_v1, %v1126_v26  ;;  %v1163_v22 = vmul.f32 %v1161_v41, %v1157_v58  ;;  %v2138_v26 = vld [vmem:[#allocation8 + $0x170] sm:$0xff]  ;;  %v2142_v44 = vld [vmem:[#allocation8 + $0x158] sm:$0xff] }
 0x3de   :  { %v1135_v61 = vsel %vm1132_vm2, %v1134_v8, %v1130_v5  ;;  %v1145_v42 = vsel %vm1144_vm6, %v2004_v2, %v1141_v54  ;;  %v2125_v2 = vld [vmem:[#allocation8 + $0x1e0] sm:$0xff]  ;;  %v2141_v8 = vld [vmem:[#allocation8 + $0x150] sm:$0xff]  ;;  %v2148_v58 = vld [vmem:[#allocation8 + $0x118] sm:$0xff] }
 0x3df   :  { %v1154_v4 = vmul.f32 %v1135_v61, %v2810_v49  ;;  %v1150_v28 = vsel %vm1147_vm7, %v1149_v27, %v1145_v42  ;;  %v2144_v5 = vld [vmem:[#allocation8 + $0x130] sm:$0xff]  ;;  %v2145_v61 = vld [vmem:[#allocation8 + $0x138] sm:$0xff] }
 0x3e0   :  { %v1155_v12 = vmul.f32 %v1150_v28, %v2813_v33  ;;  %v2147_v54 = vld [vmem:[#allocation8 + $0x110] sm:$0xff]  ;;  %v2154_v41 = vld [vmem:[#allocation8 + $0xd8] sm:$0xff] }
 0x3e1   :  { %v1158_v1 = vadd.f32 %v1154_v4, %v2831_v39  ;;  %v2150_v4 = vld [vmem:[#allocation8 + $0xf0] sm:$0xff]  ;;  %v2160_v27 = vld [vmem:[#allocation8 + $0x98] sm:$0xff] }
 0x3e2   :  { %v1159_v29 = vadd.f32 %v1155_v12, %v2848_v60  ;;  %v2159_v42 = vld [vmem:[#allocation8 + $0x90] sm:$0xff] }
 0x3e3   :  { %v1164_v3 = vmul.f32 %v1158_v1, %v1156_v32  ;;  %v2156_v32 = vld [vmem:[#allocation8 + $0xb0] sm:$0xff]  ;;  %v2157_v1 = vld [vmem:[#allocation8 + $0xb8] sm:$0xff] }
 0x3e4   :  { %v2166_v28 = vld [vmem:[#allocation8 + $0x30] sm:$0xff] }
 0x3e5   :  { %v3365_v11 = vadd.f32 %v1164_v3, %v1163_v22  ;;  %v2162_v22 = vld [vmem:[#allocation8 + $0x70] sm:$0xff] }
 0x3e6   :  { %v2164_v3 = vld [vmem:[#allocation8 + $0x50] sm:$0xff] }
 0x3e7   :  { %2005 = vtanh.f32 %v3365_v11 }
 0x3ed   :  { %v2006_v21 = vpop.eup %2005 }
 0x3ee   :  { %v3370_v14 = vmul.f32 %v2006_v21, %v1159_v29  ;;  %v1169_v29 = vld [vmem:[#allocation2 + $0x28] sm:$0xc] }
 0x3f0   :  { %1188 = vmatmul.f32.vlgmr.msra.gmra.mxu0 %v3370_v14  ;;  %1208 = vmatmul.f32.vlgmr.msra.gmra.mxu1 %v3370_v14 }
 0x3f1   :  { %1228 = vmatmul.f32.vlgmr.msrb.gmra.mxu2 %v3370_v14  ;;  %1248 = vmatmul.f32.vlgmr.msrb.gmra.mxu3 %v3370_v14 }
 0x3f2   :  { %1570 = vmatpush.msra.mxu0 %v2125_v2  ;;  %1590 = vmatpush.msra.mxu1 %v3141_v0  ;;  %v2134_v0 = vld [vmem:[#allocation8 + $0x180] sm:$0xff] }
 0x3f3   :  { %1610 = vmatpush.msrb.mxu2 %v2126_v15  ;;  %1630 = vmatpush.msrb.mxu3 %v2127_v16 }
 0x3f4   :  { %1571 = vmatpush.msra.mxu0 %v2128_v46  ;;  %1591 = vmatpush.msra.mxu1 %v3147_v47  ;;  %v2137_v47 = vld [vmem:[#allocation8 + $0x160] sm:$0xff]  ;;  %v1170_v46 = vld [vmem:[#allocation2 + $0x30] sm:$0xc] }
 0x3f5   :  { %1611 = vmatpush.msrb.mxu2 %v2129_v20  ;;  %1631 = vmatpush.msrb.mxu3 %v2130_v48 }
 0x3f6   :  { %1572 = vmatpush.msra.mxu0 %v2131_v25  ;;  %1592 = vmatpush.msra.mxu1 %v3153_v7  ;;  %v2140_v7 = vld [vmem:[#allocation8 + $0x140] sm:$0xff]  ;;  %v1171_v25 = vld [vmem:[#allocation2 + $0x38] sm:$0xc] }
 0x3f7   :  { %1612 = vmatpush.msrb.mxu2 %v2132_v50  ;;  %1632 = vmatpush.msrb.mxu3 %v2133_v62 }
 0x3f8   :  { %1573 = vmatpush.msra.mxu0 %v2134_v0  ;;  %1593 = vmatpush.msra.mxu1 %v3159_v63  ;;  %v2143_v63 = vld [vmem:[#allocation8 + $0x120] sm:$0xff] }
 0x3f9   :  { %1613 = vmatpush.msrb.mxu2 %v2135_v34  ;;  %1633 = vmatpush.msrb.mxu3 %v2136_v24 }
 0x3fa   :  { %1574 = vmatpush.msra.mxu0 %v2137_v47  ;;  %1594 = vmatpush.msra.mxu1 %v3165_v37  ;;  %v2146_v37 = vld [vmem:[#allocation8 + $0x100] sm:$0xff] }
 0x3fb   :  { %1614 = vmatpush.msrb.mxu2 %v2138_v26  ;;  %1634 = vmatpush.msrb.mxu3 %v2139_v31 }
 0x3fc   :  { %1575 = vmatpush.msra.mxu0 %v2140_v7  ;;  %1595 = vmatpush.msra.mxu1 %v3171_v13  ;;  %v2149_v13 = vld [vmem:[#allocation8 + $0xe0] sm:$0xff] }
 0x3fd   :  { %1615 = vmatpush.msrb.mxu2 %v2141_v8  ;;  %1635 = vmatpush.msrb.mxu3 %v2142_v44 }
 0x3fe   :  { %1576 = vmatpush.msra.mxu0 %v2143_v63  ;;  %1596 = vmatpush.msra.mxu1 %v3177_v9  ;;  %v2152_v9 = vld [vmem:[#allocation8 + $0xc0] sm:$0xff] }
 0x3ff   :  { %1616 = vmatpush.msrb.mxu2 %v2144_v5  ;;  %1636 = vmatpush.msrb.mxu3 %v2145_v61 }
 0x400   :  { %1577 = vmatpush.msra.mxu0 %v2146_v37  ;;  %1597 = vmatpush.msra.mxu1 %v3770_v10  ;;  %v2155_v10 = vld [vmem:[#allocation8 + $0xa0] sm:$0xff] }
 0x401   :  { %1617 = vmatpush.msrb.mxu2 %v2147_v54  ;;  %1637 = vmatpush.msrb.mxu3 %v2148_v58 }
 0x402   :  { %1578 = vmatpush.msra.mxu0 %v2149_v13  ;;  %1598 = vmatpush.msra.mxu1 %v3774_v43  ;;  %v2158_v43 = vld [vmem:[#allocation8 + $0x80] sm:$0xff] }
 0x403   :  { %1618 = vmatpush.msrb.mxu2 %v2150_v4  ;;  %1638 = vmatpush.msrb.mxu3 %v2151_v6 }
 0x404   :  { %1579 = vmatpush.msra.mxu0 %v2152_v9  ;;  %1599 = vmatpush.msra.mxu1 %v3778_v18  ;;  %v2161_v18 = vld [vmem:[#allocation8 + $0x60] sm:$0xff] }
 0x405   :  { %1619 = vmatpush.msrb.mxu2 %v2153_v23  ;;  %1639 = vmatpush.msrb.mxu3 %v2154_v41 }
 0x406   :  { %1580 = vmatpush.msra.mxu0 %v2155_v10  ;;  %1600 = vmatpush.msra.mxu1 %v3782_v30  ;;  %v2163_v30 = vld [vmem:[#allocation8 + $0x40] sm:$0xff] }
 0x407   :  { %1620 = vmatpush.msrb.mxu2 %v2156_v32  ;;  %1640 = vmatpush.msrb.mxu3 %v2157_v1 }
 0x408   :  { %1581 = vmatpush.msra.mxu0 %v2158_v43  ;;  %1601 = vmatpush.msra.mxu1 %v3786_v52  ;;  %v2165_v52 = vld [vmem:[#allocation8 + $0x20] sm:$0xff] }
 0x409   :  { %1621 = vmatpush.msrb.mxu2 %v2159_v42  ;;  %1641 = vmatpush.msrb.mxu3 %v2160_v27 }
 0x40a   :  { %1582 = vmatpush.msra.mxu0 %v2161_v18  ;;  %1602 = vmatpush.msra.mxu1 %v3790_v56  ;;  %v2167_v56 = vld [vmem:[#allocation8] sm:$0xff] }
 0x40b   :  { %1622 = vmatpush.msrb.mxu2 %v2162_v22  ;;  %1642 = vmatpush.msrb.mxu3 %v3792_v38  ;;  %v2168_v38 = vld [vmem:[#allocation8 + $0x10] sm:$0xff] }
 0x40c   :  { %1583 = vmatpush.msra.mxu0 %v2163_v30  ;;  %1603 = vmatpush.msra.mxu1 %v3794_v19  ;;  %v1168_v19 = vld [vmem:[#allocation2 + $0x20] sm:$0xc] }
 0x40d   :  { %1623 = vmatpush.msrb.mxu2 %v2164_v3  ;;  %1643 = vmatpush.msrb.mxu3 %v3796_v53 }
 0x40e   :  { %1584 = vmatpush.msra.mxu0 %v2165_v52  ;;  %1604 = vmatpush.msra.mxu1 %v3798_v55 }
 0x40f   :  { %1624 = vmatpush.msrb.mxu2 %v2166_v28  ;;  %1644 = vmatpush.msrb.mxu3 %v3800_v40 }
 0x410   :  { %1585 = vmatpush.msra.mxu0 %v2167_v56  ;;  %1605 = vmatpush.msra.mxu1 %v3802_v17 }
 0x411   :  { %1625 = vmatpush.msrb.mxu2 %v2168_v38  ;;  %1645 = vmatpush.msrb.mxu3 %v3804_v45 }
 0x46d   :  { %v1189_v12 = vpop.f32.mrf.mxu0  ;;  %v1209_v53 = vpop.f32.mrf.mxu1 }
 0x46e   :  { %v1256_v21 = vrot.slane %v1189_v12, 6  ;;  %v1257_v2 = vrot.slane %v1209_v53, 6 }
 0x470   :  { %v1264_v15 = vadd.f32 %v1256_v21, %v1168_v19  ;;  %v1265_v55 = vadd.f32 %v1257_v2, %v1169_v29 }
 0x472   :  { %v1268_v16 = vmul.f32 %v1264_v15, %v2807_v51  ;;  %v1269_v40 = vmul.f32 %v1265_v55, %v2816_v36 }
 0x474   :  { %v1891_v20 = vmul.f32 -1.442695, %v1268_v16  ;;  %v1892_v48 = vmul.f32 -1.442695, %v1269_v40  ;;  %v1229_v17 = vpop.f32.mrf.mxu2  ;;  %v1249_v50 = vpop.f32.mrf.mxu3 }
 0x475   :  { %v1258_v62 = vrot.slane %v1229_v17, 6  ;;  %v1259_v45 = vrot.slane %v1249_v50, 6 }
 0x476   :  { %2007 = vpow2.f32 %v1891_v20 }
 0x477   :  { %2009 = vpow2.f32 %v1892_v48  ;;  %v1266_v0 = vadd.f32 %v1258_v62, %v1170_v46  ;;  %v1267_v34 = vadd.f32 %v1259_v45, %v1171_v25 }
 0x479   :  { %v1270_v24 = vmul.f32 %v1266_v0, %v2810_v49  ;;  %v1271_v47 = vmul.f32 %v1267_v34, %v2813_v33 }
 0x47b   :  { %v1893_v26 = vmul.f32 -1.442695, %v1270_v24  ;;  %v1894_v31 = vmul.f32 -1.442695, %v1271_v47 }
 0x47c   :  { %v2008_v7 = vpop.eup %2007 }
 0x47d   :  { %v2010_v8 = vpop.eup %2009  ;;  %v1284_v44 = vadd.f32 1.0, %v2008_v7  ;;  %2011 = vpow2.f32 %v1893_v26 }
 0x47e   :  { %v1285_v63 = vadd.f32 1.0, %v2010_v8  ;;  %2013 = vpow2.f32 %v1894_v31  ;;  %v1357_v31 = vrot.slane %v3365_v11, 6  ;;  %v1364_v11 = vld [vmem:[#allocation2 + $0x20] sm:$0x30] }
 0x47f   :  { %2015 = vrcp.f32 %v1284_v44  ;;  %vm1293_vm10 = vweird.f32 %v1284_v44  ;;  %v1297_v27 = vand.u32 2147483647, %v1284_v44  ;;  %v1299_v18 = vand.u32 2147483648, %v1284_v44 }
 0x480   :  { %2017 = vrcp.f32 %v1285_v63  ;;  %v1312_v10 = vand.u32 2147483647, %v1285_v63  ;;  %v1314_v32 = vand.u32 2147483648, %v1285_v63  ;;  %vm1308_vm12 = vweird.f32 %v1285_v63 }
 0x481   :  { %vm1298_vm15 = vcmp.eq.f32.partialorder %v1297_v27, 8.507059e+37  ;;  %v1300_v29 = vor.u32 1.1754944e-38, %v1299_v18  ;;  %v1366_v27 = vld [vmem:[#allocation2 + $0x30] sm:$0x30]  ;;  %v1367_v18 = vld [vmem:[#allocation2 + $0x38] sm:$0x30] }
 0x482   :  { %vm1313_vm14 = vcmp.eq.f32.partialorder %v1312_v10, 8.507059e+37  ;;  %v1315_v28 = vor.u32 1.1754944e-38, %v1314_v32 }
 0x483   :  { %v2012_v5 = vpop.eup %2011 }
 0x484   :  { %v2014_v61 = vpop.eup %2013  ;;  %v1286_v37 = vadd.f32 1.0, %v2012_v5 }
 0x485   :  { %v2016_v54 = vpop.eup %2015  ;;  %v3400_v58 = vadd.f32 1.0, %v2014_v61 }
 0x486   :  { %v2018_v13 = vpop.eup %2017  ;;  %v1289_v4 = vmul.f32 %v2016_v54, %v1284_v44  ;;  %2019 = vrcp.f32 %v1286_v37  ;;  %vm1294_vm8 = vweird.f32 %v2016_v54  ;;  %v1329_v21 = vand.u32 2147483648, %v1286_v37 }
 0x487   :  { %v1304_v6 = vmul.f32 %v2018_v13, %v1285_v63  ;;  %2021 = vrcp.f32 %v3400_v58  ;;  %vm1309_vm9 = vweird.f32 %v2018_v13  ;;  %vm3403_vm11 = vmor %vm1293_vm10, %vm1294_vm8  ;;  %v1327_v15 = vand.u32 2147483647, %v1286_v37 }
 0x488   :  { %v1290_v9 = vsub.f32 1.0, %v1289_v4  ;;  %vm1310_vm13 = vmor %vm1308_vm12, %vm1309_vm9  ;;  %vm1323_vm3 = vweird.f32 %v1286_v37  ;;  %v1330_v48 = vor.u32 1.1754944e-38, %v1329_v21  ;;  %v1344_v0 = vand.u32 2147483648, %v3400_v58  ;;  %v1785_v21 = vld [vmem:[#allocation10 + $0x60] sm:$0xff] }
 0x489   :  { %v1305_v23 = vsub.f32 1.0, %v1304_v6  ;;  %vm1328_vm6 = vcmp.eq.f32.partialorder %v1327_v15, 8.507059e+37  ;;  %vm1338_vm8 = vweird.f32 %v3400_v58  ;;  %v1342_v24 = vand.u32 2147483647, %v3400_v58 }
 0x48a   :  { %v1291_v41 = vmul.f32 %v2016_v54, %v1290_v9  ;;  %v1345_v8 = vor.u32 1.1754944e-38, %v1344_v0  ;;  %v1365_v9 = vld [vmem:[#allocation2 + $0x28] sm:$0x30] }
 0x48b   :  { %v1306_v1 = vmul.f32 %v2018_v13, %v1305_v23  ;;  %vm1343_vm10 = vcmp.eq.f32.partialorder %v1342_v24, 8.507059e+37 }
 0x48c   :  { %v2020_v43 = vpop.eup %2019  ;;  %v1292_v42 = vadd.f32 %v2016_v54, %v1291_v41 }
 0x48d   :  { %v1307_v30 = vadd.f32 %v2018_v13, %v1306_v1  ;;  %v1319_v3 = vmul.f32 %v2020_v43, %v1286_v37  ;;  %v2022_v52 = vpop.eup %2021  ;;  %vm1324_vm2 = vweird.f32 %v2020_v43 }
 0x48e   :  { %v1296_v56 = vsel %vm3403_vm11, %v2016_v54, %v1292_v42  ;;  %v1334_v12 = vmul.f32 %v2022_v52, %v3400_v58  ;;  %vm1325_vm5 = vmor %vm1323_vm3, %vm1324_vm2  ;;  %vm1339_vm7 = vweird.f32 %v2022_v52 }
 0x48f   :  { %v1311_v38 = vsel %vm1310_vm13, %v2018_v13, %v1307_v30  ;;  %v1320_v19 = vsub.f32 1.0, %v1319_v3  ;;  %v1301_v16 = vsel %vm1298_vm15, %v1300_v29, %v1296_v56  ;;  %vm1340_vm9 = vmor %vm1338_vm8, %vm1339_vm7 }
 0x490   :  { %v1316_v53 = vsel %vm1313_vm14, %v1315_v28, %v1311_v38  ;;  %v1335_v55 = vsub.f32 1.0, %v1334_v12  ;;  %v1348_v17 = vmul.f32 %v1301_v16, %v2807_v51  ;;  %v1788_v28 = vld [vmem:[#allocation10 + $0x78] sm:$0xff] }
 0x491   :  { %v1321_v2 = vmul.f32 %v2020_v43, %v1320_v19  ;;  %v1349_v40 = vmul.f32 %v1316_v53, %v2816_v36  ;;  %v1787_v19 = vld [vmem:[#allocation10 + $0x70] sm:$0xff]  ;;  %v1786_v53 = vld [vmem:[#allocation10 + $0x68] sm:$0xff] }
 0x492   :  { %v1336_v20 = vmul.f32 %v2022_v52, %v1335_v55  ;;  %v1352_v47 = vadd.f32 %v1348_v17, %v2829_v57  ;;  %v1784_v55 = vld [vmem:[#allocation10 + $0x58] sm:$0xff] }
 0x493   :  { %v1322_v46 = vadd.f32 %v2020_v43, %v1321_v2  ;;  %v1353_v34 = vadd.f32 %v1349_v40, %v2837_v59 }
 0x494   :  { %v1337_v62 = vadd.f32 %v2022_v52, %v1336_v20  ;;  %v1783_v20 = vld [vmem:[#allocation10 + $0x50] sm:$0xff] }
 0x495   :  { %v1326_v25 = vsel %vm1325_vm5, %v2020_v43, %v1322_v46  ;;  %v1359_v44 = vmul.f32 %v1357_v31, %v1353_v34 }
 0x496   :  { %v1331_v50 = vsel %vm1328_vm6, %v1330_v48, %v1326_v25  ;;  %v1341_v7 = vsel %vm1340_vm9, %v2022_v52, %v1337_v62  ;;  %v1781_v62 = vld [vmem:[#allocation10 + $0x40] sm:$0xff] }
 0x497   :  { %v1350_v45 = vmul.f32 %v1331_v50, %v2810_v49  ;;  %v1346_v5 = vsel %vm1343_vm10, %v1345_v8, %v1341_v7  ;;  %v1782_v50 = vld [vmem:[#allocation10 + $0x48] sm:$0xff] }
 0x498   :  { %v1351_v37 = vmul.f32 %v1346_v5, %v2813_v33 }
 0x499   :  { %v1354_v26 = vadd.f32 %v1350_v45, %v2831_v39  ;;  %v1780_v45 = vld [vmem:[#allocation10 + $0x38] sm:$0xff] }
 0x49a   :  { %v1355_v54 = vadd.f32 %v1351_v37, %v2848_v60  ;;  %v1777_v37 = vld [vmem:[#allocation10 + $0x20] sm:$0xff] }
 0x49b   :  { %v1360_v63 = vmul.f32 %v1354_v26, %v1352_v47  ;;  %v1779_v47 = vld [vmem:[#allocation10 + $0x30] sm:$0xff] }
 0x49d   :  { %v3420_v61 = vadd.f32 %v1360_v63, %v1359_v44  ;;  %v1778_v44 = vld [vmem:[#allocation10 + $0x28] sm:$0xff] }
 0x49f   :  { %2023 = vtanh.f32 %v3420_v61 }
 0x4a5   :  { %v2024_v58 = vpop.eup %2023 }
 0x4a6   :  { %v3425_v13 = vmul.f32 %v2024_v58, %v1355_v54 }
 0x4a8   :  { %v1369_v4 = vrot.slane %v3425_v13, 2 }
 0x4aa   :  { %1387 = vmatmul.f32.vlgmr.msrb.gmra.mxu0 %v1369_v4  ;;  %1407 = vmatmul.f32.vlgmr.msrb.gmra.mxu1 %v1369_v4 }
 0x4ab   :  { %1427 = vmatmul.f32.vlgmr.msra.gmra.mxu2 %v1369_v4  ;;  %1447 = vmatmul.f32.vlgmr.msra.gmra.mxu3 %v1369_v4 }
 0x4ac   :  { %1793 = vmatpush.msrb.mxu0 %v1788_v28 }
 0x4ae   :  { %1794 = vmatpush.msrb.mxu0 %v1787_v19 }
 0x4b0   :  { %1795 = vmatpush.msrb.mxu0 %v1786_v53 }
 0x4b2   :  { %1796 = vmatpush.msrb.mxu0 %v1785_v21 }
 0x4b4   :  { %1797 = vmatpush.msrb.mxu0 %v1784_v55 }
 0x4b6   :  { %1798 = vmatpush.msrb.mxu0 %v1783_v20 }
 0x4b8   :  { %1799 = vmatpush.msrb.mxu0 %v1782_v50 }
 0x4ba   :  { %1800 = vmatpush.msrb.mxu0 %v1781_v62 }
 0x4bc   :  { %1801 = vmatpush.msrb.mxu0 %v1780_v45 }
 0x4be   :  { %1802 = vmatpush.msrb.mxu0 %v1779_v47 }
 0x4c0   :  { %1803 = vmatpush.msrb.mxu0 %v1778_v44 }
 0x4c2   :  { %1804 = vmatpush.msrb.mxu0 %v1777_v37 }
 0x527   :  { %v1388_v6 = vpop.f32.mrf.mxu0  ;;  %v1408_v23 = vpop.f32.mrf.mxu1 }
 0x528   :  { %v1455_v41 = vrot.slane %v1388_v6, 4  ;;  %v1456_v10 = vrot.slane %v1408_v23, 4 }
 0x52a   :  { %v1463_v32 = vadd.f32 %v1455_v41, %v1364_v11  ;;  %v1464_v1 = vadd.f32 %v1456_v10, %v1365_v9  ;;  %v1776_v9 = vld [vmem:[#allocation10 + $0x18] sm:$0xff] }
 0x52b   :  { %1805 = vmatpush.msrb.mxu0 %v1776_v9 }
 0x52c   :  { %v1467_v43 = vmul.f32 %v1463_v32, %v2807_v51  ;;  %v1468_v42 = vmul.f32 %v1464_v1, %v2816_v36  ;;  %v1775_v1 = vld [vmem:[#allocation10 + $0x10] sm:$0xff] }
 0x52d   :  { %1806 = vmatpush.msrb.mxu0 %v1775_v1 }
 0x52e   :  { %v1895_v22 = vmul.f32 -1.442695, %v1467_v43  ;;  %v1896_v30 = vmul.f32 -1.442695, %v1468_v42  ;;  %v1428_v3 = vpop.f32.mrf.mxu2  ;;  %v1448_v52 = vpop.f32.mrf.mxu3 }
 0x52f   :  { %v1457_v56 = vrot.slane %v1428_v3, 4  ;;  %v1458_v38 = vrot.slane %v1448_v52, 4 }
 0x530   :  { %2025 = vpow2.f32 %v1895_v22 }
 0x531   :  { %2027 = vpow2.f32 %v1896_v30  ;;  %v1465_v12 = vadd.f32 %v1457_v56, %v1366_v27  ;;  %v1466_v29 = vadd.f32 %v1458_v38, %v1367_v18  ;;  %v1774_v30 = vld [vmem:[#allocation10 + $0x8] sm:$0xff] }
 0x532   :  { %1807 = vmatpush.msrb.mxu0 %v1774_v30  ;;  %v1566_v30 = vld [vmem:[#allocation2 + $0x38] sm:$0xc0] }
 0x533   :  { %v1469_v2 = vmul.f32 %v1465_v12, %v2810_v49  ;;  %v1470_v15 = vmul.f32 %v1466_v29, %v2813_v33  ;;  %v1773_v29 = vld [vmem:[#allocation10] sm:$0xff] }
 0x534   :  { %1808 = vmatpush.msrb.mxu0 %v1773_v29 }
 0x535   :  { %v1897_v16 = vmul.f32 -1.442695, %v1469_v2  ;;  %v1898_v40 = vmul.f32 -1.442695, %v1470_v15 }
 0x536   :  { %v2026_v46 = vpop.eup %2025 }
 0x537   :  { %v2028_v48 = vpop.eup %2027  ;;  %v1483_v17 = vadd.f32 1.0, %v2026_v46  ;;  %2029 = vpow2.f32 %v1897_v16 }
 0x538   :  { %v1484_v25 = vadd.f32 1.0, %v2028_v48  ;;  %2031 = vpow2.f32 %v1898_v40 }
 0x539   :  { %2033 = vrcp.f32 %v1483_v17  ;;  %vm1492_vm13 = vweird.f32 %v1483_v17  ;;  %v1496_v10 = vand.u32 2147483647, %v1483_v17  ;;  %v1498_v32 = vand.u32 2147483648, %v1483_v17 }
 0x53a   :  { %2035 = vrcp.f32 %v1484_v25  ;;  %v1511_v4 = vand.u32 2147483647, %v1484_v25  ;;  %v1513_v11 = vand.u32 2147483648, %v1484_v25  ;;  %vm1507_vm15 = vweird.f32 %v1484_v25 }
 0x53b   :  { %vm1497_vm5 = vcmp.eq.f32.partialorder %v1496_v10, 8.507059e+37  ;;  %v1499_v38 = vor.u32 1.1754944e-38, %v1498_v32 }
 0x53c   :  { %vm1512_vm3 = vcmp.eq.f32.partialorder %v1511_v4, 8.507059e+37  ;;  %v1514_v22 = vor.u32 1.1754944e-38, %v1513_v11 }
 0x53d   :  { %v2030_v0 = vpop.eup %2029 }
 0x53e   :  { %v2032_v34 = vpop.eup %2031  ;;  %v3432_v24 = vadd.f32 1.0, %v2030_v0 }
 0x53f   :  { %v2034_v26 = vpop.eup %2033  ;;  %v3434_v31 = vadd.f32 1.0, %v2032_v34  ;;  %v1556_v34 = vrot.slane %v3420_v61, 6 }
 0x540   :  { %v2036_v7 = vpop.eup %2035  ;;  %v1488_v8 = vmul.f32 %v2034_v26, %v1483_v17  ;;  %2037 = vrcp.f32 %v3432_v24  ;;  %vm1493_vm11 = vweird.f32 %v2034_v26  ;;  %v1528_v12 = vand.u32 2147483648, %v3432_v24 }
 0x541   :  { %v1503_v63 = vmul.f32 %v2036_v7, %v1484_v25  ;;  %2039 = vrcp.f32 %v3434_v31  ;;  %vm1508_vm12 = vweird.f32 %v2036_v7  ;;  %vm3438_vm14 = vmor %vm1492_vm13, %vm1493_vm11  ;;  %v1526_v21 = vand.u32 2147483647, %v3432_v24 }
 0x542   :  { %v1489_v5 = vsub.f32 1.0, %v1488_v8  ;;  %vm1509_vm2 = vmor %vm1507_vm15, %vm1508_vm12  ;;  %vm1522_vm7 = vweird.f32 %v3432_v24  ;;  %v1529_v46 = vor.u32 1.1754944e-38, %v1528_v12  ;;  %v1543_v62 = vand.u32 2147483648, %v3434_v31 }
 0x543   :  { %v1504_v54 = vsub.f32 1.0, %v1503_v63  ;;  %vm1527_vm9 = vcmp.eq.f32.partialorder %v1526_v21, 8.507059e+37  ;;  %vm1537_vm11 = vweird.f32 %v3434_v31  ;;  %v1541_v0 = vand.u32 2147483647, %v3434_v31 }
 0x544   :  { %v1490_v58 = vmul.f32 %v2034_v26, %v1489_v5 }
 0x545   :  { %v1505_v6 = vmul.f32 %v2036_v7, %v1504_v54  ;;  %vm1542_vm13 = vcmp.eq.f32.partialorder %v1541_v0, 8.507059e+37 }
 0x546   :  { %v2038_v23 = vpop.eup %2037  ;;  %v1491_v41 = vadd.f32 %v2034_v26, %v1490_v58  ;;  %v1770_v58 = vsel %vm1764_vm0, %v3370_v14, %v3425_v13 }
 0x547   :  { %v1506_v42 = vadd.f32 %v2036_v7, %v1505_v6  ;;  %v1518_v27 = vmul.f32 %v2038_v23, %v3432_v24  ;;  %v2040_v18 = vpop.eup %2039  ;;  %vm1523_vm6 = vweird.f32 %v2038_v23  ;;  %v1563_v6 = vld [vmem:[#allocation2 + $0x20] sm:$0xc0] }
 0x548   :  { %v1495_v3 = vsel %vm3438_vm14, %v2034_v26, %v1491_v41  ;;  %v1533_v56 = vmul.f32 %v2040_v18, %v3434_v31  ;;  %vm1524_vm8 = vmor %vm1522_vm7, %vm1523_vm6  ;;  %vm1538_vm10 = vweird.f32 %v2040_v18 }
 0x549   :  { %v1510_v52 = vsel %vm1509_vm2, %v2036_v7, %v1506_v42  ;;  %v1519_v28 = vsub.f32 1.0, %v1518_v27  ;;  %v1500_v15 = vsel %vm1497_vm5, %v1499_v38, %v1495_v3  ;;  %vm1539_vm12 = vmor %vm1537_vm11, %vm1538_vm10  ;;  %v1544_v7 = vor.u32 1.1754944e-38, %v1543_v62  ;;  %v3477_v42 = vld [vmem:[%s3524_s5] ss:$0 sm:$0xff]  ;;  %v1565_v27 = vld [vmem:[#allocation2 + $0x30] sm:$0xc0] }
 0x54a   :  { %v1515_v19 = vsel %vm1512_vm3, %v1514_v22, %v1510_v52  ;;  %v1534_v2 = vsub.f32 1.0, %v1533_v56  ;;  %v1547_v20 = vmul.f32 %v1500_v15, %v2807_v51 }
 0x54b   :  { %v1520_v53 = vmul.f32 %v2038_v23, %v1519_v28  ;;  %v1548_v55 = vmul.f32 %v1515_v19, %v2816_v36 }
 0x54c   :  { %v1535_v40 = vmul.f32 %v2040_v18, %v1534_v2  ;;  %v1551_v24 = vadd.f32 %v1547_v20, %v2829_v57 }
 0x54d   :  { %v1521_v16 = vadd.f32 %v2038_v23, %v1520_v53  ;;  %v1552_v45 = vadd.f32 %v1548_v55, %v2837_v59 }
 0x54e   :  { %v1536_v25 = vadd.f32 %v2040_v18, %v1535_v40 }
 0x54f   :  { %v1525_v48 = vsel %vm1524_vm8, %v2038_v23, %v1521_v16  ;;  %v1558_v8 = vmul.f32 %v1556_v34, %v1552_v45  ;;  %v1564_v23 = vld [vmem:[#allocation2 + $0x28] sm:$0xc0] }
 0x550   :  { %v1530_v17 = vsel %vm1527_vm9, %v1529_v46, %v1525_v48  ;;  %v1540_v26 = vsel %vm1539_vm12, %v2040_v18, %v1536_v25 }
 0x551   :  { %v1549_v50 = vmul.f32 %v1530_v17, %v2810_v49  ;;  %v1545_v63 = vsel %vm1542_vm13, %v1544_v7, %v1540_v26 }
 0x552   :  { %v1550_v37 = vmul.f32 %v1545_v63, %v2813_v33 }
 0x553   :  { %v1553_v47 = vadd.f32 %v1549_v50, %v2831_v39 }
 0x554   :  { %v1554_v31 = vadd.f32 %v1550_v37, %v2848_v60 }
 0x555   :  { %v1559_v44 = vmul.f32 %v1553_v47, %v1551_v24 }
 0x557   :  { %v3460_v5 = vadd.f32 %v1559_v44, %v1558_v8 }
 0x559   :  { %2041 = vtanh.f32 %v3460_v5 }
 0x55f   :  { %v2042_v61 = vpop.eup %2041 }
 0x560   :  { %v1562_v54 = vmul.f32 %v2042_v61, %v1554_v31 }
 0x562   :  { %v1568_v4 = vrot.slane %v1562_v54, 4  ;;  %v3469_v11 = vsel %vm1766_vm1, %v1770_v58, %v1562_v54 }
 0x564   :  { %1586 = vmatmul.f32.vlgmr.msra.gmra.mxu0 %v1568_v4  ;;  %1606 = vmatmul.f32.vlgmr.msra.gmra.mxu1 %v1568_v4 }
 0x565   :  { %1626 = vmatmul.f32.vlgmr.msrb.gmra.mxu2 %v1568_v4  ;;  %1646 = vmatmul.f32.vlgmr.msrb.gmra.mxu3 %v1568_v4 }
 0x56c   :  { %1809 = vmatmul.f32.vlgmr.msrb.gmra.mxu0 %v3275_v35 }
 0x5e1   :  { %v1587_v9 = vpop.f32.mrf.mxu0  ;;  %v1607_v41 = vpop.f32.mrf.mxu1 }
 0x5e2   :  { %v1654_v10 = vrot.slane %v1587_v9, 2  ;;  %v1655_v32 = vrot.slane %v1607_v41, 2 }
 0x5e4   :  { %v1662_v1 = vadd.f32 %v1654_v10, %v1563_v6  ;;  %v1663_v43 = vadd.f32 %v1655_v32, %v1564_v23 }
 0x5e6   :  { %v1666_v14 = vmul.f32 %v1662_v1, %v2807_v51  ;;  %v1667_v13 = vmul.f32 %v1663_v43, %v2816_v36 }
 0x5e8   :  { %v1899_v18 = vmul.f32 -1.442695, %v1666_v14  ;;  %v1900_v35 = vmul.f32 -1.442695, %v1667_v13  ;;  %v1627_v22 = vpop.f32.mrf.mxu2  ;;  %v1647_v3 = vpop.f32.mrf.mxu3 }
 0x5e9   :  { %v1656_v52 = vrot.slane %v1627_v22, 2  ;;  %v1657_v28 = vrot.slane %v1647_v3, 2  ;;  %v1810_v56 = vpop.f32.mrf.mxu0 }
 0x5ea   :  { %2043 = vpow2.f32 %v1899_v18  ;;  %v1811_v38 = vadd.f32 %v3477_v42, %v1810_v56 }
 0x5eb   :  { %2045 = vpow2.f32 %v1900_v35  ;;  %v1664_v19 = vadd.f32 %v1656_v52, %v1565_v27  ;;  %v1665_v12 = vadd.f32 %v1657_v28, %v1566_v30 }
 0x5ec   :  { %1816 = vst [vmem:[#allocation13] sm:$0xff] %v1811_v38 }
 0x5ed   :  { %v1668_v29 = vmul.f32 %v1664_v19, %v2810_v49  ;;  %v1669_v53 = vmul.f32 %v1665_v12, %v2813_v33 }
 0x5ef   :  { %v1901_v21 = vmul.f32 -1.442695, %v1668_v29  ;;  %v1902_v2 = vmul.f32 -1.442695, %v1669_v53 }
 0x5f0   :  { %v2044_v15 = vpop.eup %2043 }
 0x5f1   :  { %v2046_v55 = vpop.eup %2045  ;;  %v1682_v16 = vadd.f32 1.0, %v2044_v15  ;;  %2047 = vpow2.f32 %v1901_v21 }
 0x5f2   :  { %v1683_v40 = vadd.f32 1.0, %v2046_v55  ;;  %2049 = vpow2.f32 %v1902_v2 }
 0x5f3   :  { %2051 = vrcp.f32 %v1682_v16  ;;  %vm1691_vm14 = vweird.f32 %v1682_v16  ;;  %v1695_v63 = vand.u32 2147483647, %v1682_v16  ;;  %v1697_v37 = vand.u32 2147483648, %v1682_v16 }
 0x5f4   :  { %2053 = vrcp.f32 %v1683_v40  ;;  %v1710_v47 = vand.u32 2147483647, %v1683_v40  ;;  %v1712_v26 = vand.u32 2147483648, %v1683_v40  ;;  %vm1706_vm2 = vweird.f32 %v1683_v40 }
 0x5f5   :  { %vm1696_vm6 = vcmp.eq.f32.partialorder %v1695_v63, 8.507059e+37  ;;  %v1698_v10 = vor.u32 1.1754944e-38, %v1697_v37 }
 0x5f6   :  { %vm1711_vm5 = vcmp.eq.f32.partialorder %v1710_v47, 8.507059e+37  ;;  %v1713_v4 = vor.u32 1.1754944e-38, %v1712_v26 }
 0x5f7   :  { %v2048_v46 = vpop.eup %2047 }
 0x5f8   :  { %v2050_v20 = vpop.eup %2049  ;;  %v1684_v48 = vadd.f32 1.0, %v2048_v46 }
 0x5f9   :  { %v2052_v17 = vpop.eup %2051  ;;  %v3482_v25 = vadd.f32 1.0, %v2050_v20 }
 0x5fa   :  { %v2054_v50 = vpop.eup %2053  ;;  %v1687_v62 = vmul.f32 %v2052_v17, %v1682_v16  ;;  %2055 = vrcp.f32 %v1684_v48  ;;  %vm1692_vm0 = vweird.f32 %v2052_v17  ;;  %v1727_v32 = vand.u32 2147483648, %v1684_v48 }
 0x5fb   :  { %v1702_v45 = vmul.f32 %v2054_v50, %v1683_v40  ;;  %2057 = vrcp.f32 %v3482_v25  ;;  %vm1707_vm1 = vweird.f32 %v2054_v50  ;;  %vm3485_vm15 = vmor %vm1691_vm14, %vm1692_vm0  ;;  %v1725_v14 = vand.u32 2147483647, %v1684_v48 }
 0x5fc   :  { %v1688_v0 = vsub.f32 1.0, %v1687_v62  ;;  %vm1708_vm3 = vmor %vm1706_vm2, %vm1707_vm1  ;;  %vm1721_vm8 = vweird.f32 %v1684_v48  ;;  %v1728_v30 = vor.u32 1.1754944e-38, %v1727_v32  ;;  %v1742_v38 = vand.u32 2147483648, %v3482_v25 }
 0x5fd   :  { %v1703_v34 = vsub.f32 1.0, %v1702_v45  ;;  %vm1726_vm10 = vcmp.eq.f32.partialorder %v1725_v14, 8.507059e+37  ;;  %vm1736_vm12 = vweird.f32 %v3482_v25  ;;  %v1740_v29 = vand.u32 2147483647, %v3482_v25 }
 0x5fe   :  { %v1689_v24 = vmul.f32 %v2052_v17, %v1688_v0  ;;  %v1743_v2 = vor.u32 1.1754944e-38, %v1742_v38 }
 0x5ff   :  { %v1704_v7 = vmul.f32 %v2054_v50, %v1703_v34  ;;  %vm1741_vm0 = vcmp.eq.f32.partialorder %v1740_v29, 8.507059e+37 }
 0x600   :  { %v2056_v8 = vpop.eup %2055  ;;  %v1690_v44 = vadd.f32 %v2052_v17, %v1689_v24 }
 0x601   :  { %v1705_v61 = vadd.f32 %v2054_v50, %v1704_v7  ;;  %v1717_v54 = vmul.f32 %v2056_v8, %v1684_v48  ;;  %v2058_v58 = vpop.eup %2057  ;;  %vm1722_vm7 = vweird.f32 %v2056_v8 }
 0x602   :  { %v1694_v6 = vsel %vm3485_vm15, %v2052_v17, %v1690_v44  ;;  %v1732_v41 = vmul.f32 %v2058_v58, %v3482_v25  ;;  %vm1723_vm9 = vmor %vm1721_vm8, %vm1722_vm7  ;;  %vm1737_vm11 = vweird.f32 %v2058_v58 }
 0x603   :  { %v1709_v9 = vsel %vm1708_vm3, %v2054_v50, %v1705_v61  ;;  %v1718_v23 = vsub.f32 1.0, %v1717_v54  ;;  %v1699_v27 = vsel %vm1696_vm6, %v1698_v10, %v1694_v6  ;;  %vm1738_vm13 = vmor %vm1736_vm12, %vm1737_vm11 }
 0x604   :  { %v1714_v1 = vsel %vm1711_vm5, %v1713_v4, %v1709_v9  ;;  %v1733_v13 = vsub.f32 1.0, %v1732_v41  ;;  %v1746_v52 = vmul.f32 %v1699_v27, %v2807_v51  ;;  %v1755_v51 = vrot.slane %v3460_v5, 6 }
 0x605   :  { %v1719_v43 = vmul.f32 %v2056_v8, %v1718_v23  ;;  %v1747_v22 = vmul.f32 %v1714_v1, %v2816_v36 }
 0x606   :  { %v1734_v35 = vmul.f32 %v2058_v58, %v1733_v13  ;;  %v1750_v36 = vadd.f32 %v1746_v52, %v2829_v57 }
 0x607   :  { %v1720_v18 = vadd.f32 %v2056_v8, %v1719_v43  ;;  %v1751_v12 = vadd.f32 %v1747_v22, %v2837_v59 }
 0x608   :  { %v1735_v56 = vadd.f32 %v2058_v58, %v1734_v35 }
 0x609   :  { %v1724_v3 = vsel %vm1723_vm9, %v2056_v8, %v1720_v18  ;;  %v1757_v15 = vmul.f32 %v1755_v51, %v1751_v12 }
 0x60a   :  { %v1729_v28 = vsel %vm1726_vm10, %v1728_v30, %v1724_v3  ;;  %v1739_v21 = vsel %vm1738_vm13, %v2058_v58, %v1735_v56 }
 0x60b   :  { %v1748_v19 = vmul.f32 %v1729_v28, %v2810_v49  ;;  %v1744_v16 = vsel %vm1741_vm0, %v1743_v2, %v1739_v21 }
 0x60c   :  { %v1749_v59 = vmul.f32 %v1744_v16, %v2813_v33 }
 0x60d   :  { %v1752_v53 = vadd.f32 %v1748_v19, %v2831_v39 }
 0x60e   :  { %v1753_v40 = vadd.f32 %v1749_v59, %v2848_v60 }
 0x60f   :  { %v1758_v55 = vmul.f32 %v1752_v53, %v1750_v36 }
 0x611   :  { %v1759_v49 = vadd.f32 %v1758_v55, %v1757_v15 }
 0x613   :  { %2059 = vtanh.f32 %v1759_v49  ;;  %1763 = vst [vmem:[#allocation16 - $0x6] sm:$0xc0] %v1759_v49 }
 0x619   :  { %v2060_v46 = vpop.eup %2059 }
 0x61a   :  { %v1761_v20 = vmul.f32 %v2060_v46, %v1753_v40 }
 0x61c   :  { %v1772_v57 = vsel %vm1768_vm4, %v3469_v11, %v1761_v20  ;;  %1762 = vst [vmem:[#allocation14 - $0x6] sm:$0xc0] %v1761_v20 }
 0x61d   :  { %1812 = vmatmul.f32.gmra.mxu0 %v1772_v57  ;;  %1841 = dma.vmem_to_hbm [thread:$0]  %s1837_s21, 32, %s1839_s19, [#allocation15]  }
 0x61e   :  { %1852 = dma.vmem_to_hbm [thread:$0]  %s1848_s25, 32, %s1850_s23, [#allocation15]  }
 0x69a   :  { %v1813_v33 = vpop.f32.mrf.mxu0 }
 0x69b   :  { %v1814_v39 = vadd.f32 %v3477_v42, %v1813_v33 }
 0x69d   :  { %1817 = vst [vmem:[#allocation13 + $0x8] sm:$0xff] %v1814_v39 }
 0x69e   :  { %1830 = dma.vmem_to_hbm [thread:$0]  %s1823_s27, 256, %s1825_s8, [#allocation4], %s2404_s14, %s2404_s14, %s2405_s15  }
 0x69f   :  { %2393 = dma.done.wait [#allocation4], 256  }
 0x6a0   :  { %2394 = vsyncadd [#allocation4], 4294967040 }
 0x6a1   :  { %2395 = dma.done.wait [#allocation15], 64  }
 0x6a2   :  { %2396 = vsyncadd [#allocation15], 4294967232 }
 0x6a3   :  { %1865 = vsyncpa [#allocation3], 1 }
 0x6a4   :  { %1866 = vsyncpa [#allocation6], 1 }
 0x6a5   :  { %1867 = vsyncpa [#allocation9], 1 }
 0x6a6   :  { %1868 = vsyncpa [#allocation12], 1 }
 0x6a7   :  { %1869 = vsyncpa [#allocation4], 1 }
 0x6a8   :  { %1870 = vsyncpa [#allocation15], 1 }

</bundles_post_ra>
